<compile_context>
chip_gen: v7x
topology: tpu7x:2x2x1
jax: 0.10.0
libtpu: 0.0.40
codegen_flags: <defaults>
</compile_context>

<pallas_src>
import functools

import jax
import jax.numpy as jnp
from jax.experimental import pallas as pl
from jax.experimental.pallas import tpu as pltpu

INIT_FEATURES = 8      # Conv3d output channels (orig. 64)
HIDDEN = 32            # GRU hidden per direction (orig. 256)
N_CLASS = 16           # classifier classes (orig. 313)
BN_EPS = 1e-5
NEG_BIG = -1e30        # "minus infinity" bias for padded softmax lanes


def _round_up(x, m):
    return (x + m - 1) // m * m


# ----------------------------------------------------------------------------
# Pallas kernels
# ----------------------------------------------------------------------------
def _matmul_affine_kernel(x_ref, w_ref, scale_ref, shift_ref, o_ref, *, relu):
    acc = jnp.dot(x_ref[...], w_ref[...], preferred_element_type=jnp.float32)
    y = acc * scale_ref[...] + shift_ref[...]
    if relu:
        y = jnp.maximum(y, 0.0)
    o_ref[...] = y


def matmul_affine(x, w, scale, shift, *, relu, block_m=256):
    """(M,K) @ (K,N) * scale + shift (per-column), optional ReLU, fused.
    M is tiled with a parallel grid axis (pads M to a tile multiple instead of
    ever falling back to a single giant block); callers lane-pad N/K."""
    M, K = x.shape
    _, N = w.shape
    tm = min(block_m, _round_up(M, 8))
    Mp = _round_up(M, tm)
    if Mp != M:
        x = jnp.pad(x, ((0, Mp - M), (0, 0)))
    kernel = functools.partial(_matmul_affine_kernel, relu=relu)
    out = pl.pallas_call(
        kernel,
        out_shape=jax.ShapeDtypeStruct((Mp, N), jnp.float32),
        grid=(Mp // tm,),
        in_specs=[
            pl.BlockSpec((tm, K), lambda i: (i, 0)),
            pl.BlockSpec((K, N), lambda i: (0, 0)),
            pl.BlockSpec((1, N), lambda i: (0, 0)),
            pl.BlockSpec((1, N), lambda i: (0, 0)),
        ],
        out_specs=pl.BlockSpec((tm, N), lambda i: (i, 0)),
        compiler_params=pltpu.CompilerParams(dimension_semantics=("parallel",)),
    )(x, w, scale, shift)
    return out[:M] if Mp != M else out


def _max_reduce_kernel(x_ref, o_ref):
    o_ref[...] = jnp.max(x_ref[...], axis=0)


def max_over_windows(stacked, *, block_m=256):
    """stacked: (KW, M, C) -> (M, C); max over the window axis, tiled over M so
    blocks stay small / pipelined (and shard across cores)."""
    KW, M, C = stacked.shape
    tm = min(block_m, _round_up(M, 8))
    Mp = _round_up(M, tm)
    if Mp != M:
        stacked = jnp.pad(stacked, ((0, 0), (0, Mp - M), (0, 0)))
    out = pl.pallas_call(
        _max_reduce_kernel,
        out_shape=jax.ShapeDtypeStruct((Mp, C), jnp.float32),
        grid=(Mp // tm,),
        in_specs=[pl.BlockSpec((KW, tm, C), lambda i: (0, i, 0))],
        out_specs=pl.BlockSpec((tm, C), lambda i: (i, 0)),
        compiler_params=pltpu.CompilerParams(dimension_semantics=("parallel",)),
    )(stacked)
    return out[:M] if Mp != M else out


def _bigru_kernel(gx_ref, whf_ref, whb_ref, bhf_ref, bhb_ref,
                  of_ref, ob_ref, hf_ref, hb_ref):
    """Fused bidirectional GRU recurrence (whole sequence resident in VMEM).

    gx_ref : (T, B, 6H)  precomputed x@W_ih.T + b_ih, lanes = [fwd r|z|n, bwd r|z|n]
    wh*_ref: (H, 3H)     hidden->gates weights, gate-concatenated (one matmul/step)
    bh*_ref: (1, 3H)
    of/ob  : (T, B, H)   per-direction outputs
    """
    T = of_ref.shape[0]
    H = whf_ref.shape[0]
    hf_ref[...] = jnp.zeros_like(hf_ref)
    hb_ref[...] = jnp.zeros_like(hb_ref)

    def step(t, carry):
        tb = T - 1 - t
        # forward direction, time t
        hf = hf_ref[...]
        gh = jnp.dot(hf, whf_ref[...], preferred_element_type=jnp.float32)
        gh = gh + bhf_ref[...]
        gx = gx_ref[t]
        r = jax.nn.sigmoid(gx[:, 0:H] + gh[:, 0:H])
        z = jax.nn.sigmoid(gx[:, H:2 * H] + gh[:, H:2 * H])
        n = jnp.tanh(gx[:, 2 * H:3 * H] + r * gh[:, 2 * H:3 * H])
        hf_new = (1.0 - z) * n + z * hf
        hf_ref[...] = hf_new
        of_ref[t] = hf_new
        # backward direction, time T-1-t
        hb = hb_ref[...]
        ghb = jnp.dot(hb, whb_ref[...], preferred_element_type=jnp.float32)
        ghb = ghb + bhb_ref[...]
        gxb = gx_ref[tb]
        rb = jax.nn.sigmoid(gxb[:, 3 * H:4 * H] + ghb[:, 0:H])
        zb = jax.nn.sigmoid(gxb[:, 4 * H:5 * H] + ghb[:, H:2 * H])
        nb = jnp.tanh(gxb[:, 5 * H:6 * H] + rb * ghb[:, 2 * H:3 * H])
        hb_new = (1.0 - zb) * nb + zb * hb
        hb_ref[...] = hb_new
        ob_ref[tb] = hb_new
        return carry

    jax.lax.fori_loop(0, T, step, 0)


def bigru_recurrence(gx, whh_f, whh_b, bhh_f, bhh_b):
    """Single pallas_call (grid=(1,)) running the whole T-step recurrence for
    both directions; avoids ~0.35 us/step grid overhead of a grid=(T,) kernel."""
    T, B, G = gx.shape
    H = whh_f.shape[0]
    of, ob = pl.pallas_call(
        _bigru_kernel,
        out_shape=(jax.ShapeDtypeStruct((T, B, H), jnp.float32),
                   jax.ShapeDtypeStruct((T, B, H), jnp.float32)),
        grid=(1,),
        in_specs=[
            pl.BlockSpec((T, B, G), lambda i: (0, 0, 0)),
            pl.BlockSpec((H, 3 * H), lambda i: (0, 0)),
            pl.BlockSpec((H, 3 * H), lambda i: (0, 0)),
            pl.BlockSpec((1, 3 * H), lambda i: (0, 0)),
            pl.BlockSpec((1, 3 * H), lambda i: (0, 0)),
        ],
        out_specs=[pl.BlockSpec((T, B, H), lambda i: (0, 0, 0)),
                   pl.BlockSpec((T, B, H), lambda i: (0, 0, 0))],
        scratch_shapes=[pltpu.VMEM((B, H), jnp.float32),
                        pltpu.VMEM((B, H), jnp.float32)],
        compiler_params=pltpu.CompilerParams(dimension_semantics=("arbitrary",)),
    )(gx, whh_f, whh_b, bhh_f, bhh_b)
    return of, ob


def _fc_logsoftmax_kernel(x_ref, w_ref, b_ref, o_ref):
    logits = jnp.dot(x_ref[...], w_ref[...], preferred_element_type=jnp.float32)
    logits = logits + b_ref[...]
    m = jnp.max(logits, axis=-1, keepdims=True)
    s = logits - m
    lse = jnp.log(jnp.sum(jnp.exp(s), axis=-1, keepdims=True))
    o_ref[...] = s - lse


def fc_logsoftmax(x, w_t, b, *, block_m=256):
    """(M,K) @ (K,N) + b then row-wise log_softmax.  N is padded to a multiple
    of 128 lanes with zero weight columns and -1e30 bias (exp underflows to 0,
    so real classes are unaffected); M is tiled with a parallel grid."""
    M, K = x.shape
    N = w_t.shape[1]
    Np = _round_up(N, 128)
    if Np != N:
        w_t = jnp.pad(w_t, ((0, 0), (0, Np - N)))
        b = jnp.pad(b, ((0, 0), (0, Np - N)), constant_values=NEG_BIG)
    tm = min(block_m, _round_up(M, 8))
    Mp = _round_up(M, tm)
    if Mp != M:
        x = jnp.pad(x, ((0, Mp - M), (0, 0)))
    out = pl.pallas_call(
        _fc_logsoftmax_kernel,
        out_shape=jax.ShapeDtypeStruct((Mp, Np), jnp.float32),
        grid=(Mp // tm,),
        in_specs=[
            pl.BlockSpec((tm, K), lambda i: (i, 0)),
            pl.BlockSpec((K, Np), lambda i: (0, 0)),
            pl.BlockSpec((1, Np), lambda i: (0, 0)),
        ],
        out_specs=pl.BlockSpec((tm, Np), lambda i: (i, 0)),
        compiler_params=pltpu.CompilerParams(dimension_semantics=("parallel",)),
    )(x, w_t, b)
    return out[:M, :N]


# ----------------------------------------------------------------------------
# Glue (patch extraction, parameter plumbing, layout shuffles)
# ----------------------------------------------------------------------------
def conv_bn_relu(x, conv_w, bn_scale, bn_shift):
    """Conv3d(3,F,(5,7,7),stride=(1,2,2),pad=(2,3,3),bias=False) + inference
    BatchNorm3d + ReLU via im2col matmul.  Output channels are zero-padded to
    128 lanes (kept padded through the pool; dropped at flatten time) and the
    contraction K is tap-padded to a multiple of 128.
    x: (B,Cin,T,H,W) -> channel-last (B, To, Ho, Wo, 128)."""
    B, Cin, T, H, W = x.shape
    Cout = conv_w.shape[0]
    Kd, Kh, Kw = 5, 7, 7
    sd, sh, sw = 1, 2, 2
    pd, ph, pw = 2, 3, 3
    To = (T + 2 * pd - Kd) // sd + 1
    Ho = (H + 2 * ph - Kh) // sh + 1
    Wo = (W + 2 * pw - Kw) // sw + 1
    K3 = Kd * Kh * Kw
    K3p = _round_up(K3, 128)           # -> Cin * K3p is a multiple of 128
    Np = _round_up(Cout, 128)          # lane-dense output channels

    # TODO(synk): the im2col gather is still materialized by XLA; fusing the
    # tap gather into the matmul pipeline (K grid axis over (kd,kh,kw)) is not
    # implemented here.
    xp = jnp.pad(x, ((0, 0), (0, 0), (pd, pd), (ph, ph), (pw, pw)))
    slices = []
    for kd in range(Kd):
        for kh in range(Kh):
            for kw in range(Kw):
                s = xp[:, :,
                       kd:kd + sd * (To - 1) + 1:sd,
                       kh:kh + sh * (Ho - 1) + 1:sh,
                       kw:kw + sw * (Wo - 1) + 1:sw]
                slices.append(s)                       # (B,Cin,To,Ho,Wo)
    if K3p > K3:
        zero = jnp.zeros((B, Cin, To, Ho, Wo), jnp.float32)
        slices.extend([zero] * (K3p - K3))
    pat = jnp.stack(slices, axis=2)                    # (B,Cin,K3p,To,Ho,Wo)
    pat = pat.transpose(0, 3, 4, 5, 1, 2)              # (B,To,Ho,Wo,Cin,K3p)
    pat = pat.reshape(B * To * Ho * Wo, Cin * K3p)

    wk = conv_w.reshape(Cout, Cin, K3)
    wk = jnp.pad(wk, ((0, Np - Cout), (0, 0), (0, K3p - K3)))
    wmat = wk.reshape(Np, Cin * K3p).T                 # (K, Np), matches patch order
    scale_p = jnp.pad(bn_scale, ((0, 0), (0, Np - Cout)))
    shift_p = jnp.pad(bn_shift, ((0, 0), (0, Np - Cout)))

    y = matmul_affine(pat, wmat, scale_p, shift_p, relu=True)
    return y.reshape(B, To, Ho, Wo, Np)


def maxpool_1x3x3_s122(y):
    """MaxPool3d(kernel=(1,3,3), stride=(1,2,2), pad=(0,1,1)) on (B,T,Ho,Wo,C)."""
    B, T, Ho, Wo, C = y.shape
    Hp = (Ho + 2 - 3) // 2 + 1
    Wp = (Wo + 2 - 3) // 2 + 1
    neg = float(jnp.finfo(jnp.float32).min)
    yf = y.reshape(B * T, Ho, Wo, C)
    yp = jnp.pad(yf, ((0, 0), (1, 1), (1, 1), (0, 0)), constant_values=neg)
    wins = []
    for kh in range(3):
        for kw in range(3):
            wins.append(yp[:, kh:kh + 2 * (Hp - 1) + 1:2,
                           kw:kw + 2 * (Wp - 1) + 1:2, :])
    stacked = jnp.stack(wins, axis=0).reshape(9, B * T * Hp * Wp, C)
    pooled = max_over_windows(stacked)                 # tiled Pallas reduction
    return pooled.reshape(B, T, Hp, Wp, C)


def bigru_layer(x_tbf, layer_params):
    """Bidirectional GRU (batch_first semantics), seq-major input (T, B, F).
    Both directions' input gates come from ONE fused (F,6H) matmul; the
    recurrence for both directions runs in a single Pallas kernel."""
    T, B, F = x_tbf.shape
    w_ih_f, b_ih_f, w_hh_f, b_hh_f = layer_params["fwd"]
    w_ih_b, b_ih_b, w_hh_b, b_hh_b = layer_params["bwd"]
    H = w_hh_f.shape[1]
    x_flat = x_tbf.reshape(T * B, F)
    w_cat = jnp.concatenate([w_ih_f, w_ih_b], axis=0).T          # (F, 6H)
    b_cat = jnp.concatenate([b_ih_f, b_ih_b]).reshape(1, 6 * H)
    ones = jnp.ones((1, 6 * H), jnp.float32)
    gx = matmul_affine(x_flat, w_cat, ones, b_cat, relu=False)   # (T*B, 6H)
    gx = gx.reshape(T, B, 6 * H)
    of, ob = bigru_recurrence(gx, w_hh_f.T, w_hh_b.T,
                              b_hh_f.reshape(1, 3 * H), b_hh_b.reshape(1, 3 * H))
    return jnp.concatenate([of, ob], axis=-1)                    # (T, B, 2H)


@jax.jit
def lipnet_forward(x, params):
    Cout = params["conv_w"].shape[0]
    # features: Conv3d + BatchNorm3d (inference) + ReLU + MaxPool3d
    y = conv_bn_relu(x, params["conv_w"], params["bn_scale"], params["bn_shift"])
    y = maxpool_1x3x3_s122(y)                         # (B, T, Hp, Wp, 128)
    B, T, Hp, Wp, _ = y.shape
    y = y[..., :Cout]                                 # drop padded channels
    # match PyTorch permute(0,2,1,3,4).view(B, T, C*Hp*Wp): C-major flatten
    feat = y.transpose(0, 1, 4, 2, 3).reshape(B, T, Cout * Hp * Wp)
    x_tbf = feat.transpose(1, 0, 2)                   # seq-major (T, B, F)
    rnn = bigru_layer(x_tbf, params["gru1"])
    rnn = bigru_layer(rnn, params["gru2"])
    # TODO(synk): nn.Dropout(0.3) is identity in inference mode; not applied.
    Tt, Bb, F2 = rnn.shape
    logp = fc_logsoftmax(rnn.reshape(Tt * Bb, F2),
                         params["fc_w"].T, params["fc_b"].reshape(1, -1))
    return logp.reshape(Tt, Bb, -1).transpose(1, 0, 2)   # (B, T, n_class)


def init_params(key, cin=3, feat=INIT_FEATURES, hidden=HIDDEN,
                n_class=N_CLASS, gru1_in=128):
    ks = list(jax.random.split(key, 24))

    def nxt():
        return ks.pop()

    def unif(shape, k):
        return jax.random.uniform(nxt(), shape, jnp.float32, -k, k)

    conv_w = 0.05 * jax.random.normal(nxt(), (feat, cin, 5, 7, 7), jnp.float32)
    gamma = 1.0 + 0.1 * jax.random.normal(nxt(), (feat,), jnp.float32)
    beta = 0.1 * jax.random.normal(nxt(), (feat,), jnp.float32)
    running_mean = 0.1 * jax.random.normal(nxt(), (feat,), jnp.float32)
    running_var = 1.0 + 0.1 * jax.random.uniform(nxt(), (feat,), jnp.float32)
    bn_scale = gamma / jnp.sqrt(running_var + BN_EPS)
    bn_shift = beta - running_mean * bn_scale

    def gru_dir(in_dim, h):
        k = 1.0 / (h ** 0.5)
        return (unif((3 * h, in_dim), k), unif((3 * h,), k),
                unif((3 * h, h), k), unif((3 * h,), k))

    kf = 1.0 / ((2 * hidden) ** 0.5)
    return {
        "conv_w": conv_w,
        "bn_scale": bn_scale.reshape(1, feat),
        "bn_shift": bn_shift.reshape(1, feat),
        "gru1": {"fwd": gru_dir(gru1_in, hidden), "bwd": gru_dir(gru1_in, hidden)},
        "gru2": {"fwd": gru_dir(2 * hidden, hidden), "bwd": gru_dir(2 * hidden, hidden)},
        "fc_w": unif((n_class, 2 * hidden), kf),
        "fc_b": unif((n_class,), kf),
    }


if __name__ == "__main__":
    key = jax.random.PRNGKey(0)
    kx, kp = jax.random.split(key)
    B, Cin, T, H, W = 2, 3, 8, 16, 16
    x = jax.random.normal(kx, (B, Cin, T, H, W), jnp.float32)
    # conv stride (1,2,2): 16x16 -> 8x8 spatial; pool -> 4x4  =>  gru1 in-dim
    gru1_in = INIT_FEATURES * 4 * 4
    params = init_params(kp, gru1_in=gru1_in)

    out = lipnet_forward(x, params)
    out = jax.block_until_ready(out)

    assert out.shape == (B, T, N_CLASS), out.shape
    probs_sum = jnp.sum(jnp.exp(out), axis=-1)
    assert bool(jnp.all(jnp.abs(probs_sum - 1.0) < 1e-3)), "log_softmax check failed"
    print("KERNEL_OK")
</pallas_src>

<mosaic_0001>
module attributes {stable_mosaic.version = 11 : i64} {
  func.func @_matmul_affine_kernel(%arg0: i32, %arg1: memref<256x768xf32, #tpu.memory_space<vmem>>, %arg2: memref<768x128xf32, #tpu.memory_space<vmem>>, %arg3: memref<1x128xf32, #tpu.memory_space<vmem>>, %arg4: memref<1x128xf32, #tpu.memory_space<vmem>>, %arg5: memref<256x128xf32, #tpu.memory_space<vmem>>) attributes {dimension_semantics = [#tpu.dimension_semantics<parallel>], iteration_bounds = array<i64: 4>, scalar_prefetch = 0 : i64, scratch_operands = 0 : i64, tpu.core_type = #tpu.core_type<tc>, window_params = [{transform_indices = @transform_0, window_bounds = array<i64: 256, 768>}, {pipeline_mode = #tpu.pipeline_mode<synchronous>, transform_indices = @transform_1, window_bounds = array<i64: 768, 128>}, {pipeline_mode = #tpu.pipeline_mode<synchronous>, transform_indices = @transform_2, window_bounds = array<i64: 1, 128>}, {pipeline_mode = #tpu.pipeline_mode<synchronous>, transform_indices = @transform_3, window_bounds = array<i64: 1, 128>}, {transform_indices = @transform_4, window_bounds = array<i64: 256, 128>}]} {
    %c0 = arith.constant 0 : index
    %c0_0 = arith.constant 0 : index
    %0 = vector.load %arg1[%c0, %c0_0] : memref<256x768xf32, #tpu.memory_space<vmem>>, vector<256x768xf32>
    %c0_1 = arith.constant 0 : index
    %c0_2 = arith.constant 0 : index
    %1 = vector.load %arg2[%c0_1, %c0_2] : memref<768x128xf32, #tpu.memory_space<vmem>>, vector<768x128xf32>
    %cst = arith.constant dense<0.000000e+00> : vector<256x128xf32>
    %2 = tpu.matmul %0, %1, %cst {dimension_numbers = #tpu.dot_dimension_numbers<[1], [0], [0], [1], [0, 0, 1, 1], [], []>} : vector<256x768xf32>, vector<768x128xf32>, vector<256x128xf32> -> vector<256x128xf32>
    %c0_3 = arith.constant 0 : index
    %c0_4 = arith.constant 0 : index
    %3 = vector.load %arg3[%c0_3, %c0_4] : memref<1x128xf32, #tpu.memory_space<vmem>>, vector<1x128xf32>
    %4 = vector.broadcast %3 : vector<1x128xf32> to vector<256x128xf32>
    %5 = arith.mulf %2, %4 : vector<256x128xf32>
    %c0_5 = arith.constant 0 : index
    %c0_6 = arith.constant 0 : index
    %6 = vector.load %arg4[%c0_5, %c0_6] : memref<1x128xf32, #tpu.memory_space<vmem>>, vector<1x128xf32>
    %7 = vector.broadcast %6 : vector<1x128xf32> to vector<256x128xf32>
    %8 = arith.addf %5, %7 : vector<256x128xf32>
    %cst_7 = arith.constant 0.000000e+00 : f32
    %9 = vector.broadcast %cst_7 : f32 to vector<256x128xf32>
    %10 = arith.maximumf %8, %9 : vector<256x128xf32>
    %c0_8 = arith.constant 0 : index
    %c0_9 = arith.constant 0 : index
    %11 = vector.load %arg5[%c0_8, %c0_9] : memref<256x128xf32, #tpu.memory_space<vmem>>, vector<256x128xf32>
    tpu.vector_store %arg5[%c0_8, %c0_9], %10 {strides = array<i32>} : memref<256x128xf32, #tpu.memory_space<vmem>>, vector<256x128xf32>,
    return
  }
  func.func @transform_0(%arg0: i32) -> (i32, i32) {
    %c0_i32 = arith.constant 0 : i32
    %c0_i32_0 = arith.constant 0 : i32
    return %arg0, %c0_i32 : i32, i32
  }
  func.func @transform_1(%arg0: i32) -> (i32, i32) {
    %c0_i32 = arith.constant 0 : i32
    %c0_i32_0 = arith.constant 0 : i32
    %c0_i32_1 = arith.constant 0 : i32
    return %c0_i32, %c0_i32_0 : i32, i32
  }
  func.func @transform_2(%arg0: i32) -> (i32, i32) {
    %c0_i32 = arith.constant 0 : i32
    %c0_i32_0 = arith.constant 0 : i32
    %c0_i32_1 = arith.constant 0 : i32
    return %c0_i32, %c0_i32_0 : i32, i32
  }
  func.func @transform_3(%arg0: i32) -> (i32, i32) {
    %c0_i32 = arith.constant 0 : i32
    %c0_i32_0 = arith.constant 0 : i32
    %c0_i32_1 = arith.constant 0 : i32
    return %c0_i32, %c0_i32_0 : i32, i32
  }
  func.func @transform_4(%arg0: i32) -> (i32, i32) {
    %c0_i32 = arith.constant 0 : i32
    %c0_i32_0 = arith.constant 0 : i32
    return %arg0, %c0_i32 : i32, i32
  }
}

module attributes {stable_mosaic.version = 11 : i64} {
  func.func @_max_reduce_kernel(%arg0: i32, %arg1: memref<9x256x128xf32, #tpu.memory_space<vmem>>, %arg2: memref<256x128xf32, #tpu.memory_space<vmem>>) attributes {dimension_semantics = [#tpu.dimension_semantics<parallel>], iteration_bounds = array<i64: 1>, scalar_prefetch = 0 : i64, scratch_operands = 0 : i64, tpu.core_type = #tpu.core_type<tc>, window_params = [{transform_indices = @transform_0, window_bounds = array<i64: 9, 256, 128>}, {transform_indices = @transform_1, window_bounds = array<i64: 256, 128>}]} {
    %c0 = arith.constant 0 : index
    %c0_0 = arith.constant 0 : index
    %c0_1 = arith.constant 0 : index
    %0 = vector.load %arg1[%c0, %c0_0, %c0_1] : memref<9x256x128xf32, #tpu.memory_space<vmem>>, vector<9x256x128xf32>
    %cst = arith.constant dense<0xFF800000> : vector<256x128xf32>
    %1 = vector.multi_reduction <maximumf>, %0, %cst [0] : vector<9x256x128xf32> to vector<256x128xf32>
    %c0_2 = arith.constant 0 : index
    %c0_3 = arith.constant 0 : index
    %2 = vector.load %arg2[%c0_2, %c0_3] : memref<256x128xf32, #tpu.memory_space<vmem>>, vector<256x128xf32>
    tpu.vector_store %arg2[%c0_2, %c0_3], %1 {strides = array<i32>} : memref<256x128xf32, #tpu.memory_space<vmem>>, vector<256x128xf32>,
    return
  }
  func.func @transform_0(%arg0: i32) -> (i32, i32, i32) {
    %c0_i32 = arith.constant 0 : i32
    %c0_i32_0 = arith.constant 0 : i32
    %c0_i32_1 = arith.constant 0 : i32
    return %c0_i32, %arg0, %c0_i32_0 : i32, i32, i32
  }
  func.func @transform_1(%arg0: i32) -> (i32, i32) {
    %c0_i32 = arith.constant 0 : i32
    %c0_i32_0 = arith.constant 0 : i32
    return %arg0, %c0_i32 : i32, i32
  }
}

module attributes {stable_mosaic.version = 11 : i64} {
  func.func @_matmul_affine_kernel(%arg0: i32, %arg1: memref<16x128xf32, #tpu.memory_space<vmem>>, %arg2: memref<128x192xf32, #tpu.memory_space<vmem>>, %arg3: memref<1x192xf32, #tpu.memory_space<vmem>>, %arg4: memref<1x192xf32, #tpu.memory_space<vmem>>, %arg5: memref<16x192xf32, #tpu.memory_space<vmem>>) attributes {dimension_semantics = [#tpu.dimension_semantics<parallel>], iteration_bounds = array<i64: 1>, scalar_prefetch = 0 : i64, scratch_operands = 0 : i64, tpu.core_type = #tpu.core_type<tc>, window_params = [{transform_indices = @transform_0, window_bounds = array<i64: 16, 128>}, {pipeline_mode = #tpu.pipeline_mode<synchronous>, transform_indices = @transform_1, window_bounds = array<i64: 128, 192>}, {pipeline_mode = #tpu.pipeline_mode<synchronous>, transform_indices = @transform_2, window_bounds = array<i64: 1, 192>}, {pipeline_mode = #tpu.pipeline_mode<synchronous>, transform_indices = @transform_3, window_bounds = array<i64: 1, 192>}, {transform_indices = @transform_4, window_bounds = array<i64: 16, 192>}]} {
    %c0 = arith.constant 0 : index
    %c0_0 = arith.constant 0 : index
    %0 = vector.load %arg1[%c0, %c0_0] : memref<16x128xf32, #tpu.memory_space<vmem>>, vector<16x128xf32>
    %c0_1 = arith.constant 0 : index
    %c0_2 = arith.constant 0 : index
    %1 = vector.load %arg2[%c0_1, %c0_2] : memref<128x192xf32, #tpu.memory_space<vmem>>, vector<128x192xf32>
    %cst = arith.constant dense<0.000000e+00> : vector<16x192xf32>
    %2 = tpu.matmul %0, %1, %cst {dimension_numbers = #tpu.dot_dimension_numbers<[1], [0], [0], [1], [0, 0, 1, 1], [], []>} : vector<16x128xf32>, vector<128x192xf32>, vector<16x192xf32> -> vector<16x192xf32>
    %c0_3 = arith.constant 0 : index
    %c0_4 = arith.constant 0 : index
    %3 = vector.load %arg3[%c0_3, %c0_4] : memref<1x192xf32, #tpu.memory_space<vmem>>, vector<1x192xf32>
    %4 = vector.broadcast %3 : vector<1x192xf32> to vector<16x192xf32>
    %5 = arith.mulf %2, %4 : vector<16x192xf32>
    %c0_5 = arith.constant 0 : index
    %c0_6 = arith.constant 0 : index
    %6 = vector.load %arg4[%c0_5, %c0_6] : memref<1x192xf32, #tpu.memory_space<vmem>>, vector<1x192xf32>
    %7 = vector.broadcast %6 : vector<1x192xf32> to vector<16x192xf32>
    %8 = arith.addf %5, %7 : vector<16x192xf32>
    %c0_7 = arith.constant 0 : index
    %c0_8 = arith.constant 0 : index
    %9 = vector.load %arg5[%c0_7, %c0_8] : memref<16x192xf32, #tpu.memory_space<vmem>>, vector<16x192xf32>
    tpu.vector_store %arg5[%c0_7, %c0_8], %8 {strides = array<i32>} : memref<16x192xf32, #tpu.memory_space<vmem>>, vector<16x192xf32>,
    return
  }
  func.func @transform_0(%arg0: i32) -> (i32, i32) {
    %c0_i32 = arith.constant 0 : i32
    %c0_i32_0 = arith.constant 0 : i32
    return %arg0, %c0_i32 : i32, i32
  }
  func.func @transform_1(%arg0: i32) -> (i32, i32) {
    %c0_i32 = arith.constant 0 : i32
    %c0_i32_0 = arith.constant 0 : i32
    %c0_i32_1 = arith.constant 0 : i32
    return %c0_i32, %c0_i32_0 : i32, i32
  }
  func.func @transform_2(%arg0: i32) -> (i32, i32) {
    %c0_i32 = arith.constant 0 : i32
    %c0_i32_0 = arith.constant 0 : i32
    %c0_i32_1 = arith.constant 0 : i32
    return %c0_i32, %c0_i32_0 : i32, i32
  }
  func.func @transform_3(%arg0: i32) -> (i32, i32) {
    %c0_i32 = arith.constant 0 : i32
    %c0_i32_0 = arith.constant 0 : i32
    %c0_i32_1 = arith.constant 0 : i32
    return %c0_i32, %c0_i32_0 : i32, i32
  }
  func.func @transform_4(%arg0: i32) -> (i32, i32) {
    %c0_i32 = arith.constant 0 : i32
    %c0_i32_0 = arith.constant 0 : i32
    return %arg0, %c0_i32 : i32, i32
  }
}

module attributes {stable_mosaic.version = 11 : i64} {
  func.func @_bigru_kernel(%arg0: i32, %arg1: memref<8x2x192xf32, #tpu.memory_space<vmem>>, %arg2: memref<32x96xf32, #tpu.memory_space<vmem>>, %arg3: memref<32x96xf32, #tpu.memory_space<vmem>>, %arg4: memref<1x96xf32, #tpu.memory_space<vmem>>, %arg5: memref<1x96xf32, #tpu.memory_space<vmem>>, %arg6: memref<8x2x32xf32, #tpu.memory_space<vmem>>, %arg7: memref<8x2x32xf32, #tpu.memory_space<vmem>>, %arg8: memref<2x32xf32, #tpu.memory_space<vmem>>, %arg9: memref<2x32xf32, #tpu.memory_space<vmem>>) attributes {dimension_semantics = [#tpu.dimension_semantics<arbitrary>], iteration_bounds = array<i64: 1>, scalar_prefetch = 0 : i64, scratch_operands = 2 : i64, tpu.core_type = #tpu.core_type<tc>, window_params = [{pipeline_mode = #tpu.pipeline_mode<synchronous>, transform_indices = @transform_0, window_bounds = array<i64: 8, 2, 192>}, {pipeline_mode = #tpu.pipeline_mode<synchronous>, transform_indices = @transform_1, window_bounds = array<i64: 32, 96>}, {pipeline_mode = #tpu.pipeline_mode<synchronous>, transform_indices = @transform_2, window_bounds = array<i64: 32, 96>}, {pipeline_mode = #tpu.pipeline_mode<synchronous>, transform_indices = @transform_3, window_bounds = array<i64: 1, 96>}, {pipeline_mode = #tpu.pipeline_mode<synchronous>, transform_indices = @transform_4, window_bounds = array<i64: 1, 96>}, {pipeline_mode = #tpu.pipeline_mode<synchronous>, transform_indices = @transform_5, window_bounds = array<i64: 8, 2, 32>}, {pipeline_mode = #tpu.pipeline_mode<synchronous>, transform_indices = @transform_6, window_bounds = array<i64: 8, 2, 32>}]} {
    %cst = arith.constant 0.000000e+00 : f32
    %0 = vector.broadcast %cst : f32 to vector<2x32xf32>
    %c0 = arith.constant 0 : index
    %c0_0 = arith.constant 0 : index
    %1 = vector.load %arg8[%c0, %c0_0] : memref<2x32xf32, #tpu.memory_space<vmem>>, vector<2x32xf32>
    tpu.vector_store %arg8[%c0, %c0_0], %0 {strides = array<i32>} : memref<2x32xf32, #tpu.memory_space<vmem>>, vector<2x32xf32>,
    %cst_1 = arith.constant 0.000000e+00 : f32
    %2 = vector.broadcast %cst_1 : f32 to vector<2x32xf32>
    %c0_2 = arith.constant 0 : index
    %c0_3 = arith.constant 0 : index
    %3 = vector.load %arg9[%c0_2, %c0_3] : memref<2x32xf32, #tpu.memory_space<vmem>>, vector<2x32xf32>
    tpu.vector_store %arg9[%c0_2, %c0_3], %2 {strides = array<i32>} : memref<2x32xf32, #tpu.memory_space<vmem>>, vector<2x32xf32>,
    %c0_i32 = arith.constant 0 : i32
    %c8_i32 = arith.constant 8 : i32
    %4 = arith.addi %c0_i32, %c8_i32 : i32
    %c1_i32 = arith.constant 1 : i32
    scf.for %arg10 = %c0_i32 to %4 step %c1_i32  : i32 {
      %c7_i32 = arith.constant 7 : i32
      %5 = arith.subi %c7_i32, %arg10 : i32
      %c0_5 = arith.constant 0 : index
      %c0_6 = arith.constant 0 : index
      %6 = vector.load %arg8[%c0_5, %c0_6] : memref<2x32xf32, #tpu.memory_space<vmem>>, vector<2x32xf32>
      %c0_7 = arith.constant 0 : index
      %c0_8 = arith.constant 0 : index
      %7 = vector.load %arg2[%c0_7, %c0_8] : memref<32x96xf32, #tpu.memory_space<vmem>>, vector<32x96xf32>
      %cst_9 = arith.constant dense<0.000000e+00> : vector<2x96xf32>
      %8 = tpu.matmul %6, %7, %cst_9 {dimension_numbers = #tpu.dot_dimension_numbers<[1], [0], [0], [1], [0, 0, 1, 1], [], []>} : vector<2x32xf32>, vector<32x96xf32>, vector<2x96xf32> -> vector<2x96xf32>
      %c0_10 = arith.constant 0 : index
      %c0_11 = arith.constant 0 : index
      %9 = vector.load %arg4[%c0_10, %c0_11] : memref<1x96xf32, #tpu.memory_space<vmem>>, vector<1x96xf32>
      %10 = vector.broadcast %9 : vector<1x96xf32> to vector<2x96xf32>
      %11 = arith.addf %8, %10 : vector<2x96xf32>
      %12 = arith.index_cast %arg10 : i32 to index
      %c0_12 = arith.constant 0 : index
      %c0_13 = arith.constant 0 : index
      %13 = vector.load %arg1[%12, %c0_12, %c0_13] : memref<8x2x192xf32, #tpu.memory_space<vmem>>, vector<1x2x192xf32>
      %14 = vector.shape_cast %13 : vector<1x2x192xf32> to vector<2x192xf32>
      %15 = vector.extract_strided_slice %14 {offsets = [0, 0], sizes = [2, 32], strides = [1, 1]} : vector<2x192xf32> to vector<2x32xf32>
      %16 = vector.extract_strided_slice %11 {offsets = [0, 0], sizes = [2, 32], strides = [1, 1]} : vector<2x96xf32> to vector<2x32xf32>
      %17 = arith.addf %15, %16 : vector<2x32xf32>
      %18 = arith.negf %17 : vector<2x32xf32>
      %19 = math.exp %18 : vector<2x32xf32>
      %cst_14 = arith.constant 1.000000e+00 : f32
      %20 = vector.broadcast %cst_14 : f32 to vector<2x32xf32>
      %21 = arith.addf %20, %19 : vector<2x32xf32>
      %22 = arith.divf %20, %21 : vector<2x32xf32>
      %23 = vector.extract_strided_slice %14 {offsets = [0, 32], sizes = [2, 32], strides = [1, 1]} : vector<2x192xf32> to vector<2x32xf32>
      %24 = vector.extract_strided_slice %11 {offsets = [0, 32], sizes = [2, 32], strides = [1, 1]} : vector<2x96xf32> to vector<2x32xf32>
      %25 = arith.addf %23, %24 : vector<2x32xf32>
      %26 = arith.negf %25 : vector<2x32xf32>
      %27 = math.exp %26 : vector<2x32xf32>
      %cst_15 = arith.constant 1.000000e+00 : f32
      %28 = vector.broadcast %cst_15 : f32 to vector<2x32xf32>
      %29 = arith.addf %28, %27 : vector<2x32xf32>
      %30 = arith.divf %28, %29 : vector<2x32xf32>
      %31 = vector.extract_strided_slice %14 {offsets = [0, 64], sizes = [2, 32], strides = [1, 1]} : vector<2x192xf32> to vector<2x32xf32>
      %32 = vector.extract_strided_slice %11 {offsets = [0, 64], sizes = [2, 32], strides = [1, 1]} : vector<2x96xf32> to vector<2x32xf32>
      %33 = arith.mulf %22, %32 : vector<2x32xf32>
      %34 = arith.addf %31, %33 : vector<2x32xf32>
      %35 = math.tanh %34 : vector<2x32xf32>
      %cst_16 = arith.constant 1.000000e+00 : f32
      %36 = vector.broadcast %cst_16 : f32 to vector<2x32xf32>
      %37 = arith.subf %36, %30 : vector<2x32xf32>
      %38 = arith.mulf %37, %35 : vector<2x32xf32>
      %39 = arith.mulf %30, %6 : vector<2x32xf32>
      %40 = arith.addf %38, %39 : vector<2x32xf32>
      %c0_17 = arith.constant 0 : index
      %c0_18 = arith.constant 0 : index
      %41 = vector.load %arg8[%c0_17, %c0_18] : memref<2x32xf32, #tpu.memory_space<vmem>>, vector<2x32xf32>
      tpu.vector_store %arg8[%c0_17, %c0_18], %40 {strides = array<i32>} : memref<2x32xf32, #tpu.memory_space<vmem>>, vector<2x32xf32>,
      %42 = arith.index_cast %arg10 : i32 to index
      %c0_19 = arith.constant 0 : index
      %c0_20 = arith.constant 0 : index
      %43 = vector.load %arg6[%42, %c0_19, %c0_20] : memref<8x2x32xf32, #tpu.memory_space<vmem>>, vector<1x2x32xf32>
      %44 = vector.shape_cast %43 : vector<1x2x32xf32> to vector<2x32xf32>
      %45 = vector.shape_cast %40 : vector<2x32xf32> to vector<1x2x32xf32>
      tpu.vector_store %arg6[%42, %c0_19, %c0_20], %45 {strides = array<i32>} : memref<8x2x32xf32, #tpu.memory_space<vmem>>, vector<1x2x32xf32>,
      %c0_21 = arith.constant 0 : index
      %c0_22 = arith.constant 0 : index
      %46 = vector.load %arg9[%c0_21, %c0_22] : memref<2x32xf32, #tpu.memory_space<vmem>>, vector<2x32xf32>
      %c0_23 = arith.constant 0 : index
      %c0_24 = arith.constant 0 : index
      %47 = vector.load %arg3[%c0_23, %c0_24] : memref<32x96xf32, #tpu.memory_space<vmem>>, vector<32x96xf32>
      %cst_25 = arith.constant dense<0.000000e+00> : vector<2x96xf32>
      %48 = tpu.matmul %46, %47, %cst_25 {dimension_numbers = #tpu.dot_dimension_numbers<[1], [0], [0], [1], [0, 0, 1, 1], [], []>} : vector<2x32xf32>, vector<32x96xf32>, vector<2x96xf32> -> vector<2x96xf32>
      %c0_26 = arith.constant 0 : index
      %c0_27 = arith.constant 0 : index
      %49 = vector.load %arg5[%c0_26, %c0_27] : memref<1x96xf32, #tpu.memory_space<vmem>>, vector<1x96xf32>
      %50 = vector.broadcast %49 : vector<1x96xf32> to vector<2x96xf32>
      %51 = arith.addf %48, %50 : vector<2x96xf32>
      %52 = arith.index_cast %5 : i32 to index
      %c0_28 = arith.constant 0 : index
      %c0_29 = arith.constant 0 : index
      %53 = vector.load %arg1[%52, %c0_28, %c0_29] : memref<8x2x192xf32, #tpu.memory_space<vmem>>, vector<1x2x192xf32>
      %54 = vector.shape_cast %53 : vector<1x2x192xf32> to vector<2x192xf32>
      %55 = vector.extract_strided_slice %54 {offsets = [0, 96], sizes = [2, 32], strides = [1, 1]} : vector<2x192xf32> to vector<2x32xf32>
      %56 = vector.extract_strided_slice %51 {offsets = [0, 0], sizes = [2, 32], strides = [1, 1]} : vector<2x96xf32> to vector<2x32xf32>
      %57 = arith.addf %55, %56 : vector<2x32xf32>
      %58 = arith.negf %57 : vector<2x32xf32>
      %59 = math.exp %58 : vector<2x32xf32>
      %cst_30 = arith.constant 1.000000e+00 : f32
      %60 = vector.broadcast %cst_30 : f32 to vector<2x32xf32>
      %61 = arith.addf %60, %59 : vector<2x32xf32>
      %62 = arith.divf %60, %61 : vector<2x32xf32>
      %63 = vector.extract_strided_slice %54 {offsets = [0, 128], sizes = [2, 32], strides = [1, 1]} : vector<2x192xf32> to vector<2x32xf32>
      %64 = vector.extract_strided_slice %51 {offsets = [0, 32], sizes = [2, 32], strides = [1, 1]} : vector<2x96xf32> to vector<2x32xf32>
      %65 = arith.addf %63, %64 : vector<2x32xf32>
      %66 = arith.negf %65 : vector<2x32xf32>
      %67 = math.exp %66 : vector<2x32xf32>
      %cst_31 = arith.constant 1.000000e+00 : f32
      %68 = vector.broadcast %cst_31 : f32 to vector<2x32xf32>
      %69 = arith.addf %68, %67 : vector<2x32xf32>
      %70 = arith.divf %68, %69 : vector<2x32xf32>
      %71 = vector.extract_strided_slice %54 {offsets = [0, 160], sizes = [2, 32], strides = [1, 1]} : vector<2x192xf32> to vector<2x32xf32>
      %72 = vector.extract_strided_slice %51 {offsets = [0, 64], sizes = [2, 32], strides = [1, 1]} : vector<2x96xf32> to vector<2x32xf32>
      %73 = arith.mulf %62, %72 : vector<2x32xf32>
      %74 = arith.addf %71, %73 : vector<2x32xf32>
      %75 = math.tanh %74 : vector<2x32xf32>
      %cst_32 = arith.constant 1.000000e+00 : f32
      %76 = vector.broadcast %cst_32 : f32 to vector<2x32xf32>
      %77 = arith.subf %76, %70 : vector<2x32xf32>
      %78 = arith.mulf %77, %75 : vector<2x32xf32>
      %79 = arith.mulf %70, %46 : vector<2x32xf32>
      %80 = arith.addf %78, %79 : vector<2x32xf32>
      %c0_33 = arith.constant 0 : index
      %c0_34 = arith.constant 0 : index
      %81 = vector.load %arg9[%c0_33, %c0_34] : memref<2x32xf32, #tpu.memory_space<vmem>>, vector<2x32xf32>
      tpu.vector_store %arg9[%c0_33, %c0_34], %80 {strides = array<i32>} : memref<2x32xf32, #tpu.memory_space<vmem>>, vector<2x32xf32>,
      %82 = arith.index_cast %5 : i32 to index
      %c0_35 = arith.constant 0 : index
      %c0_36 = arith.constant 0 : index
      %83 = vector.load %arg7[%82, %c0_35, %c0_36] : memref<8x2x32xf32, #tpu.memory_space<vmem>>, vector<1x2x32xf32>
      %84 = vector.shape_cast %83 : vector<1x2x32xf32> to vector<2x32xf32>
      %85 = vector.shape_cast %80 : vector<2x32xf32> to vector<1x2x32xf32>
      tpu.vector_store %arg7[%82, %c0_35, %c0_36], %85 {strides = array<i32>} : memref<8x2x32xf32, #tpu.memory_space<vmem>>, vector<1x2x32xf32>,
    }
    %c8_i32_4 = arith.constant 8 : i32
    return
  }
  func.func @transform_0(%arg0: i32) -> (i32, i32, i32) {
    %c0_i32 = arith.constant 0 : i32
    %c0_i32_0 = arith.constant 0 : i32
    %c0_i32_1 = arith.constant 0 : i32
    %c0_i32_2 = arith.constant 0 : i32
    return %c0_i32, %c0_i32_0, %c0_i32_1 : i32, i32, i32
  }
  func.func @transform_1(%arg0: i32) -> (i32, i32) {
    %c0_i32 = arith.constant 0 : i32
    %c0_i32_0 = arith.constant 0 : i32
    %c0_i32_1 = arith.constant 0 : i32
    return %c0_i32, %c0_i32_0 : i32, i32
  }
  func.func @transform_2(%arg0: i32) -> (i32, i32) {
    %c0_i32 = arith.constant 0 : i32
    %c0_i32_0 = arith.constant 0 : i32
    %c0_i32_1 = arith.constant 0 : i32
    return %c0_i32, %c0_i32_0 : i32, i32
  }
  func.func @transform_3(%arg0: i32) -> (i32, i32) {
    %c0_i32 = arith.constant 0 : i32
    %c0_i32_0 = arith.constant 0 : i32
    %c0_i32_1 = arith.constant 0 : i32
    return %c0_i32, %c0_i32_0 : i32, i32
  }
  func.func @transform_4(%arg0: i32) -> (i32, i32) {
    %c0_i32 = arith.constant 0 : i32
    %c0_i32_0 = arith.constant 0 : i32
    %c0_i32_1 = arith.constant 0 : i32
    return %c0_i32, %c0_i32_0 : i32, i32
  }
  func.func @transform_5(%arg0: i32) -> (i32, i32, i32) {
    %c0_i32 = arith.constant 0 : i32
    %c0_i32_0 = arith.constant 0 : i32
    %c0_i32_1 = arith.constant 0 : i32
    %c0_i32_2 = arith.constant 0 : i32
    return %c0_i32, %c0_i32_0, %c0_i32_1 : i32, i32, i32
  }
  func.func @transform_6(%arg0: i32) -> (i32, i32, i32) {
    %c0_i32 = arith.constant 0 : i32
    %c0_i32_0 = arith.constant 0 : i32
    %c0_i32_1 = arith.constant 0 : i32
    %c0_i32_2 = arith.constant 0 : i32
    return %c0_i32, %c0_i32_0, %c0_i32_1 : i32, i32, i32
  }
}

module attributes {stable_mosaic.version = 11 : i64} {
  func.func @_fc_logsoftmax_kernel(%arg0: i32, %arg1: memref<16x64xf32, #tpu.memory_space<vmem>>, %arg2: memref<64x128xf32, #tpu.memory_space<vmem>>, %arg3: memref<1x128xf32, #tpu.memory_space<vmem>>, %arg4: memref<16x128xf32, #tpu.memory_space<vmem>>) attributes {dimension_semantics = [#tpu.dimension_semantics<parallel>], iteration_bounds = array<i64: 1>, scalar_prefetch = 0 : i64, scratch_operands = 0 : i64, tpu.core_type = #tpu.core_type<tc>, window_params = [{transform_indices = @transform_0, window_bounds = array<i64: 16, 64>}, {pipeline_mode = #tpu.pipeline_mode<synchronous>, transform_indices = @transform_1, window_bounds = array<i64: 64, 128>}, {pipeline_mode = #tpu.pipeline_mode<synchronous>, transform_indices = @transform_2, window_bounds = array<i64: 1, 128>}, {transform_indices = @transform_3, window_bounds = array<i64: 16, 128>}]} {
    %c0 = arith.constant 0 : index
    %c0_0 = arith.constant 0 : index
    %0 = vector.load %arg1[%c0, %c0_0] : memref<16x64xf32, #tpu.memory_space<vmem>>, vector<16x64xf32>
    %c0_1 = arith.constant 0 : index
    %c0_2 = arith.constant 0 : index
    %1 = vector.load %arg2[%c0_1, %c0_2] : memref<64x128xf32, #tpu.memory_space<vmem>>, vector<64x128xf32>
    %cst = arith.constant dense<0.000000e+00> : vector<16x128xf32>
    %2 = tpu.matmul %0, %1, %cst {dimension_numbers = #tpu.dot_dimension_numbers<[1], [0], [0], [1], [0, 0, 1, 1], [], []>} : vector<16x64xf32>, vector<64x128xf32>, vector<16x128xf32> -> vector<16x128xf32>
    %c0_3 = arith.constant 0 : index
    %c0_4 = arith.constant 0 : index
    %3 = vector.load %arg3[%c0_3, %c0_4] : memref<1x128xf32, #tpu.memory_space<vmem>>, vector<1x128xf32>
    %4 = vector.broadcast %3 : vector<1x128xf32> to vector<16x128xf32>
    %5 = arith.addf %2, %4 : vector<16x128xf32>
    %cst_5 = arith.constant dense<0xFF800000> : vector<16xf32>
    %6 = vector.multi_reduction <maximumf>, %5, %cst_5 [1] : vector<16x128xf32> to vector<16xf32>
    %7 = vector.shape_cast %6 : vector<16xf32> to vector<16x1xf32>
    %8 = vector.broadcast %7 : vector<16x1xf32> to vector<16x128xf32>
    %9 = arith.subf %5, %8 : vector<16x128xf32>
    %10 = math.exp %9 : vector<16x128xf32>
    %cst_6 = arith.constant dense<0.000000e+00> : vector<16xf32>
    %11 = vector.multi_reduction <add>, %10, %cst_6 [1] : vector<16x128xf32> to vector<16xf32>
    %12 = vector.shape_cast %11 : vector<16xf32> to vector<16x1xf32>
    %13 = math.log %12 : vector<16x1xf32>
    %14 = vector.broadcast %13 : vector<16x1xf32> to vector<16x128xf32>
    %15 = arith.subf %9, %14 : vector<16x128xf32>
    %c0_7 = arith.constant 0 : index
    %c0_8 = arith.constant 0 : index
    %16 = vector.load %arg4[%c0_7, %c0_8] : memref<16x128xf32, #tpu.memory_space<vmem>>, vector<16x128xf32>
    tpu.vector_store %arg4[%c0_7, %c0_8], %15 {strides = array<i32>} : memref<16x128xf32, #tpu.memory_space<vmem>>, vector<16x128xf32>,
    return
  }
  func.func @transform_0(%arg0: i32) -> (i32, i32) {
    %c0_i32 = arith.constant 0 : i32
    %c0_i32_0 = arith.constant 0 : i32
    return %arg0, %c0_i32 : i32, i32
  }
  func.func @transform_1(%arg0: i32) -> (i32, i32) {
    %c0_i32 = arith.constant 0 : i32
    %c0_i32_0 = arith.constant 0 : i32
    %c0_i32_1 = arith.constant 0 : i32
    return %c0_i32, %c0_i32_0 : i32, i32
  }
  func.func @transform_2(%arg0: i32) -> (i32, i32) {
    %c0_i32 = arith.constant 0 : i32
    %c0_i32_0 = arith.constant 0 : i32
    %c0_i32_1 = arith.constant 0 : i32
    return %c0_i32, %c0_i32_0 : i32, i32
  }
  func.func @transform_3(%arg0: i32) -> (i32, i32) {
    %c0_i32 = arith.constant 0 : i32
    %c0_i32_0 = arith.constant 0 : i32
    return %arg0, %c0_i32 : i32, i32
  }
}

module attributes {stable_mosaic.version = 11 : i64} {
  func.func @_matmul_affine_kernel(%arg0: i32, %arg1: memref<16x64xf32, #tpu.memory_space<vmem>>, %arg2: memref<64x192xf32, #tpu.memory_space<vmem>>, %arg3: memref<1x192xf32, #tpu.memory_space<vmem>>, %arg4: memref<1x192xf32, #tpu.memory_space<vmem>>, %arg5: memref<16x192xf32, #tpu.memory_space<vmem>>) attributes {dimension_semantics = [#tpu.dimension_semantics<parallel>], iteration_bounds = array<i64: 1>, scalar_prefetch = 0 : i64, scratch_operands = 0 : i64, tpu.core_type = #tpu.core_type<tc>, window_params = [{transform_indices = @transform_0, window_bounds = array<i64: 16, 64>}, {pipeline_mode = #tpu.pipeline_mode<synchronous>, transform_indices = @transform_1, window_bounds = array<i64: 64, 192>}, {pipeline_mode = #tpu.pipeline_mode<synchronous>, transform_indices = @transform_2, window_bounds = array<i64: 1, 192>}, {pipeline_mode = #tpu.pipeline_mode<synchronous>, transform_indices = @transform_3, window_bounds = array<i64: 1, 192>}, {transform_indices = @transform_4, window_bounds = array<i64: 16, 192>}]} {
    %c0 = arith.constant 0 : index
    %c0_0 = arith.constant 0 : index
    %0 = vector.load %arg1[%c0, %c0_0] : memref<16x64xf32, #tpu.memory_space<vmem>>, vector<16x64xf32>
    %c0_1 = arith.constant 0 : index
    %c0_2 = arith.constant 0 : index
    %1 = vector.load %arg2[%c0_1, %c0_2] : memref<64x192xf32, #tpu.memory_space<vmem>>, vector<64x192xf32>
    %cst = arith.constant dense<0.000000e+00> : vector<16x192xf32>
    %2 = tpu.matmul %0, %1, %cst {dimension_numbers = #tpu.dot_dimension_numbers<[1], [0], [0], [1], [0, 0, 1, 1], [], []>} : vector<16x64xf32>, vector<64x192xf32>, vector<16x192xf32> -> vector<16x192xf32>
    %c0_3 = arith.constant 0 : index
    %c0_4 = arith.constant 0 : index
    %3 = vector.load %arg3[%c0_3, %c0_4] : memref<1x192xf32, #tpu.memory_space<vmem>>, vector<1x192xf32>
    %4 = vector.broadcast %3 : vector<1x192xf32> to vector<16x192xf32>
    %5 = arith.mulf %2, %4 : vector<16x192xf32>
    %c0_5 = arith.constant 0 : index
    %c0_6 = arith.constant 0 : index
    %6 = vector.load %arg4[%c0_5, %c0_6] : memref<1x192xf32, #tpu.memory_space<vmem>>, vector<1x192xf32>
    %7 = vector.broadcast %6 : vector<1x192xf32> to vector<16x192xf32>
    %8 = arith.addf %5, %7 : vector<16x192xf32>
    %c0_7 = arith.constant 0 : index
    %c0_8 = arith.constant 0 : index
    %9 = vector.load %arg5[%c0_7, %c0_8] : memref<16x192xf32, #tpu.memory_space<vmem>>, vector<16x192xf32>
    tpu.vector_store %arg5[%c0_7, %c0_8], %8 {strides = array<i32>} : memref<16x192xf32, #tpu.memory_space<vmem>>, vector<16x192xf32>,
    return
  }
  func.func @transform_0(%arg0: i32) -> (i32, i32) {
    %c0_i32 = arith.constant 0 : i32
    %c0_i32_0 = arith.constant 0 : i32
    return %arg0, %c0_i32 : i32, i32
  }
  func.func @transform_1(%arg0: i32) -> (i32, i32) {
    %c0_i32 = arith.constant 0 : i32
    %c0_i32_0 = arith.constant 0 : i32
    %c0_i32_1 = arith.constant 0 : i32
    return %c0_i32, %c0_i32_0 : i32, i32
  }
  func.func @transform_2(%arg0: i32) -> (i32, i32) {
    %c0_i32 = arith.constant 0 : i32
    %c0_i32_0 = arith.constant 0 : i32
    %c0_i32_1 = arith.constant 0 : i32
    return %c0_i32, %c0_i32_0 : i32, i32
  }
  func.func @transform_3(%arg0: i32) -> (i32, i32) {
    %c0_i32 = arith.constant 0 : i32
    %c0_i32_0 = arith.constant 0 : i32
    %c0_i32_1 = arith.constant 0 : i32
    return %c0_i32, %c0_i32_0 : i32, i32
  }
  func.func @transform_4(%arg0: i32) -> (i32, i32) {
    %c0_i32 = arith.constant 0 : i32
    %c0_i32_0 = arith.constant 0 : i32
    return %arg0, %c0_i32 : i32, i32
  }
}

</mosaic_0001>

<bundles_post_ra>
// kernel: lipnet_forward.7
= control target key start
LH: loop header
LB: loop body
LE: loop exit
PB: predicated region body
PF: predicated region fallthrough
CT: control target
= control target key end

     0   :  { %s1694_s15 = smov 0   ;;  %s2463_s0 = inlined_call_operand.vmem [shape: f32[1024,768], index: 0, kind: input, shape index: {}]   ;;  %s2464_s1 = inlined_call_operand.vmem [shape: f32[768,128], index: 1, kind: input, shape index: {}]   ;;  %s2465_s2 = inlined_call_operand.vmem [shape: f32[1,128], index: 2, kind: input, shape index: {}]   ;;  %s2466_s3 = inlined_call_operand.vmem [shape: f32[1,128], index: 3, kind: input, shape index: {}]   ;;  %s2467_s4 = inlined_call_operand.vmem [shape: f32[1024,128], index: 4, kind: output, shape index: {}]  }
   0x1 LB: > { %s1365_s16 = sadd.s32 4294967295, %s1666_s15   ;;  %p1369_p0 = scmp.ge.s32.totalorder %s1666_s15, 1  ;;  %s1666_s15 = sphi %s1694_s15, %s14_s15  }
   0x2   : > { %p164_p1 = scmp.lt.s32.totalorder %s1666_s15, 5 }
   0x4   : > { %p165_p2 = pnand %p1369_p0, %p164_p1 }
   0x5   : > { %v396_v0 = vld [vmem:[%s2464_s1] sm:$0xff] (!%p165_p2)  ;;  %v397_v1 = vld [vmem:[%s2464_s1 + $0x8] sm:$0xff] (!%p165_p2)  ;;  %v1668_v3 = vmov (!%p165_p2), 0.0|0.0   ;;  %v398_v6 = vld [vmem:[%s2464_s1 + $0x10] sm:$0xff] (!%p165_p2)  ;;  %s1370_s7 = sshll.u32 (!%p165_p2), %s1365_s16, 5 }
   0x6   : > { %168 = sbr.rel (%p165_p2) target bundleno = 481 (0x1e1), region = 36  ;;  %v428_v2 = vld [vmem:[%s2464_s1 + $0x100] sm:$0xff] (!%p165_p2)  ;;  %1378 = vmatprep.subr.bf16.mxu1 (!%p165_p2), %v1668_v3  ;;  %1426 = vmatprep.subr.bf16.mxu0 (!%p165_p2), %v1668_v3  ;;  %v1379_v4 = vpack.c.bf16 (!%p165_p2), %v397_v1, %v396_v0  ;;  %v429_v5 = vld [vmem:[%s2464_s1 + $0x108] sm:$0xff] (!%p165_p2)  ;;  %v399_v7 = vld [vmem:[%s2464_s1 + $0x18] sm:$0xff] (!%p165_p2)  ;;  %p192_p3 = scmp.lt.s32.totalorder (!%p165_p2), %s1370_s7, 127 }
   0x7   : > { %v1722_v8 = vpack.c.bf16 (!%p165_p2), %v429_v5, %v428_v2  ;;  %v430_v9 = vld [vmem:[%s2464_s1 + $0x110] sm:$0xff] (!%p165_p2)  ;;  %v431_v10 = vld [vmem:[%s2464_s1 + $0x118] sm:$0xff] (!%p165_p2)  ;;  %v1382_v11 = vpack.c.bf16 (!%p165_p2), %v399_v7, %v398_v6  ;;  %v400_v13 = vld [vmem:[%s2464_s1 + $0x20] sm:$0xff] (!%p165_p2) }
   0x8   : > { %1380 = vmatpush1.bf16.msra.mxu1 (!%p165_p2), %v1379_v4  ;;  %v1732_v12 = vpack.c.bf16 (!%p165_p2), %v431_v10, %v430_v9  ;;  %v401_v14 = vld [vmem:[%s2464_s1 + $0x28] sm:$0xff] (!%p165_p2)  ;;  %v432_v15 = vld [vmem:[%s2464_s1 + $0x120] sm:$0xff] (!%p165_p2)  ;;  %v402_v19 = vld [vmem:[%s2464_s1 + $0x30] sm:$0xff] (!%p165_p2) }
   0x9   : > { %1428 = vmatpush1.bf16.msra.mxu0 (!%p165_p2), %v1722_v8  ;;  %1381 = vmatprep.subr.bf16.mxu1 (!%p165_p2), %v1668_v3  ;;  %v433_v16 = vld [vmem:[%s2464_s1 + $0x128] sm:$0xff] (!%p165_p2)  ;;  %v1385_v17 = vpack.c.bf16 (!%p165_p2), %v401_v14, %v400_v13  ;;  %v403_v20 = vld [vmem:[%s2464_s1 + $0x38] sm:$0xff] (!%p165_p2)  ;;  %v434_v21 = vld [vmem:[%s2464_s1 + $0x130] sm:$0xff] (!%p165_p2) }
   0xa   : > { %1429 = vmatprep.subr.bf16.mxu0 (!%p165_p2), %v1668_v3  ;;  %v1749_v18 = vpack.c.bf16 (!%p165_p2), %v433_v16, %v432_v15  ;;  %v435_v22 = vld [vmem:[%s2464_s1 + $0x138] sm:$0xff] (!%p165_p2)  ;;  %v1388_v23 = vpack.c.bf16 (!%p165_p2), %v403_v20, %v402_v19  ;;  %v404_v25 = vld [vmem:[%s2464_s1 + $0x40] sm:$0xff] (!%p165_p2)  ;;  %v405_v26 = vld [vmem:[%s2464_s1 + $0x48] sm:$0xff] (!%p165_p2) }
   0xb   : > { %v1768_v24 = vpack.c.bf16 (!%p165_p2), %v435_v22, %v434_v21  ;;  %v436_v27 = vld [vmem:[%s2464_s1 + $0x140] sm:$0xff] (!%p165_p2)  ;;  %v437_v28 = vld [vmem:[%s2464_s1 + $0x148] sm:$0xff] (!%p165_p2)  ;;  %v1391_v29 = vpack.c.bf16 (!%p165_p2), %v405_v26, %v404_v25  ;;  %v406_v31 = vld [vmem:[%s2464_s1 + $0x50] sm:$0xff] (!%p165_p2) }
   0xc   : > { %1383 = vmatpush1.bf16.msra.mxu1 (!%p165_p2), %v1382_v11  ;;  %v1786_v30 = vpack.c.bf16 (!%p165_p2), %v437_v28, %v436_v27  ;;  %v407_v32 = vld [vmem:[%s2464_s1 + $0x58] sm:$0xff] (!%p165_p2)  ;;  %v438_v33 = vld [vmem:[%s2464_s1 + $0x150] sm:$0xff] (!%p165_p2)  ;;  %v408_v37 = vld [vmem:[%s2464_s1 + $0x60] sm:$0xff] (!%p165_p2) }
   0xd   : > { %1431 = vmatpush1.bf16.msra.mxu0 %v1732_v12  ;;  %1384 = vmatprep.subr.bf16.mxu1 %v1668_v3  ;;  %s2469_s7 = smov (!%p192_p3, %s1370_s7), 127  ;;  %v439_v34 = vld [vmem:[%s2464_s1 + $0x158] sm:$0xff]  ;;  %v1394_v35 = vpack.c.bf16 %v407_v32, %v406_v31  ;;  %v409_v38 = vld [vmem:[%s2464_s1 + $0x68] sm:$0xff]  ;;  %v440_v39 = vld [vmem:[%s2464_s1 + $0x160] sm:$0xff] }
   0xe   : > { %1432 = vmatprep.subr.bf16.mxu0 %v1668_v3  ;;  %s1650_s8 = smul.u32 48, %s2469_s7  ;;  %v1808_v36 = vpack.c.bf16 %v439_v34, %v438_v33  ;;  %v441_v40 = vld [vmem:[%s2464_s1 + $0x168] sm:$0xff]  ;;  %v1397_v43 = vpack.c.bf16 %v409_v38, %v408_v37  ;;  %v410_v45 = vld [vmem:[%s2464_s1 + $0x70] sm:$0xff]  ;;  %v411_v46 = vld [vmem:[%s2464_s1 + $0x78] sm:$0xff]  ;;  %s1373_s30 = sshll.u32 %s2469_s7, 3 }
   0xf   : > { %v1827_v44 = vpack.c.bf16 %v441_v40, %v440_v39  ;;  %v442_v47 = vld [vmem:[%s2464_s1 + $0x170] sm:$0xff]  ;;  %v443_v48 = vld [vmem:[%s2464_s1 + $0x178] sm:$0xff]  ;;  %v1400_v49 = vpack.c.bf16 %v411_v46, %v410_v45  ;;  %v412_v51 = vld [vmem:[%s2464_s1 + $0x80] sm:$0xff] }
  0x10   : > { %1386 = vmatpush1.bf16.msra.mxu1 %v1385_v17  ;;  %s1804_s20 = scalar_lea.vmem %s2463_s0, %s1650_s8  ;;  %v1844_v50 = vpack.c.bf16 %v443_v48, %v442_v47  ;;  %v413_v52 = vld [vmem:[%s2464_s1 + $0x88] sm:$0xff]  ;;  %v444_v53 = vld [vmem:[%s2464_s1 + $0x180] sm:$0xff]  ;;  %v414_v57 = vld [vmem:[%s2464_s1 + $0x90] sm:$0xff]  ;;  %s2354_s8 = scalar_lea.vmem %s2467_s4, %s1373_s30 }
  0x11   : > { %1434 = vmatpush1.bf16.msra.mxu0 %v1749_v18  ;;  %1387 = vmatprep.subr.bf16.mxu1 %v1668_v3  ;;  %v205_v41 = vld [vmem:[%s1804_s20 + $0x8] sm:$0xff]  ;;  %v207_v42 = vld [vmem:[%s1804_s20 + $0x18] sm:$0xff]  ;;  %v1403_v55 = vpack.c.bf16 %v413_v52, %v412_v51  ;;  %v446_v59 = vld [vmem:[%s2464_s1 + $0x190] sm:$0xff] }
  0x12   : > { %1435 = vmatprep.subr.bf16.mxu0 %v1668_v3  ;;  %556 = vmatprep.mubr.f32.mxu1 %v205_v41  ;;  %v445_v54 = vld [vmem:[%s2464_s1 + $0x188] sm:$0xff]  ;;  %v415_v58 = vld [vmem:[%s2464_s1 + $0x98] sm:$0xff]  ;;  %v416_v63 = vld [vmem:[%s2464_s1 + $0xa0] sm:$0xff] }
  0x13   : > { %781 = vmatprep.mubr.f32.mxu0 %v207_v42  ;;  %v1861_v56 = vpack.c.bf16 %v445_v54, %v444_v53  ;;  %v447_v60 = vld [vmem:[%s2464_s1 + $0x198] sm:$0xff]  ;;  %v1406_v61 = vpack.c.bf16 %v415_v58, %v414_v57  ;;  %v417_v0 = vld [vmem:[%s2464_s1 + $0xa8] sm:$0xff]  ;;  %v448_v1 = vld [vmem:[%s2464_s1 + $0x1a0] sm:$0xff] }
  0x14   : > { %1389 = vmatpush1.bf16.msra.mxu1 %v1388_v23  ;;  %v1878_v62 = vpack.c.bf16 %v447_v60, %v446_v59  ;;  %v449_v2 = vld [vmem:[%s2464_s1 + $0x1a8] sm:$0xff]  ;;  %v1409_v4 = vpack.c.bf16 %v417_v0, %v416_v63  ;;  %v418_v6 = vld [vmem:[%s2464_s1 + $0xb0] sm:$0xff]  ;;  %v419_v7 = vld [vmem:[%s2464_s1 + $0xb8] sm:$0xff] }
  0x15   : > { %1437 = vmatpush1.bf16.msra.mxu0 %v1768_v24  ;;  %1390 = vmatprep.subr.bf16.mxu1 %v1668_v3  ;;  %v1895_v5 = vpack.c.bf16 %v449_v2, %v448_v1  ;;  %v450_v9 = vld [vmem:[%s2464_s1 + $0x1b0] sm:$0xff]  ;;  %v451_v10 = vld [vmem:[%s2464_s1 + $0x1b8] sm:$0xff]  ;;  %v1412_v11 = vpack.c.bf16 %v419_v7, %v418_v6  ;;  %v420_v14 = vld [vmem:[%s2464_s1 + $0xc0] sm:$0xff] }
  0x16   : > { %1438 = vmatprep.subr.bf16.mxu0 %v1668_v3  ;;  %v1912_v13 = vpack.c.bf16 %v451_v10, %v450_v9  ;;  %v421_v15 = vld [vmem:[%s2464_s1 + $0xc8] sm:$0xff]  ;;  %v452_v16 = vld [vmem:[%s2464_s1 + $0x1c0] sm:$0xff]  ;;  %v422_v21 = vld [vmem:[%s2464_s1 + $0xd0] sm:$0xff] }
  0x17   : > { %v453_v17 = vld [vmem:[%s2464_s1 + $0x1c8] sm:$0xff]  ;;  %v1415_v19 = vpack.c.bf16 %v421_v15, %v420_v14  ;;  %v423_v22 = vld [vmem:[%s2464_s1 + $0xd8] sm:$0xff]  ;;  %v454_v23 = vld [vmem:[%s2464_s1 + $0x1d0] sm:$0xff] }
  0x18   : > { %1392 = vmatpush1.bf16.msra.mxu1 %v1391_v29  ;;  %v1929_v20 = vpack.c.bf16 %v453_v17, %v452_v16  ;;  %v455_v25 = vld [vmem:[%s2464_s1 + $0x1d8] sm:$0xff]  ;;  %v1418_v26 = vpack.c.bf16 %v423_v22, %v422_v21  ;;  %v424_v28 = vld [vmem:[%s2464_s1 + $0xe0] sm:$0xff]  ;;  %v425_v29 = vld [vmem:[%s2464_s1 + $0xe8] sm:$0xff] }
  0x19   : > { %1440 = vmatpush1.bf16.msra.mxu0 %v1786_v30  ;;  %1393 = vmatprep.subr.bf16.mxu1 %v1668_v3  ;;  %v1946_v27 = vpack.c.bf16 %v455_v25, %v454_v23  ;;  %v456_v31 = vld [vmem:[%s2464_s1 + $0x1e0] sm:$0xff]  ;;  %v457_v32 = vld [vmem:[%s2464_s1 + $0x1e8] sm:$0xff]  ;;  %v1421_v33 = vpack.c.bf16 %v425_v29, %v424_v28  ;;  %v427_v37 = vld [vmem:[%s2464_s1 + $0xf8] sm:$0xff] }
  0x1a   : > { %1441 = vmatprep.subr.bf16.mxu0 %v1668_v3  ;;  %v1963_v34 = vpack.c.bf16 %v457_v32, %v456_v31  ;;  %v458_v38 = vld [vmem:[%s2464_s1 + $0x1f0] sm:$0xff]  ;;  %v459_v39 = vld [vmem:[%s2464_s1 + $0x1f8] sm:$0xff]  ;;  %v460_v42 = vld [vmem:[%s2464_s1 + $0x200] sm:$0xff] }
  0x1b   : > { %v1980_v41 = vpack.c.bf16 %v459_v39, %v458_v38  ;;  %v204_v45 = vld [vmem:[%s1804_s20] sm:$0xff]  ;;  %v206_v46 = vld [vmem:[%s1804_s20 + $0x10] sm:$0xff]  ;;  %v211_v48 = vld [vmem:[%s1804_s20 + $0x38] sm:$0xff] }
  0x1c   : > { %1395 = vmatpush1.bf16.msra.mxu1 %v1394_v35  ;;  %v426_v35 = vld [vmem:[%s2464_s1 + $0xf0] sm:$0xff]  ;;  %v463_v51 = vld [vmem:[%s2464_s1 + $0x218] sm:$0xff]  ;;  %v213_v52 = vld [vmem:[%s1804_s20 + $0x48] sm:$0xff] }
  0x1d   : > { %1443 = vmatpush1.bf16.msra.mxu0 %v1808_v36  ;;  %1396 = vmatprep.subr.bf16.mxu1 %v1668_v3  ;;  %v1424_v40 = vpack.c.bf16 %v427_v37, %v426_v35  ;;  %v210_v53 = vld [vmem:[%s1804_s20 + $0x30] sm:$0xff]  ;;  %v212_v54 = vld [vmem:[%s1804_s20 + $0x40] sm:$0xff]  ;;  %v217_v57 = vld [vmem:[%s1804_s20 + $0x68] sm:$0xff] }
  0x1e   : > { %1444 = vmatprep.subr.bf16.mxu0 %v1668_v3  ;;  %v219_v58 = vld [vmem:[%s1804_s20 + $0x78] sm:$0xff]  ;;  %v464_v59 = vld [vmem:[%s2464_s1 + $0x220] sm:$0xff]  ;;  %v225_v1 = vld [vmem:[%s1804_s20 + $0xa8] sm:$0xff] }
  0x1f   : > { %v216_v60 = vld [vmem:[%s1804_s20 + $0x60] sm:$0xff]  ;;  %v223_v0 = vld [vmem:[%s1804_s20 + $0x98] sm:$0xff]  ;;  %v466_v2 = vld [vmem:[%s2464_s1 + $0x230] sm:$0xff] }
  0x20   : > { %1398 = vmatpush1.bf16.msra.mxu1 %v1397_v43  ;;  %v461_v43 = vld [vmem:[%s2464_s1 + $0x208] sm:$0xff]  ;;  %v222_v6 = vld [vmem:[%s1804_s20 + $0x90] sm:$0xff]  ;;  %v231_v10 = vld [vmem:[%s1804_s20 + $0xd8] sm:$0xff] }
  0x21   : > { %1446 = vmatpush1.bf16.msra.mxu0 %v1827_v44  ;;  %1399 = vmatprep.subr.bf16.mxu1 %v1668_v3  ;;  %v1475_v47 = vpack.c.bf16 %v461_v43, %v460_v42  ;;  %v229_v9 = vld [vmem:[%s1804_s20 + $0xc8] sm:$0xff]  ;;  %v228_v15 = vld [vmem:[%s1804_s20 + $0xc0] sm:$0xff]  ;;  %v230_v16 = vld [vmem:[%s1804_s20 + $0xd0] sm:$0xff] }
  0x22   : > { %1447 = vmatprep.subr.bf16.mxu0 %v1668_v3  ;;  %v469_v14 = vld [vmem:[%s2464_s1 + $0x248] sm:$0xff]  ;;  %v235_v17 = vld [vmem:[%s1804_s20 + $0xf8] sm:$0xff]  ;;  %v470_v21 = vld [vmem:[%s2464_s1 + $0x250] sm:$0xff] }
  0x23   : > { %v471_v22 = vld [vmem:[%s2464_s1 + $0x258] sm:$0xff]  ;;  %v234_v23 = vld [vmem:[%s1804_s20 + $0xf0] sm:$0xff]  ;;  %v236_v25 = vld [vmem:[%s1804_s20 + $0x100] sm:$0xff] }
  0x24   : > { %1401 = vmatpush1.bf16.msra.mxu1 %v1400_v49  ;;  %v462_v49 = vld [vmem:[%s2464_s1 + $0x210] sm:$0xff]  ;;  %v241_v28 = vld [vmem:[%s1804_s20 + $0x128] sm:$0xff]  ;;  %v243_v29 = vld [vmem:[%s1804_s20 + $0x138] sm:$0xff] }
  0x25   : > { %1449 = vmatpush1.bf16.msra.mxu0 %v1844_v50  ;;  %1402 = vmatprep.subr.bf16.mxu1 %v1668_v3  ;;  %v473_v31 = vld [vmem:[%s2464_s1 + $0x268] sm:$0xff]  ;;  %v240_v32 = vld [vmem:[%s1804_s20 + $0x120] sm:$0xff]  ;;  %v247_v37 = vld [vmem:[%s1804_s20 + $0x158] sm:$0xff] }
  0x26   : > { %1450 = vmatprep.subr.bf16.mxu0 %v1668_v3  ;;  %v249_v38 = vld [vmem:[%s1804_s20 + $0x168] sm:$0xff]  ;;  %v475_v39 = vld [vmem:[%s2464_s1 + $0x278] sm:$0xff]  ;;  %v248_v42 = vld [vmem:[%s1804_s20 + $0x160] sm:$0xff] }
  0x28   : > { %1404 = vmatpush1.bf16.msra.mxu1 %v1403_v55  ;;  %v1478_v55 = vpack.c.bf16 %v463_v51, %v462_v49  ;;  %v254_v49 = vld [vmem:[%s1804_s20 + $0x190] sm:$0xff] }
  0x29   : > { %1452 = vmatpush1.bf16.msra.mxu0 %v1861_v56  ;;  %1405 = vmatprep.subr.bf16.mxu1 %v1668_v3 }
  0x2a   : > { %1453 = vmatprep.subr.bf16.mxu0 %v1668_v3 }
  0x2c   : > { %1407 = vmatpush1.bf16.msra.mxu1 %v1406_v61  ;;  %v218_v61 = vld [vmem:[%s1804_s20 + $0x70] sm:$0xff] }
  0x2d   : > { %1455 = vmatpush1.bf16.msra.mxu0 %v1878_v62  ;;  %1408 = vmatprep.subr.bf16.mxu1 %v1668_v3 }
  0x2e   : > { %1456 = vmatprep.subr.bf16.mxu0 %v1668_v3 }
  0x30   : > { %1410 = vmatpush1.bf16.msra.mxu1 %v1409_v4  ;;  %v467_v4 = vld [vmem:[%s2464_s1 + $0x238] sm:$0xff] }
  0x31   : > { %1458 = vmatpush1.bf16.msra.mxu0 %v1895_v5  ;;  %1411 = vmatprep.subr.bf16.mxu1 %v1668_v3  ;;  %v1484_v7 = vpack.c.bf16 %v467_v4, %v466_v2  ;;  %v273_v2 = vld [vmem:[%s1804_s20 + $0x228] sm:$0xff]  ;;  %v483_v4 = vld [vmem:[%s2464_s1 + $0x2b8] sm:$0xff] }
  0x32   : > { %1459 = vmatprep.subr.bf16.mxu0 %v1668_v3 }
  0x34   : > { %1413 = vmatpush1.bf16.msra.mxu1 %v1412_v11  ;;  %v468_v11 = vld [vmem:[%s2464_s1 + $0x240] sm:$0xff] }
  0x35   : > { %1461 = vmatpush1.bf16.msra.mxu0 %v1912_v13  ;;  %1414 = vmatprep.subr.bf16.mxu1 %v1668_v3 }
  0x36   : > { %1462 = vmatprep.subr.bf16.mxu0 %v1668_v3 }
  0x38   : > { %1416 = vmatpush1.bf16.msra.mxu1 %v1415_v19  ;;  %v237_v19 = vld [vmem:[%s1804_s20 + $0x108] sm:$0xff] }
  0x39   : > { %1464 = vmatpush1.bf16.msra.mxu0 %v1929_v20  ;;  %1417 = vmatprep.subr.bf16.mxu1 %v1668_v3 }
  0x3a   : > { %1465 = vmatprep.subr.bf16.mxu0 %v1668_v3 }
  0x3c   : > { %1419 = vmatpush1.bf16.msra.mxu1 %v1418_v26  ;;  %v1490_v26 = vpack.c.bf16 %v471_v22, %v470_v21  ;;  %v282_v21 = vld [vmem:[%s1804_s20 + $0x270] sm:$0xff]  ;;  %v284_v22 = vld [vmem:[%s1804_s20 + $0x280] sm:$0xff] }
  0x3d   : > { %1467 = vmatpush1.bf16.msra.mxu0 %v1946_v27  ;;  %1420 = vmatprep.subr.bf16.mxu1 %v1668_v3 }
  0x3e   : > { %1468 = vmatprep.subr.bf16.mxu0 %v1668_v3 }
  0x40   : > { %1422 = vmatpush1.bf16.msra.mxu1 %v1421_v33  ;;  %v242_v33 = vld [vmem:[%s1804_s20 + $0x130] sm:$0xff] }
  0x41   : > { %1470 = vmatpush1.bf16.msra.mxu0 %v1963_v34  ;;  %1423 = vmatprep.subr.bf16.mxu1 %v1668_v3 }
  0x42   : > { %1471 = vmatprep.subr.bf16.mxu0 %v1668_v3 }
  0x44   : > { %1425 = vmatpush1.bf16.msra.mxu1 %v1424_v40  ;;  %v246_v40 = vld [vmem:[%s1804_s20 + $0x150] sm:$0xff] }
  0x45   : > { %1473 = vmatpush1.bf16.msra.mxu0 %v1980_v41  ;;  %1522 = vmatprep.subr.bf16.mxu1 %v1668_v3 }
  0x46   : > { %1474 = vmatprep.subr.bf16.mxu0 %v1668_v3 }
  0x47   : > { %557 = vmatmul.mubr.f32.vlgmr.msra.gmra.mrb[0].mxu1 %v204_v45  ;;  %v253_v45 = vld [vmem:[%s1804_s20 + $0x188] sm:$0xff] }
  0x48   : > { %782 = vmatmul.mubr.f32.vlgmr.msra.gmra.mrb[0].mxu0 %v206_v46  ;;  %1538 = vmatpush1.bf16.msra.mxu1 %v1722_v8  ;;  %v465_v8 = vld [vmem:[%s2464_s1 + $0x228] sm:$0xff]  ;;  %v255_v46 = vld [vmem:[%s1804_s20 + $0x198] sm:$0xff] }
  0x49   : > { %1476 = vmatpush1.bf16.msra.mxu0 %v1475_v47  ;;  %561 = vmatprep.mubr.f32.mxu1 %v211_v48  ;;  %v1481_v63 = vpack.c.bf16 %v465_v8, %v464_v59  ;;  %v477_v47 = vld [vmem:[%s2464_s1 + $0x288] sm:$0xff]  ;;  %v252_v48 = vld [vmem:[%s1804_s20 + $0x180] sm:$0xff]  ;;  %v267_v8 = vld [vmem:[%s1804_s20 + $0x1f8] sm:$0xff] }
  0x4a   : > { %786 = vmatprep.mubr.f32.mxu0 %v213_v52  ;;  %1477 = vmatprep.subr.bf16.mxu0 %v1668_v3  ;;  %v259_v52 = vld [vmem:[%s1804_s20 + $0x1b8] sm:$0xff]  ;;  %v265_v59 = vld [vmem:[%s1804_s20 + $0x1e8] sm:$0xff] }
  0x4b   : > { %562 = vmatmul.mubr.f32.gmra.mrb[2].mxu1 %v210_v53  ;;  %1523 = vmatprep.subr.bf16.mxu1 %v1668_v3  ;;  %v261_v53 = vld [vmem:[%s1804_s20 + $0x1c8] sm:$0xff] }
  0x4c   : > { %787 = vmatmul.mubr.f32.gmra.mrb[2].mxu0 %v212_v54  ;;  %566 = vmatprep.mubr.f32.mxu1 %v217_v57  ;;  %v479_v54 = vld [vmem:[%s2464_s1 + $0x298] sm:$0xff]  ;;  %v260_v57 = vld [vmem:[%s1804_s20 + $0x1c0] sm:$0xff] }
  0x4d   : > { %1479 = vmatpush1.bf16.msra.mxu0 %v1478_v55  ;;  %791 = vmatprep.mubr.f32.mxu0 %v219_v58  ;;  %v258_v55 = vld [vmem:[%s1804_s20 + $0x1b0] sm:$0xff] }
  0x4e   : > { %1480 = vmatprep.subr.bf16.mxu0 %v1668_v3  ;;  %1539 = vmatpush1.bf16.msra.mxu1 %v1732_v12  ;;  %v224_v12 = vld [vmem:[%s1804_s20 + $0xa0] sm:$0xff] }
  0x4f   : > { %567 = vmatmul.mubr.f32.gmra.mrb[4].mxu1 %v216_v60  ;;  %1524 = vmatprep.subr.bf16.mxu1 %v1668_v3  ;;  %v481_v60 = vld [vmem:[%s2464_s1 + $0x2a8] sm:$0xff] }
  0x50   : > { %792 = vmatmul.mubr.f32.gmra.mrb[4].mxu0 %v218_v61  ;;  %571 = vmatprep.mubr.f32.mxu1 %v223_v0  ;;  %v264_v61 = vld [vmem:[%s1804_s20 + $0x1e0] sm:$0xff] }
  0x51   : > { %1482 = vmatpush1.bf16.msra.mxu0 %v1481_v63  ;;  %796 = vmatprep.mubr.f32.mxu0 %v225_v1  ;;  %v266_v63 = vld [vmem:[%s1804_s20 + $0x1f0] sm:$0xff]  ;;  %v271_v1 = vld [vmem:[%s1804_s20 + $0x218] sm:$0xff] }
  0x52   : > { %1483 = vmatprep.subr.bf16.mxu0 %v1668_v3  ;;  %1540 = vmatpush1.bf16.msra.mxu1 %v1749_v18  ;;  %v1487_v18 = vpack.c.bf16 %v469_v14, %v468_v11  ;;  %v485_v11 = vld [vmem:[%s2464_s1 + $0x2c8] sm:$0xff]  ;;  %v276_v14 = vld [vmem:[%s1804_s20 + $0x240] sm:$0xff] }
  0x53   : > { %572 = vmatmul.mubr.f32.gmra.mrb[6].mxu1 %v222_v6  ;;  %1525 = vmatprep.subr.bf16.mxu1 %v1668_v3  ;;  %v270_v6 = vld [vmem:[%s1804_s20 + $0x210] sm:$0xff] }
  0x54   : > { %797 = vmatmul.mubr.f32.gmra.mrb[6].mxu0 %v224_v12  ;;  %576 = vmatprep.mubr.f32.mxu1 %v229_v9  ;;  %v272_v12 = vld [vmem:[%s1804_s20 + $0x220] sm:$0xff]  ;;  %v277_v9 = vld [vmem:[%s1804_s20 + $0x248] sm:$0xff] }
  0x55   : > { %1485 = vmatpush1.bf16.msra.mxu0 %v1484_v7  ;;  %801 = vmatprep.mubr.f32.mxu0 %v231_v10  ;;  %v279_v10 = vld [vmem:[%s1804_s20 + $0x258] sm:$0xff] }
  0x56   : > { %1486 = vmatprep.subr.bf16.mxu0 %v1668_v3  ;;  %1541 = vmatpush1.bf16.msra.mxu1 %v1768_v24  ;;  %v472_v24 = vld [vmem:[%s2464_s1 + $0x260] sm:$0xff] }
  0x57   : > { %577 = vmatmul.mubr.f32.gmra.mrb[8].mxu1 %v228_v15  ;;  %1526 = vmatprep.subr.bf16.mxu1 %v1668_v3  ;;  %v1493_v35 = vpack.c.bf16 %v473_v31, %v472_v24  ;;  %v278_v15 = vld [vmem:[%s1804_s20 + $0x250] sm:$0xff] }
  0x58   : > { %802 = vmatmul.mubr.f32.gmra.mrb[8].mxu0 %v230_v16  ;;  %581 = vmatprep.mubr.f32.mxu1 %v235_v17  ;;  %v285_v17 = vld [vmem:[%s1804_s20 + $0x288] sm:$0xff]  ;;  %v290_v24 = vld [vmem:[%s1804_s20 + $0x2b0] sm:$0xff] }
  0x59   : > { %1488 = vmatpush1.bf16.msra.mxu0 %v1487_v18  ;;  %806 = vmatprep.mubr.f32.mxu0 %v237_v19  ;;  %v283_v18 = vld [vmem:[%s1804_s20 + $0x278] sm:$0xff] }
  0x5a   : > { %1489 = vmatprep.subr.bf16.mxu0 %v1668_v3  ;;  %1542 = vmatpush1.bf16.msra.mxu1 %v1786_v30  ;;  %v474_v30 = vld [vmem:[%s2464_s1 + $0x270] sm:$0xff]  ;;  %v487_v19 = vld [vmem:[%s2464_s1 + $0x2d8] sm:$0xff] }
  0x5b   : > { %582 = vmatmul.mubr.f32.gmra.mrb[10].mxu1 %v234_v23  ;;  %1527 = vmatprep.subr.bf16.mxu1 %v1668_v3  ;;  %v1496_v43 = vpack.c.bf16 %v475_v39, %v474_v30  ;;  %v301_v39 = vld [vmem:[%s1804_s20 + $0x308] sm:$0xff] }
  0x5c   : > { %807 = vmatmul.mubr.f32.gmra.mrb[10].mxu0 %v236_v25  ;;  %586 = vmatprep.mubr.f32.mxu1 %v241_v28  ;;  %v289_v25 = vld [vmem:[%s1804_s20 + $0x2a8] sm:$0xff] }
  0x5d   : > { %1491 = vmatpush1.bf16.msra.mxu0 %v1490_v26  ;;  %811 = vmatprep.mubr.f32.mxu0 %v243_v29  ;;  %v291_v26 = vld [vmem:[%s1804_s20 + $0x2b8] sm:$0xff]  ;;  %v489_v28 = vld [vmem:[%s2464_s1 + $0x2e8] sm:$0xff]  ;;  %v288_v29 = vld [vmem:[%s1804_s20 + $0x2a0] sm:$0xff] }
  0x5e   : > { %1492 = vmatprep.subr.bf16.mxu0 %v1668_v3  ;;  %1543 = vmatpush1.bf16.msra.mxu1 %v1808_v36  ;;  %v476_v36 = vld [vmem:[%s2464_s1 + $0x280] sm:$0xff] }
  0x5f   : > { %587 = vmatmul.mubr.f32.gmra.mrb[12].mxu1 %v240_v32  ;;  %1528 = vmatprep.subr.bf16.mxu1 %v1668_v3  ;;  %v1499_v51 = vpack.c.bf16 %v477_v47, %v476_v36  ;;  %v295_v32 = vld [vmem:[%s1804_s20 + $0x2d8] sm:$0xff]  ;;  %v221_v36 = vld [vmem:[%s1804_s20 + $0x88] sm:$0xff]  ;;  %v312_v47 = vld [vmem:[%s1804_s20 + $0x360] sm:$0xff] }
  0x60   : > { %812 = vmatmul.mubr.f32.gmra.mrb[12].mxu0 %v242_v33  ;;  %591 = vmatprep.mubr.f32.mxu1 %v247_v37  ;;  %v297_v33 = vld [vmem:[%s1804_s20 + $0x2e8] sm:$0xff]  ;;  %v294_v37 = vld [vmem:[%s1804_s20 + $0x2d0] sm:$0xff] }
  0x61   : > { %1494 = vmatpush1.bf16.msra.mxu0 %v1493_v35  ;;  %816 = vmatprep.mubr.f32.mxu0 %v249_v38  ;;  %v491_v35 = vld [vmem:[%s2464_s1 + $0x2f8] sm:$0xff]  ;;  %v296_v38 = vld [vmem:[%s1804_s20 + $0x2e0] sm:$0xff] }
  0x62   : > { %1495 = vmatprep.subr.bf16.mxu0 %v1668_v3  ;;  %1544 = vmatpush1.bf16.msra.mxu1 %v1827_v44  ;;  %v478_v44 = vld [vmem:[%s2464_s1 + $0x290] sm:$0xff] }
  0x63   : > { %592 = vmatmul.mubr.f32.gmra.mrb[14].mxu1 %v246_v40  ;;  %1529 = vmatprep.subr.bf16.mxu1 %v1668_v3  ;;  %v1502_v58 = vpack.c.bf16 %v479_v54, %v478_v44  ;;  %v209_v40 = vld [vmem:[%s1804_s20 + $0x28] sm:$0xff]  ;;  %v324_v54 = vld [vmem:[%s1804_s20 + $0x3c0] sm:$0xff] }
  0x64   : > { %817 = vmatmul.mubr.f32.gmra.mrb[14].mxu0 %v248_v42  ;;  %596 = vmatprep.mubr.f32.mxu1 %v253_v45  ;;  %v208_v42 = vld [vmem:[%s1804_s20 + $0x20] sm:$0xff]  ;;  %v215_v45 = vld [vmem:[%s1804_s20 + $0x58] sm:$0xff]  ;;  %v233_v44 = vld [vmem:[%s1804_s20 + $0xe8] sm:$0xff] }
  0x65   : > { %1497 = vmatpush1.bf16.msra.mxu0 %v1496_v43  ;;  %821 = vmatprep.mubr.f32.mxu0 %v255_v46  ;;  %v307_v43 = vld [vmem:[%s1804_s20 + $0x338] sm:$0xff]  ;;  %v313_v46 = vld [vmem:[%s1804_s20 + $0x368] sm:$0xff] }
  0x66   : > { %1498 = vmatprep.subr.bf16.mxu0 %v1668_v3  ;;  %1545 = vmatpush1.bf16.msra.mxu1 %v1844_v50  ;;  %v480_v50 = vld [vmem:[%s2464_s1 + $0x2a0] sm:$0xff] }
  0x67   : > { %597 = vmatmul.mubr.f32.gmra.mrb[16].mxu1 %v252_v48  ;;  %1530 = vmatprep.subr.bf16.mxu1 %v1668_v3  ;;  %v1505_v0 = vpack.c.bf16 %v481_v60, %v480_v50  ;;  %v319_v48 = vld [vmem:[%s1804_s20 + $0x398] sm:$0xff]  ;;  %v337_v50 = vld [vmem:[%s1804_s20 + $0x428] sm:$0xff] }
  0x68   : > { %822 = vmatmul.mubr.f32.gmra.mrb[16].mxu0 %v254_v49  ;;  %601 = vmatprep.mubr.f32.mxu1 %v259_v52  ;;  %v227_v49 = vld [vmem:[%s1804_s20 + $0xb8] sm:$0xff]  ;;  %v226_v52 = vld [vmem:[%s1804_s20 + $0xb0] sm:$0xff]  ;;  %v245_v60 = vld [vmem:[%s1804_s20 + $0x148] sm:$0xff] }
  0x69   : > { %1500 = vmatpush1.bf16.msra.mxu0 %v1499_v51  ;;  %826 = vmatprep.mubr.f32.mxu0 %v261_v53  ;;  %v318_v51 = vld [vmem:[%s1804_s20 + $0x390] sm:$0xff]  ;;  %v325_v53 = vld [vmem:[%s1804_s20 + $0x3c8] sm:$0xff] }
  0x6a   : > { %1501 = vmatprep.subr.bf16.mxu0 %v1668_v3  ;;  %1546 = vmatpush1.bf16.msra.mxu1 %v1861_v56  ;;  %v482_v56 = vld [vmem:[%s2464_s1 + $0x2b0] sm:$0xff] }
  0x6b   : > { %602 = vmatmul.mubr.f32.gmra.mrb[18].mxu1 %v258_v55  ;;  %1531 = vmatprep.subr.bf16.mxu1 %v1668_v3  ;;  %v1508_v7 = vpack.c.bf16 %v483_v4, %v482_v56  ;;  %v232_v55 = vld [vmem:[%s1804_s20 + $0xe0] sm:$0xff]  ;;  %v250_v56 = vld [vmem:[%s1804_s20 + $0x170] sm:$0xff]  ;;  %v349_v4 = vld [vmem:[%s1804_s20 + $0x488] sm:$0xff] }
  0x6c   : > { %827 = vmatmul.mubr.f32.gmra.mrb[18].mxu0 %v260_v57  ;;  %606 = vmatprep.mubr.f32.mxu1 %v265_v59  ;;  %v331_v57 = vld [vmem:[%s1804_s20 + $0x3f8] sm:$0xff]  ;;  %v330_v59 = vld [vmem:[%s1804_s20 + $0x3f0] sm:$0xff] }
  0x6d   : > { %1503 = vmatpush1.bf16.msra.mxu0 %v1502_v58  ;;  %831 = vmatprep.mubr.f32.mxu0 %v267_v8  ;;  %v239_v58 = vld [vmem:[%s1804_s20 + $0x118] sm:$0xff]  ;;  %v238_v8 = vld [vmem:[%s1804_s20 + $0x110] sm:$0xff] }
  0x6e   : > { %1504 = vmatprep.subr.bf16.mxu0 %v1668_v3  ;;  %1547 = vmatpush1.bf16.msra.mxu1 %v1878_v62  ;;  %v484_v62 = vld [vmem:[%s2464_s1 + $0x2c0] sm:$0xff] }
  0x6f   : > { %607 = vmatmul.mubr.f32.gmra.mrb[20].mxu1 %v264_v61  ;;  %1532 = vmatprep.subr.bf16.mxu1 %v1668_v3  ;;  %v1511_v16 = vpack.c.bf16 %v485_v11, %v484_v62  ;;  %v336_v61 = vld [vmem:[%s1804_s20 + $0x420] sm:$0xff]  ;;  %v354_v62 = vld [vmem:[%s1804_s20 + $0x4b0] sm:$0xff] }
  0x70   : > { %832 = vmatmul.mubr.f32.gmra.mrb[20].mxu0 %v266_v63  ;;  %611 = vmatprep.mubr.f32.mxu1 %v271_v1  ;;  %v244_v63 = vld [vmem:[%s1804_s20 + $0x140] sm:$0xff]  ;;  %v251_v1 = vld [vmem:[%s1804_s20 + $0x178] sm:$0xff]  ;;  %v262_v11 = vld [vmem:[%s1804_s20 + $0x1d0] sm:$0xff] }
  0x71   : > { %1506 = vmatpush1.bf16.msra.mxu0 %v1505_v0  ;;  %836 = vmatprep.mubr.f32.mxu0 %v273_v2  ;;  %v343_v0 = vld [vmem:[%s1804_s20 + $0x458] sm:$0xff]  ;;  %v342_v2 = vld [vmem:[%s1804_s20 + $0x450] sm:$0xff] }
  0x72   : > { %1507 = vmatprep.subr.bf16.mxu0 %v1668_v3  ;;  %1548 = vmatpush1.bf16.msra.mxu1 %v1895_v5  ;;  %v486_v5 = vld [vmem:[%s2464_s1 + $0x2d0] sm:$0xff] }
  0x73   : > { %612 = vmatmul.mubr.f32.gmra.mrb[22].mxu1 %v270_v6  ;;  %1533 = vmatprep.subr.bf16.mxu1 %v1668_v3  ;;  %v1514_v23 = vpack.c.bf16 %v487_v19, %v486_v5  ;;  %v257_v6 = vld [vmem:[%s1804_s20 + $0x1a8] sm:$0xff]  ;;  %v275_v5 = vld [vmem:[%s1804_s20 + $0x238] sm:$0xff]  ;;  %v366_v19 = vld [vmem:[%s1804_s20 + $0x510] sm:$0xff] }
  0x74   : > { %837 = vmatmul.mubr.f32.gmra.mrb[22].mxu0 %v272_v12  ;;  %616 = vmatprep.mubr.f32.mxu1 %v277_v9  ;;  %v348_v12 = vld [vmem:[%s1804_s20 + $0x480] sm:$0xff]  ;;  %v355_v9 = vld [vmem:[%s1804_s20 + $0x4b8] sm:$0xff] }
  0x75   : > { %1509 = vmatpush1.bf16.msra.mxu0 %v1508_v7  ;;  %841 = vmatprep.mubr.f32.mxu0 %v279_v10  ;;  %v256_v7 = vld [vmem:[%s1804_s20 + $0x1a0] sm:$0xff]  ;;  %v263_v10 = vld [vmem:[%s1804_s20 + $0x1d8] sm:$0xff] }
  0x76   : > { %1510 = vmatprep.subr.bf16.mxu0 %v1668_v3  ;;  %1549 = vmatpush1.bf16.msra.mxu1 %v1912_v13  ;;  %v488_v13 = vld [vmem:[%s2464_s1 + $0x2e0] sm:$0xff] }
  0x77   : > { %617 = vmatmul.mubr.f32.gmra.mrb[24].mxu1 %v276_v14  ;;  %1534 = vmatprep.subr.bf16.mxu1 %v1668_v3  ;;  %v1517_v31 = vpack.c.bf16 %v489_v28, %v488_v13  ;;  %v361_v14 = vld [vmem:[%s1804_s20 + $0x4e8] sm:$0xff]  ;;  %v379_v13 = vld [vmem:[%s1804_s20 + $0x578] sm:$0xff] }
  0x78   : > { %842 = vmatmul.mubr.f32.gmra.mrb[24].mxu0 %v278_v15  ;;  %621 = vmatprep.mubr.f32.mxu1 %v283_v18  ;;  %v269_v15 = vld [vmem:[%s1804_s20 + $0x208] sm:$0xff]  ;;  %v268_v18 = vld [vmem:[%s1804_s20 + $0x200] sm:$0xff]  ;;  %v287_v28 = vld [vmem:[%s1804_s20 + $0x298] sm:$0xff] }
  0x79   : > { %1512 = vmatpush1.bf16.msra.mxu0 %v1511_v16  ;;  %846 = vmatprep.mubr.f32.mxu0 %v285_v17  ;;  %v360_v16 = vld [vmem:[%s1804_s20 + $0x4e0] sm:$0xff]  ;;  %v367_v17 = vld [vmem:[%s1804_s20 + $0x518] sm:$0xff] }
  0x7a   : > { %1513 = vmatprep.subr.bf16.mxu0 %v1668_v3  ;;  %1550 = vmatpush1.bf16.msra.mxu1 %v1929_v20  ;;  %v490_v20 = vld [vmem:[%s2464_s1 + $0x2f0] sm:$0xff] }
  0x7b   : > { %622 = vmatmul.mubr.f32.gmra.mrb[26].mxu1 %v282_v21  ;;  %1535 = vmatprep.subr.bf16.mxu1 %v1668_v3  ;;  %v1520_v30 = vpack.c.bf16 %v491_v35, %v490_v20  ;;  %v274_v21 = vld [vmem:[%s1804_s20 + $0x230] sm:$0xff]  ;;  %v292_v20 = vld [vmem:[%s1804_s20 + $0x2c0] sm:$0xff]  ;;  %v391_v35 = vld [vmem:[%s1804_s20 + $0x5d8] sm:$0xff] }
  0x7c   : > { %847 = vmatmul.mubr.f32.gmra.mrb[26].mxu0 %v284_v22  ;;  %626 = vmatprep.mubr.f32.mxu1 %v289_v25  ;;  %v373_v22 = vld [vmem:[%s1804_s20 + $0x548] sm:$0xff]  ;;  %v372_v25 = vld [vmem:[%s1804_s20 + $0x540] sm:$0xff] }
  0x7d   : > { %1515 = vmatpush1.bf16.msra.mxu0 %v1514_v23  ;;  %851 = vmatprep.mubr.f32.mxu0 %v291_v26  ;;  %v281_v23 = vld [vmem:[%s1804_s20 + $0x268] sm:$0xff]  ;;  %v280_v26 = vld [vmem:[%s1804_s20 + $0x260] sm:$0xff] }
  0x7e   : > { %1516 = vmatprep.subr.bf16.mxu0 %v1668_v3  ;;  %1551 = vmatpush1.bf16.msra.mxu1 %v1946_v27  ;;  %v300_v27 = vld [vmem:[%s1804_s20 + $0x300] sm:$0xff] }
  0x7f   : > { %627 = vmatmul.mubr.f32.gmra.mrb[28].mxu1 %v288_v29  ;;  %1536 = vmatprep.subr.bf16.mxu1 %v1668_v3  ;;  %v378_v29 = vld [vmem:[%s1804_s20 + $0x570] sm:$0xff] }
  0x80   : > { %852 = vmatmul.mubr.f32.gmra.mrb[28].mxu0 %v290_v24  ;;  %631 = vmatprep.mubr.f32.mxu1 %v295_v32  ;;  %v286_v24 = vld [vmem:[%s1804_s20 + $0x290] sm:$0xff]  ;;  %v293_v32 = vld [vmem:[%s1804_s20 + $0x2c8] sm:$0xff] }
  0x81   : > { %1518 = vmatpush1.bf16.msra.mxu0 %v1517_v31  ;;  %856 = vmatprep.mubr.f32.mxu0 %v297_v33  ;;  %v385_v31 = vld [vmem:[%s1804_s20 + $0x5a8] sm:$0xff]  ;;  %v384_v33 = vld [vmem:[%s1804_s20 + $0x5a0] sm:$0xff] }
  0x82   : > { %1519 = vmatprep.subr.bf16.mxu0 %v1668_v3  ;;  %1552 = vmatpush1.bf16.msra.mxu1 %v1963_v34  ;;  %v214_v34 = vld [vmem:[%s1804_s20 + $0x50] sm:$0xff] }
  0x83   : > { %632 = vmatmul.mubr.f32.gmra.mrb[30].mxu1 %v294_v37  ;;  %1537 = vmatprep.subr.bf16.mxu1 %v1668_v3  ;;  %v306_v3 = vld [vmem:[%s1804_s20 + $0x330] sm:$0xff]  ;;  %v299_v37 = vld [vmem:[%s1804_s20 + $0x2f8] sm:$0xff] }
  0x84   : > { %857 = vmatmul.mubr.f32.gmra.mrb[30].mxu0 %v296_v38  ;;  %636 = vmatprep.mubr.f32.mxu1 %v301_v39  ;;  %v390_v38 = vld [vmem:[%s1804_s20 + $0x5d0] sm:$0xff]  ;;  %v303_v39 = vld [vmem:[%s1804_s20 + $0x318] sm:$0xff] }
  0x85   : > { %1521 = vmatpush1.bf16.msra.mxu0 %v1520_v30  ;;  %1006 = vmatprep.mubr.f32.mxu0 %v209_v40  ;;  %v298_v30 = vld [vmem:[%s1804_s20 + $0x2f0] sm:$0xff]  ;;  %v305_v40 = vld [vmem:[%s1804_s20 + $0x328] sm:$0xff] }
  0x86   : > { %1553 = vmatpush1.bf16.msra.mxu1 %v1980_v41  ;;  %v220_v41 = vld [vmem:[%s1804_s20 + $0x80] sm:$0xff] }
  0x87   : > { %637 = vmatmul.mubr.f32.gmra.mrb[32].mxu1 %v300_v27  ;;  %v302_v27 = vld [vmem:[%s1804_s20 + $0x310] sm:$0xff] }
  0x88   : > { %1007 = vmatmul.mubr.f32.vlgmr.msra.gmra.mrb[0].mxu0 %v208_v42  ;;  %641 = vmatprep.mubr.f32.mxu1 %v307_v43  ;;  %v304_v42 = vld [vmem:[%s1804_s20 + $0x320] sm:$0xff]  ;;  %v309_v43 = vld [vmem:[%s1804_s20 + $0x348] sm:$0xff] }
  0x89   : > { %1011 = vmatprep.mubr.f32.mxu0 %v215_v45  ;;  %v311_v45 = vld [vmem:[%s1804_s20 + $0x358] sm:$0xff] }
  0x8b   : > { %642 = vmatmul.mubr.f32.gmra.mrb[34].mxu1 %v306_v3  ;;  %v308_v3 = vld [vmem:[%s1804_s20 + $0x340] sm:$0xff] }
  0x8c   : > { %1012 = vmatmul.mubr.f32.gmra.mrb[2].mxu0 %v214_v34  ;;  %646 = vmatprep.mubr.f32.mxu1 %v313_v46  ;;  %v310_v34 = vld [vmem:[%s1804_s20 + $0x350] sm:$0xff]  ;;  %v315_v46 = vld [vmem:[%s1804_s20 + $0x378] sm:$0xff] }
  0x8d   : > { %1016 = vmatprep.mubr.f32.mxu0 %v221_v36  ;;  %v317_v36 = vld [vmem:[%s1804_s20 + $0x388] sm:$0xff] }
  0x8f   : > { %647 = vmatmul.mubr.f32.gmra.mrb[36].mxu1 %v312_v47  ;;  %v314_v47 = vld [vmem:[%s1804_s20 + $0x370] sm:$0xff] }
  0x90   : > { %1017 = vmatmul.mubr.f32.gmra.mrb[4].mxu0 %v220_v41  ;;  %651 = vmatprep.mubr.f32.mxu1 %v319_v48  ;;  %v316_v41 = vld [vmem:[%s1804_s20 + $0x380] sm:$0xff]  ;;  %v321_v48 = vld [vmem:[%s1804_s20 + $0x3a8] sm:$0xff] }
  0x91   : > { %1021 = vmatprep.mubr.f32.mxu0 %v227_v49  ;;  %v323_v49 = vld [vmem:[%s1804_s20 + $0x3b8] sm:$0xff] }
  0x93   : > { %652 = vmatmul.mubr.f32.gmra.mrb[38].mxu1 %v318_v51  ;;  %v320_v51 = vld [vmem:[%s1804_s20 + $0x3a0] sm:$0xff] }
  0x94   : > { %1022 = vmatmul.mubr.f32.gmra.mrb[6].mxu0 %v226_v52  ;;  %656 = vmatprep.mubr.f32.mxu1 %v325_v53  ;;  %v322_v52 = vld [vmem:[%s1804_s20 + $0x3b0] sm:$0xff]  ;;  %v327_v53 = vld [vmem:[%s1804_s20 + $0x3d8] sm:$0xff] }
  0x95   : > { %1026 = vmatprep.mubr.f32.mxu0 %v233_v44  ;;  %v329_v44 = vld [vmem:[%s1804_s20 + $0x3e8] sm:$0xff] }
  0x97   : > { %657 = vmatmul.mubr.f32.gmra.mrb[40].mxu1 %v324_v54  ;;  %v326_v54 = vld [vmem:[%s1804_s20 + $0x3d0] sm:$0xff] }
  0x98   : > { %1027 = vmatmul.mubr.f32.gmra.mrb[8].mxu0 %v232_v55  ;;  %661 = vmatprep.mubr.f32.mxu1 %v331_v57  ;;  %v328_v55 = vld [vmem:[%s1804_s20 + $0x3e0] sm:$0xff]  ;;  %v333_v57 = vld [vmem:[%s1804_s20 + $0x408] sm:$0xff] }
  0x99   : > { %1031 = vmatprep.mubr.f32.mxu0 %v239_v58  ;;  %v335_v58 = vld [vmem:[%s1804_s20 + $0x418] sm:$0xff] }
  0x9b   : > { %662 = vmatmul.mubr.f32.gmra.mrb[42].mxu1 %v330_v59  ;;  %v332_v59 = vld [vmem:[%s1804_s20 + $0x400] sm:$0xff] }
  0x9c   : > { %1032 = vmatmul.mubr.f32.gmra.mrb[10].mxu0 %v238_v8  ;;  %666 = vmatprep.mubr.f32.mxu1 %v337_v50  ;;  %v334_v8 = vld [vmem:[%s1804_s20 + $0x410] sm:$0xff]  ;;  %v339_v50 = vld [vmem:[%s1804_s20 + $0x438] sm:$0xff] }
  0x9d   : > { %1036 = vmatprep.mubr.f32.mxu0 %v245_v60  ;;  %v341_v60 = vld [vmem:[%s1804_s20 + $0x448] sm:$0xff] }
  0x9f   : > { %667 = vmatmul.mubr.f32.gmra.mrb[44].mxu1 %v336_v61  ;;  %v338_v61 = vld [vmem:[%s1804_s20 + $0x430] sm:$0xff] }
  0xa0   : > { %1037 = vmatmul.mubr.f32.gmra.mrb[12].mxu0 %v244_v63  ;;  %671 = vmatprep.mubr.f32.mxu1 %v343_v0  ;;  %v340_v63 = vld [vmem:[%s1804_s20 + $0x440] sm:$0xff]  ;;  %v345_v0 = vld [vmem:[%s1804_s20 + $0x468] sm:$0xff] }
  0xa1   : > { %1041 = vmatprep.mubr.f32.mxu0 %v251_v1  ;;  %v347_v1 = vld [vmem:[%s1804_s20 + $0x478] sm:$0xff] }
  0xa3   : > { %672 = vmatmul.mubr.f32.gmra.mrb[46].mxu1 %v342_v2  ;;  %v344_v2 = vld [vmem:[%s1804_s20 + $0x460] sm:$0xff] }
  0xa4   : > { %1042 = vmatmul.mubr.f32.gmra.mrb[14].mxu0 %v250_v56  ;;  %676 = vmatprep.mubr.f32.mxu1 %v349_v4  ;;  %v346_v56 = vld [vmem:[%s1804_s20 + $0x470] sm:$0xff]  ;;  %v351_v4 = vld [vmem:[%s1804_s20 + $0x498] sm:$0xff] }
  0xa5   : > { %1046 = vmatprep.mubr.f32.mxu0 %v257_v6  ;;  %v353_v6 = vld [vmem:[%s1804_s20 + $0x4a8] sm:$0xff] }
  0xa7   : > { %677 = vmatmul.mubr.f32.gmra.mrb[48].mxu1 %v348_v12  ;;  %v350_v12 = vld [vmem:[%s1804_s20 + $0x490] sm:$0xff] }
  0xa8   : > { %1047 = vmatmul.mubr.f32.gmra.mrb[16].mxu0 %v256_v7  ;;  %681 = vmatprep.mubr.f32.mxu1 %v355_v9  ;;  %v352_v7 = vld [vmem:[%s1804_s20 + $0x4a0] sm:$0xff]  ;;  %v357_v9 = vld [vmem:[%s1804_s20 + $0x4c8] sm:$0xff] }
  0xa9   : > { %1051 = vmatprep.mubr.f32.mxu0 %v263_v10  ;;  %v359_v10 = vld [vmem:[%s1804_s20 + $0x4d8] sm:$0xff] }
  0xab   : > { %682 = vmatmul.mubr.f32.gmra.mrb[50].mxu1 %v354_v62  ;;  %v356_v62 = vld [vmem:[%s1804_s20 + $0x4c0] sm:$0xff] }
  0xac   : > { %1052 = vmatmul.mubr.f32.gmra.mrb[18].mxu0 %v262_v11  ;;  %686 = vmatprep.mubr.f32.mxu1 %v361_v14  ;;  %v358_v11 = vld [vmem:[%s1804_s20 + $0x4d0] sm:$0xff]  ;;  %v363_v14 = vld [vmem:[%s1804_s20 + $0x4f8] sm:$0xff] }
  0xad   : > { %1056 = vmatprep.mubr.f32.mxu0 %v269_v15  ;;  %v365_v15 = vld [vmem:[%s1804_s20 + $0x508] sm:$0xff] }
  0xaf   : > { %687 = vmatmul.mubr.f32.gmra.mrb[52].mxu1 %v360_v16  ;;  %v362_v16 = vld [vmem:[%s1804_s20 + $0x4f0] sm:$0xff] }
  0xb0   : > { %1057 = vmatmul.mubr.f32.gmra.mrb[20].mxu0 %v268_v18  ;;  %691 = vmatprep.mubr.f32.mxu1 %v367_v17  ;;  %v364_v18 = vld [vmem:[%s1804_s20 + $0x500] sm:$0xff]  ;;  %v369_v17 = vld [vmem:[%s1804_s20 + $0x528] sm:$0xff] }
  0xb1   : > { %1061 = vmatprep.mubr.f32.mxu0 %v275_v5  ;;  %v371_v5 = vld [vmem:[%s1804_s20 + $0x538] sm:$0xff] }
  0xb3   : > { %692 = vmatmul.mubr.f32.gmra.mrb[54].mxu1 %v366_v19  ;;  %v368_v19 = vld [vmem:[%s1804_s20 + $0x520] sm:$0xff] }
  0xb4   : > { %1062 = vmatmul.mubr.f32.gmra.mrb[22].mxu0 %v274_v21  ;;  %696 = vmatprep.mubr.f32.mxu1 %v373_v22  ;;  %v370_v21 = vld [vmem:[%s1804_s20 + $0x530] sm:$0xff]  ;;  %v375_v22 = vld [vmem:[%s1804_s20 + $0x558] sm:$0xff] }
  0xb5   : > { %1066 = vmatprep.mubr.f32.mxu0 %v281_v23  ;;  %v377_v23 = vld [vmem:[%s1804_s20 + $0x568] sm:$0xff] }
  0xb7   : > { %697 = vmatmul.mubr.f32.gmra.mrb[56].mxu1 %v372_v25  ;;  %v374_v25 = vld [vmem:[%s1804_s20 + $0x550] sm:$0xff] }
  0xb8   : > { %1067 = vmatmul.mubr.f32.gmra.mrb[24].mxu0 %v280_v26  ;;  %701 = vmatprep.mubr.f32.mxu1 %v379_v13  ;;  %v376_v26 = vld [vmem:[%s1804_s20 + $0x560] sm:$0xff]  ;;  %v381_v13 = vld [vmem:[%s1804_s20 + $0x588] sm:$0xff] }
  0xb9   : > { %1071 = vmatprep.mubr.f32.mxu0 %v287_v28  ;;  %v383_v28 = vld [vmem:[%s1804_s20 + $0x598] sm:$0xff] }
  0xbb   : > { %702 = vmatmul.mubr.f32.gmra.mrb[58].mxu1 %v378_v29  ;;  %v380_v29 = vld [vmem:[%s1804_s20 + $0x580] sm:$0xff] }
  0xbc   : > { %1072 = vmatmul.mubr.f32.gmra.mrb[26].mxu0 %v286_v24  ;;  %706 = vmatprep.mubr.f32.mxu1 %v385_v31  ;;  %v382_v24 = vld [vmem:[%s1804_s20 + $0x590] sm:$0xff]  ;;  %v387_v31 = vld [vmem:[%s1804_s20 + $0x5b8] sm:$0xff] }
  0xbd   : > { %1076 = vmatprep.mubr.f32.mxu0 %v293_v32  ;;  %v389_v32 = vld [vmem:[%s1804_s20 + $0x5c8] sm:$0xff] }
  0xbf   : > { %707 = vmatmul.mubr.f32.gmra.mrb[60].mxu1 %v384_v33  ;;  %v386_v33 = vld [vmem:[%s1804_s20 + $0x5b0] sm:$0xff] }
  0xc0   : > { %1077 = vmatmul.mubr.f32.gmra.mrb[28].mxu0 %v292_v20  ;;  %711 = vmatprep.mubr.f32.mxu1 %v391_v35  ;;  %v388_v20 = vld [vmem:[%s1804_s20 + $0x5c0] sm:$0xff]  ;;  %v393_v35 = vld [vmem:[%s1804_s20 + $0x5e8] sm:$0xff] }
  0xc1   : > { %1081 = vmatprep.mubr.f32.mxu0 %v299_v37  ;;  %v395_v37 = vld [vmem:[%s1804_s20 + $0x5f8] sm:$0xff] }
  0xc3   : > { %712 = vmatmul.mubr.f32.gmra.mrb[62].mxu1 %v390_v38  ;;  %v392_v38 = vld [vmem:[%s1804_s20 + $0x5e0] sm:$0xff] }
  0xc4   : > { %1082 = vmatmul.mubr.f32.gmra.mrb[30].mxu0 %v298_v30  ;;  %861 = vmatprep.mubr.f32.mxu1 %v303_v39  ;;  %v394_v30 = vld [vmem:[%s1804_s20 + $0x5f0] sm:$0xff] }
  0xc5   : > { %1086 = vmatprep.mubr.f32.mxu0 %v305_v40 }
  0xc7   : > { %862 = vmatmul.mubr.f32.vlgmr.msra.gmra.mrb[32].mxu1 %v302_v27 }
  0xc8   : > { %1087 = vmatmul.mubr.f32.gmra.mrb[32].mxu0 %v304_v42  ;;  %866 = vmatprep.mubr.f32.mxu1 %v309_v43 }
  0xc9   : > { %1091 = vmatprep.mubr.f32.mxu0 %v311_v45 }
  0xcb   : > { %867 = vmatmul.mubr.f32.gmra.mrb[34].mxu1 %v308_v3 }
  0xcc   : > { %1092 = vmatmul.mubr.f32.gmra.mrb[34].mxu0 %v310_v34  ;;  %871 = vmatprep.mubr.f32.mxu1 %v315_v46 }
  0xcd   : > { %1096 = vmatprep.mubr.f32.mxu0 %v317_v36 }
  0xcf   : > { %872 = vmatmul.mubr.f32.gmra.mrb[36].mxu1 %v314_v47 }
  0xd0   : > { %1097 = vmatmul.mubr.f32.gmra.mrb[36].mxu0 %v316_v41  ;;  %876 = vmatprep.mubr.f32.mxu1 %v321_v48 }
  0xd1   : > { %1101 = vmatprep.mubr.f32.mxu0 %v323_v49 }
  0xd3   : > { %877 = vmatmul.mubr.f32.gmra.mrb[38].mxu1 %v320_v51 }
  0xd4   : > { %1102 = vmatmul.mubr.f32.gmra.mrb[38].mxu0 %v322_v52  ;;  %881 = vmatprep.mubr.f32.mxu1 %v327_v53 }
  0xd5   : > { %1106 = vmatprep.mubr.f32.mxu0 %v329_v44 }
  0xd7   : > { %882 = vmatmul.mubr.f32.gmra.mrb[40].mxu1 %v326_v54 }
  0xd8   : > { %1107 = vmatmul.mubr.f32.gmra.mrb[40].mxu0 %v328_v55  ;;  %886 = vmatprep.mubr.f32.mxu1 %v333_v57 }
  0xd9   : > { %1111 = vmatprep.mubr.f32.mxu0 %v335_v58 }
  0xdb   : > { %887 = vmatmul.mubr.f32.gmra.mrb[42].mxu1 %v332_v59 }
  0xdc   : > { %1112 = vmatmul.mubr.f32.gmra.mrb[42].mxu0 %v334_v8  ;;  %891 = vmatprep.mubr.f32.mxu1 %v339_v50 }
  0xdd   : > { %1116 = vmatprep.mubr.f32.mxu0 %v341_v60 }
  0xdf   : > { %892 = vmatmul.mubr.f32.gmra.mrb[44].mxu1 %v338_v61 }
  0xe0   : > { %1117 = vmatmul.mubr.f32.gmra.mrb[44].mxu0 %v340_v63  ;;  %896 = vmatprep.mubr.f32.mxu1 %v345_v0 }
  0xe1   : > { %1121 = vmatprep.mubr.f32.mxu0 %v347_v1 }
  0xe3   : > { %897 = vmatmul.mubr.f32.gmra.mrb[46].mxu1 %v344_v2 }
  0xe4   : > { %1122 = vmatmul.mubr.f32.gmra.mrb[46].mxu0 %v346_v56  ;;  %901 = vmatprep.mubr.f32.mxu1 %v351_v4 }
  0xe5   : > { %1126 = vmatprep.mubr.f32.mxu0 %v353_v6  ;;  %v2341_v6 = vld [vmem:[%s2465_s2] ss:$0 sm:$0xff] }
  0xe7   : > { %902 = vmatmul.mubr.f32.gmra.mrb[48].mxu1 %v350_v12 }
  0xe8   : > { %1127 = vmatmul.mubr.f32.gmra.mrb[48].mxu0 %v352_v7  ;;  %906 = vmatprep.mubr.f32.mxu1 %v357_v9  ;;  %v2346_v9 = vld [vmem:[%s2466_s3] ss:$0 sm:$0xff] }
  0xe9   : > { %1131 = vmatprep.mubr.f32.mxu0 %v359_v10 }
  0xeb   : > { %907 = vmatmul.mubr.f32.gmra.mrb[50].mxu1 %v356_v62 }
  0xec   : > { %1132 = vmatmul.mubr.f32.gmra.mrb[50].mxu0 %v358_v11  ;;  %911 = vmatprep.mubr.f32.mxu1 %v363_v14 }
  0xed   : > { %1136 = vmatprep.mubr.f32.mxu0 %v365_v15 }
  0xef   : > { %912 = vmatmul.mubr.f32.gmra.mrb[52].mxu1 %v362_v16 }
  0xf0   : > { %1137 = vmatmul.mubr.f32.gmra.mrb[52].mxu0 %v364_v18  ;;  %916 = vmatprep.mubr.f32.mxu1 %v369_v17 }
  0xf1   : > { %1141 = vmatprep.mubr.f32.mxu0 %v371_v5 }
  0xf3   : > { %917 = vmatmul.mubr.f32.gmra.mrb[54].mxu1 %v368_v19 }
  0xf4   : > { %1142 = vmatmul.mubr.f32.gmra.mrb[54].mxu0 %v370_v21  ;;  %921 = vmatprep.mubr.f32.mxu1 %v375_v22 }
  0xf5   : > { %1146 = vmatprep.mubr.f32.mxu0 %v377_v23 }
  0xf7   : > { %922 = vmatmul.mubr.f32.gmra.mrb[56].mxu1 %v374_v25 }
  0xf8   : > { %1147 = vmatmul.mubr.f32.gmra.mrb[56].mxu0 %v376_v26  ;;  %926 = vmatprep.mubr.f32.mxu1 %v381_v13 }
  0xf9   : > { %1151 = vmatprep.mubr.f32.mxu0 %v383_v28 }
  0xfb   : > { %927 = vmatmul.mubr.f32.gmra.mrb[58].mxu1 %v380_v29 }
  0xfc   : > { %1152 = vmatmul.mubr.f32.gmra.mrb[58].mxu0 %v382_v24  ;;  %931 = vmatprep.mubr.f32.mxu1 %v387_v31 }
  0xfd   : > { %1156 = vmatprep.mubr.f32.mxu0 %v389_v32 }
  0xff   : > { %932 = vmatmul.mubr.f32.gmra.mrb[60].mxu1 %v386_v33 }
 0x100   : > { %1157 = vmatmul.mubr.f32.gmra.mrb[60].mxu0 %v388_v20  ;;  %936 = vmatprep.mubr.f32.mxu1 %v393_v35 }
 0x101   : > { %1161 = vmatprep.mubr.f32.mxu0 %v395_v37 }
 0x103   : > { %937 = vmatmul.mubr.f32.gmra.mrb[62].mxu1 %v392_v38 }
 0x104   : > { %1162 = vmatmul.mubr.f32.gmra.mrb[62].mxu0 %v394_v30 }
 0x11a   : > { %v558_v39 = vpop.f32.mrb[0].mxu1 }
 0x11b   : > { %v560_v40 = vpop.f32.mrb[1].mxu1 }
 0x11e   : > { %v563_v27 = vpop.f32.mrb[2].mxu1 }
 0x11f   : > { %v565_v42 = vpop.f32.mrb[3].mxu1 }
 0x122   : > { %v568_v43 = vpop.f32.mrb[4].mxu1 }
 0x123   : > { %v570_v45 = vpop.f32.mrb[5].mxu1 }
 0x126   : > { %v573_v3 = vpop.f32.mrb[6].mxu1 }
 0x127   : > { %v575_v34 = vpop.f32.mrb[7].mxu1 }
 0x12a   : > { %v578_v46 = vpop.f32.mrb[8].mxu1 }
 0x12b   : > { %v580_v36 = vpop.f32.mrb[9].mxu1 }
 0x12e   : > { %v583_v47 = vpop.f32.mrb[10].mxu1 }
 0x12f   : > { %v585_v41 = vpop.f32.mrb[11].mxu1 }
 0x132   : > { %v2318_v48 = vpop.f32.mrb[12].mxu1 }
 0x133   : > { %v590_v49 = vpop.f32.mrb[13].mxu1 }
 0x136   : > { %v2320_v51 = vpop.f32.mrb[14].mxu1 }
 0x137   : > { %v595_v52 = vpop.f32.mrb[15].mxu1 }
 0x13a   : > { %v2322_v53 = vpop.f32.mrb[16].mxu1 }
 0x13b   : > { %v600_v44 = vpop.f32.mrb[17].mxu1 }
 0x13e   : > { %v2324_v54 = vpop.f32.mrb[18].mxu1 }
 0x13f   : > { %v605_v55 = vpop.f32.mrb[19].mxu1 }
 0x142   : > { %v2326_v57 = vpop.f32.mrb[20].mxu1 }
 0x143   : > { %v610_v58 = vpop.f32.mrb[21].mxu1 }
 0x146   : > { %v2328_v59 = vpop.f32.mrb[22].mxu1 }
 0x147   : > { %v615_v8 = vpop.f32.mrb[23].mxu1 }
 0x14a   : > { %v2330_v50 = vpop.f32.mrb[24].mxu1 }
 0x14b   : > { %v620_v60 = vpop.f32.mrb[25].mxu1 }
 0x14e   : > { %v2332_v61 = vpop.f32.mrb[26].mxu1 }
 0x14f   : > { %v625_v63 = vpop.f32.mrb[27].mxu1 }
 0x152   : > { %v2334_v0 = vpop.f32.mrb[28].mxu1 }
 0x153   : > { %v630_v1 = vpop.f32.mrb[29].mxu1 }
 0x156   : > { %v2336_v2 = vpop.f32.mrb[30].mxu1 }
 0x157   : > { %v635_v56 = vpop.f32.mrb[31].mxu1 }
 0x15b   : > { %v1008_v4 = vpop.f32.mrb[0].mxu0 }
 0x15c   : > { %v1554_v12 = vadd.f32 %v1008_v4, %v558_v39  ;;  %v1010_v7 = vpop.f32.mrb[1].mxu0 }
 0x15e   : > { %v1174_v10 = vmul.f32 %v1554_v12, %v2341_v6 }
 0x15f   : > { %v1013_v62 = vpop.f32.mrb[2].mxu0 }
 0x160   : > { %v1213_v11 = vadd.f32 %v2346_v9, %v1174_v10  ;;  %v1555_v14 = vadd.f32 %v1013_v62, %v563_v27  ;;  %v1015_v15 = vpop.f32.mrb[3].mxu0 }
 0x162   : > { %v1245_v16 = vmax.f32 %v1213_v11, 0.0  ;;  %v1175_v18 = vmul.f32 %v1555_v14, %v2341_v6 }
 0x163   : > { %v1018_v17 = vpop.f32.mrb[4].mxu0 }
 0x164   : > { %1277 = vst [vmem:[%s2354_s8] sm:$0xff] %v1245_v16  ;;  %v1214_v5 = vadd.f32 %v2346_v9, %v1175_v18  ;;  %v1556_v19 = vadd.f32 %v1018_v17, %v568_v43  ;;  %v1020_v21 = vpop.f32.mrb[5].mxu0 }
 0x166   : > { %v1246_v22 = vmax.f32 %v1214_v5, 0.0  ;;  %v1176_v23 = vmul.f32 %v1556_v19, %v2341_v6 }
 0x167   : > { %v1023_v25 = vpop.f32.mrb[6].mxu0 }
 0x168   : > { %1278 = vst [vmem:[%s2354_s8 + $0x8] sm:$0xff] %v1246_v22  ;;  %v1215_v26 = vadd.f32 %v2346_v9, %v1176_v23  ;;  %v1557_v13 = vadd.f32 %v1023_v25, %v573_v3  ;;  %v1025_v28 = vpop.f32.mrb[7].mxu0 }
 0x16a   : > { %v1247_v29 = vmax.f32 %v1215_v26, 0.0  ;;  %v1177_v24 = vmul.f32 %v1557_v13, %v2341_v6 }
 0x16b   : > { %v1028_v31 = vpop.f32.mrb[8].mxu0 }
 0x16c   : > { %1279 = vst [vmem:[%s2354_s8 + $0x10] sm:$0xff] %v1247_v29  ;;  %v1216_v32 = vadd.f32 %v2346_v9, %v1177_v24  ;;  %v1558_v33 = vadd.f32 %v1028_v31, %v578_v46  ;;  %v1030_v20 = vpop.f32.mrb[9].mxu0 }
 0x16e   : > { %v1248_v35 = vmax.f32 %v1216_v32, 0.0  ;;  %v1178_v37 = vmul.f32 %v1558_v33, %v2341_v6 }
 0x16f   : > { %v1033_v38 = vpop.f32.mrb[10].mxu0 }
 0x170   : > { %1280 = vst [vmem:[%s2354_s8 + $0x18] sm:$0xff] %v1248_v35  ;;  %v1217_v30 = vadd.f32 %v2346_v9, %v1178_v37  ;;  %v1559_v39 = vadd.f32 %v1033_v38, %v583_v47  ;;  %v1035_v40 = vpop.f32.mrb[11].mxu0 }
 0x172   : > { %v1249_v27 = vmax.f32 %v1217_v30, 0.0  ;;  %v1179_v42 = vmul.f32 %v1559_v39, %v2341_v6 }
 0x173   : > { %v1038_v43 = vpop.f32.mrb[12].mxu0 }
 0x174   : > { %1281 = vst [vmem:[%s2354_s8 + $0x20] sm:$0xff] %v1249_v27  ;;  %v1218_v45 = vadd.f32 %v2346_v9, %v1179_v42  ;;  %v1560_v3 = vadd.f32 %v1038_v43, %v2318_v48  ;;  %v1040_v34 = vpop.f32.mrb[13].mxu0 }
 0x176   : > { %v1250_v46 = vmax.f32 %v1218_v45, 0.0  ;;  %v1180_v36 = vmul.f32 %v1560_v3, %v2341_v6 }
 0x177   : > { %v1043_v41 = vpop.f32.mrb[14].mxu0 }
 0x178   : > { %1282 = vst [vmem:[%s2354_s8 + $0x28] sm:$0xff] %v1250_v46  ;;  %v1219_v47 = vadd.f32 %v2346_v9, %v1180_v36  ;;  %v1561_v49 = vadd.f32 %v1043_v41, %v2320_v51  ;;  %v1045_v52 = vpop.f32.mrb[15].mxu0 }
 0x17a   : > { %v1251_v44 = vmax.f32 %v1219_v47, 0.0  ;;  %v1181_v55 = vmul.f32 %v1561_v49, %v2341_v6 }
 0x17b   : > { %v1048_v58 = vpop.f32.mrb[16].mxu0 }
 0x17c   : > { %1283 = vst [vmem:[%s2354_s8 + $0x30] sm:$0xff] %v1251_v44  ;;  %v1220_v48 = vadd.f32 %v2346_v9, %v1181_v55  ;;  %v1562_v8 = vadd.f32 %v1048_v58, %v2322_v53  ;;  %v1050_v60 = vpop.f32.mrb[17].mxu0 }
 0x17e   : > { %v1252_v63 = vmax.f32 %v1220_v48, 0.0  ;;  %v1182_v1 = vmul.f32 %v1562_v8, %v2341_v6 }
 0x17f   : > { %v1053_v56 = vpop.f32.mrb[18].mxu0 }
 0x180   : > { %1284 = vst [vmem:[%s2354_s8 + $0x38] sm:$0xff] %v1252_v63  ;;  %v1221_v51 = vadd.f32 %v2346_v9, %v1182_v1  ;;  %v1563_v4 = vadd.f32 %v1053_v56, %v2324_v54  ;;  %v1055_v12 = vpop.f32.mrb[19].mxu0 }
 0x182   : > { %v1253_v7 = vmax.f32 %v1221_v51, 0.0  ;;  %v1183_v10 = vmul.f32 %v1563_v4, %v2341_v6 }
 0x183   : > { %v1058_v62 = vpop.f32.mrb[20].mxu0 }
 0x184   : > { %1285 = vst [vmem:[%s2354_s8 + $0x40] sm:$0xff] %v1253_v7  ;;  %v1222_v53 = vadd.f32 %v2346_v9, %v1183_v10  ;;  %v1564_v11 = vadd.f32 %v1058_v62, %v2326_v57  ;;  %v1060_v14 = vpop.f32.mrb[21].mxu0 }
 0x186   : > { %v1254_v15 = vmax.f32 %v1222_v53, 0.0  ;;  %v1184_v16 = vmul.f32 %v1564_v11, %v2341_v6 }
 0x187   : > { %v1063_v18 = vpop.f32.mrb[22].mxu0 }
 0x188   : > { %1286 = vst [vmem:[%s2354_s8 + $0x48] sm:$0xff] %v1254_v15  ;;  %v1223_v54 = vadd.f32 %v2346_v9, %v1184_v16  ;;  %v1565_v17 = vadd.f32 %v1063_v18, %v2328_v59  ;;  %v1065_v5 = vpop.f32.mrb[23].mxu0 }
 0x18a   : > { %v1255_v19 = vmax.f32 %v1223_v54, 0.0  ;;  %v1185_v21 = vmul.f32 %v1565_v17, %v2341_v6 }
 0x18b   : > { %v1068_v22 = vpop.f32.mrb[24].mxu0 }
 0x18c   : > { %1287 = vst [vmem:[%s2354_s8 + $0x50] sm:$0xff] %v1255_v19  ;;  %v1224_v57 = vadd.f32 %v2346_v9, %v1185_v21  ;;  %v1566_v23 = vadd.f32 %v1068_v22, %v2330_v50  ;;  %v1070_v25 = vpop.f32.mrb[25].mxu0 }
 0x18e   : > { %v1256_v26 = vmax.f32 %v1224_v57, 0.0  ;;  %v1186_v13 = vmul.f32 %v1566_v23, %v2341_v6 }
 0x18f   : > { %v1073_v28 = vpop.f32.mrb[26].mxu0 }
 0x190   : > { %1288 = vst [vmem:[%s2354_s8 + $0x58] sm:$0xff] %v1256_v26  ;;  %v1225_v59 = vadd.f32 %v2346_v9, %v1186_v13  ;;  %v1567_v29 = vadd.f32 %v1073_v28, %v2332_v61  ;;  %v1075_v24 = vpop.f32.mrb[27].mxu0 }
 0x192   : > { %v1257_v31 = vmax.f32 %v1225_v59, 0.0  ;;  %v1187_v32 = vmul.f32 %v1567_v29, %v2341_v6 }
 0x193   : > { %v1078_v33 = vpop.f32.mrb[28].mxu0 }
 0x194   : > { %1289 = vst [vmem:[%s2354_s8 + $0x60] sm:$0xff] %v1257_v31  ;;  %v1226_v50 = vadd.f32 %v2346_v9, %v1187_v32  ;;  %v1568_v20 = vadd.f32 %v1078_v33, %v2334_v0  ;;  %v1080_v35 = vpop.f32.mrb[29].mxu0 }
 0x196   : > { %v1258_v37 = vmax.f32 %v1226_v50, 0.0  ;;  %v1188_v38 = vmul.f32 %v1568_v20, %v2341_v6 }
 0x197   : > { %v1083_v30 = vpop.f32.mrb[30].mxu0 }
 0x198   : > { %1290 = vst [vmem:[%s2354_s8 + $0x68] sm:$0xff] %v1258_v37  ;;  %v1227_v39 = vadd.f32 %v2346_v9, %v1188_v38  ;;  %v1569_v61 = vadd.f32 %v1083_v30, %v2336_v2  ;;  %v1085_v40 = vpop.f32.mrb[31].mxu0 }
 0x19a   : > { %v1259_v27 = vmax.f32 %v1227_v39, 0.0  ;;  %v1189_v42 = vmul.f32 %v1569_v61, %v2341_v6  ;;  %v863_v43 = vpop.f32.mrb[32].mxu1 }
 0x19b   : > { %v1088_v45 = vpop.f32.mrb[32].mxu0  ;;  %v865_v3 = vpop.f32.mrb[33].mxu1 }
 0x19c   : > { %1291 = vst [vmem:[%s2354_s8 + $0x70] sm:$0xff] %v1259_v27  ;;  %v1228_v0 = vadd.f32 %v2346_v9, %v1189_v42  ;;  %v1570_v34 = vadd.f32 %v1088_v45, %v863_v43  ;;  %v1090_v46 = vpop.f32.mrb[33].mxu0 }
 0x19e   : > { %v1260_v36 = vmax.f32 %v1228_v0, 0.0  ;;  %v1190_v41 = vmul.f32 %v1570_v34, %v2341_v6  ;;  %v868_v47 = vpop.f32.mrb[34].mxu1 }
 0x19f   : > { %v1093_v49 = vpop.f32.mrb[34].mxu0  ;;  %v870_v2 = vpop.f32.mrb[35].mxu1 }
 0x1a0   : > { %1292 = vst [vmem:[%s2354_s8 + $0x78] sm:$0xff] %v1260_v36  ;;  %v1229_v52 = vadd.f32 %v2346_v9, %v1190_v41  ;;  %v1571_v44 = vadd.f32 %v1093_v49, %v868_v47  ;;  %v1095_v55 = vpop.f32.mrb[35].mxu0 }
 0x1a2   : > { %v1261_v58 = vmax.f32 %v1229_v52, 0.0  ;;  %v1191_v48 = vmul.f32 %v1571_v44, %v2341_v6  ;;  %v873_v8 = vpop.f32.mrb[36].mxu1 }
 0x1a3   : > { %v1098_v60 = vpop.f32.mrb[36].mxu0  ;;  %v875_v63 = vpop.f32.mrb[37].mxu1 }
 0x1a4   : > { %1293 = vst [vmem:[%s2354_s8 + $0x80] sm:$0xff] %v1261_v58  ;;  %v1230_v1 = vadd.f32 %v2346_v9, %v1191_v48  ;;  %v1572_v56 = vadd.f32 %v1098_v60, %v873_v8  ;;  %v1100_v51 = vpop.f32.mrb[37].mxu0 }
 0x1a6   : > { %v1262_v4 = vmax.f32 %v1230_v1, 0.0  ;;  %v1192_v12 = vmul.f32 %v1572_v56, %v2341_v6  ;;  %v878_v7 = vpop.f32.mrb[38].mxu1 }
 0x1a7   : > { %v1103_v10 = vpop.f32.mrb[38].mxu0  ;;  %v880_v62 = vpop.f32.mrb[39].mxu1 }
 0x1a8   : > { %1294 = vst [vmem:[%s2354_s8 + $0x88] sm:$0xff] %v1262_v4  ;;  %v1231_v53 = vadd.f32 %v2346_v9, %v1192_v12  ;;  %v1573_v11 = vadd.f32 %v1103_v10, %v878_v7  ;;  %v1105_v14 = vpop.f32.mrb[39].mxu0 }
 0x1aa   : > { %v1263_v15 = vmax.f32 %v1231_v53, 0.0  ;;  %v1193_v16 = vmul.f32 %v1573_v11, %v2341_v6  ;;  %v883_v18 = vpop.f32.mrb[40].mxu1 }
 0x1ab   : > { %v1108_v54 = vpop.f32.mrb[40].mxu0  ;;  %v885_v17 = vpop.f32.mrb[41].mxu1 }
 0x1ac   : > { %1295 = vst [vmem:[%s2354_s8 + $0x90] sm:$0xff] %v1263_v15  ;;  %v1232_v5 = vadd.f32 %v2346_v9, %v1193_v16  ;;  %v1574_v19 = vadd.f32 %v1108_v54, %v883_v18  ;;  %v1110_v21 = vpop.f32.mrb[41].mxu0 }
 0x1ae   : > { %v1264_v22 = vmax.f32 %v1232_v5, 0.0  ;;  %v1194_v57 = vmul.f32 %v1574_v19, %v2341_v6  ;;  %v888_v23 = vpop.f32.mrb[42].mxu1 }
 0x1af   : > { %v1113_v25 = vpop.f32.mrb[42].mxu0  ;;  %v890_v26 = vpop.f32.mrb[43].mxu1 }
 0x1b0   : > { %1296 = vst [vmem:[%s2354_s8 + $0x98] sm:$0xff] %v1264_v22  ;;  %v1233_v13 = vadd.f32 %v2346_v9, %v1194_v57  ;;  %v1575_v28 = vadd.f32 %v1113_v25, %v888_v23  ;;  %v1115_v59 = vpop.f32.mrb[43].mxu0 }
 0x1b2   : > { %v1265_v29 = vmax.f32 %v1233_v13, 0.0  ;;  %v1195_v24 = vmul.f32 %v1575_v28, %v2341_v6  ;;  %v893_v31 = vpop.f32.mrb[44].mxu1 }
 0x1b3   : > { %v1118_v32 = vpop.f32.mrb[44].mxu0  ;;  %v895_v33 = vpop.f32.mrb[45].mxu1 }
 0x1b4   : > { %1297 = vst [vmem:[%s2354_s8 + $0xa0] sm:$0xff] %v1265_v29  ;;  %v1234_v50 = vadd.f32 %v2346_v9, %v1195_v24  ;;  %v1576_v20 = vadd.f32 %v1118_v32, %v893_v31  ;;  %v1120_v35 = vpop.f32.mrb[45].mxu0 }
 0x1b6   : > { %v1266_v37 = vmax.f32 %v1234_v50, 0.0  ;;  %v1196_v38 = vmul.f32 %v1576_v20, %v2341_v6  ;;  %v898_v30 = vpop.f32.mrb[46].mxu1 }
 0x1b7   : > { %v1123_v39 = vpop.f32.mrb[46].mxu0  ;;  %v900_v61 = vpop.f32.mrb[47].mxu1 }
 0x1b8   : > { %1298 = vst [vmem:[%s2354_s8 + $0xa8] sm:$0xff] %v1266_v37  ;;  %v1235_v40 = vadd.f32 %v2346_v9, %v1196_v38  ;;  %v1577_v27 = vadd.f32 %v1123_v39, %v898_v30  ;;  %v1125_v42 = vpop.f32.mrb[47].mxu0 }
 0x1ba   : > { %v1267_v43 = vmax.f32 %v1235_v40, 0.0  ;;  %v1197_v45 = vmul.f32 %v1577_v27, %v2341_v6  ;;  %v903_v3 = vpop.f32.mrb[48].mxu1 }
 0x1bb   : > { %v1128_v0 = vpop.f32.mrb[48].mxu0  ;;  %v905_v34 = vpop.f32.mrb[49].mxu1 }
 0x1bc   : > { %1299 = vst [vmem:[%s2354_s8 + $0xb0] sm:$0xff] %v1267_v43  ;;  %v1236_v46 = vadd.f32 %v2346_v9, %v1197_v45  ;;  %v1578_v36 = vadd.f32 %v1128_v0, %v903_v3  ;;  %v1130_v41 = vpop.f32.mrb[49].mxu0 }
 0x1be   : > { %v1268_v47 = vmax.f32 %v1236_v46, 0.0  ;;  %v1198_v49 = vmul.f32 %v1578_v36, %v2341_v6  ;;  %v908_v2 = vpop.f32.mrb[50].mxu1 }
 0x1bf   : > { %v1133_v52 = vpop.f32.mrb[50].mxu0  ;;  %v910_v44 = vpop.f32.mrb[51].mxu1 }
 0x1c0   : > { %1300 = vst [vmem:[%s2354_s8 + $0xb8] sm:$0xff] %v1268_v47  ;;  %v1237_v55 = vadd.f32 %v2346_v9, %v1198_v49  ;;  %v1579_v58 = vadd.f32 %v1133_v52, %v908_v2  ;;  %v1135_v48 = vpop.f32.mrb[51].mxu0 }
 0x1c2   : > { %v1269_v8 = vmax.f32 %v1237_v55, 0.0  ;;  %v1199_v60 = vmul.f32 %v1579_v58, %v2341_v6  ;;  %v913_v63 = vpop.f32.mrb[52].mxu1 }
 0x1c3   : > { %v1138_v1 = vpop.f32.mrb[52].mxu0  ;;  %v915_v56 = vpop.f32.mrb[53].mxu1 }
 0x1c4   : > { %1301 = vst [vmem:[%s2354_s8 + $0xc0] sm:$0xff] %v1269_v8  ;;  %v1238_v51 = vadd.f32 %v2346_v9, %v1199_v60  ;;  %v1580_v4 = vadd.f32 %v1138_v1, %v913_v63  ;;  %v1140_v12 = vpop.f32.mrb[53].mxu0 }
 0x1c6   : > { %v1270_v7 = vmax.f32 %v1238_v51, 0.0  ;;  %v1200_v10 = vmul.f32 %v1580_v4, %v2341_v6  ;;  %v918_v62 = vpop.f32.mrb[54].mxu1 }
 0x1c7   : > { %v1143_v53 = vpop.f32.mrb[54].mxu0  ;;  %v920_v11 = vpop.f32.mrb[55].mxu1 }
 0x1c8   : > { %1302 = vst [vmem:[%s2354_s8 + $0xc8] sm:$0xff] %v1270_v7  ;;  %v1239_v14 = vadd.f32 %v2346_v9, %v1200_v10  ;;  %v1581_v15 = vadd.f32 %v1143_v53, %v918_v62  ;;  %v1145_v16 = vpop.f32.mrb[55].mxu0 }
 0x1ca   : > { %v1271_v18 = vmax.f32 %v1239_v14, 0.0  ;;  %v1201_v54 = vmul.f32 %v1581_v15, %v2341_v6  ;;  %v923_v17 = vpop.f32.mrb[56].mxu1 }
 0x1cb   : > { %v1148_v5 = vpop.f32.mrb[56].mxu0  ;;  %v925_v19 = vpop.f32.mrb[57].mxu1 }
 0x1cc   : > { %1303 = vst [vmem:[%s2354_s8 + $0xd0] sm:$0xff] %v1271_v18  ;;  %v1240_v21 = vadd.f32 %v2346_v9, %v1201_v54  ;;  %v1582_v22 = vadd.f32 %v1148_v5, %v923_v17  ;;  %v1150_v57 = vpop.f32.mrb[57].mxu0 }
 0x1ce   : > { %v1272_v23 = vmax.f32 %v1240_v21, 0.0  ;;  %v1202_v25 = vmul.f32 %v1582_v22, %v2341_v6  ;;  %v928_v26 = vpop.f32.mrb[58].mxu1 }
 0x1cf   : > { %v1153_v13 = vpop.f32.mrb[58].mxu0  ;;  %v930_v28 = vpop.f32.mrb[59].mxu1 }
 0x1d0   : > { %1304 = vst [vmem:[%s2354_s8 + $0xd8] sm:$0xff] %v1272_v23  ;;  %v1241_v59 = vadd.f32 %v2346_v9, %v1202_v25  ;;  %v1583_v29 = vadd.f32 %v1153_v13, %v928_v26  ;;  %v1155_v24 = vpop.f32.mrb[59].mxu0 }
 0x1d2   : > { %v1273_v31 = vmax.f32 %v1241_v59, 0.0  ;;  %v1203_v32 = vmul.f32 %v1583_v29, %v2341_v6  ;;  %v933_v33 = vpop.f32.mrb[60].mxu1 }
 0x1d3   : > { %v1158_v50 = vpop.f32.mrb[60].mxu0  ;;  %v935_v20 = vpop.f32.mrb[61].mxu1 }
 0x1d4   : > { %1305 = vst [vmem:[%s2354_s8 + $0xe0] sm:$0xff] %v1273_v31  ;;  %v1242_v35 = vadd.f32 %v2346_v9, %v1203_v32  ;;  %v1584_v37 = vadd.f32 %v1158_v50, %v933_v33  ;;  %v1160_v38 = vpop.f32.mrb[61].mxu0 }
 0x1d6   : > { %v1274_v30 = vmax.f32 %v1242_v35, 0.0  ;;  %v1204_v39 = vmul.f32 %v1584_v37, %v2341_v6  ;;  %v938_v61 = vpop.f32.mrb[62].mxu1 }
 0x1d7   : > { %v1163_v40 = vpop.f32.mrb[62].mxu0  ;;  %v940_v27 = vpop.f32.mrb[63].mxu1 }
 0x1d8   : > { %1306 = vst [vmem:[%s2354_s8 + $0xe8] sm:$0xff] %v1274_v30  ;;  %v1243_v42 = vadd.f32 %v2346_v9, %v1204_v39  ;;  %v1585_v43 = vadd.f32 %v1163_v40, %v938_v61  ;;  %v1165_v45 = vpop.f32.mrb[63].mxu0 }
 0x1da   : > { %v1275_v3 = vmax.f32 %v1243_v42, 0.0  ;;  %v1205_v0 = vmul.f32 %v1585_v43, %v2341_v6 }
 0x1dc   : > { %1307 = vst [vmem:[%s2354_s8 + $0xf0] sm:$0xff] %v1275_v3  ;;  %v1244_v34 = vadd.f32 %v2346_v9, %v1205_v0 }
 0x1de   : > { %v1276_v46 = vmax.f32 %v1244_v34, 0.0 }
 0x1e0   : > { %1308 = vst [vmem:[%s2354_s8 + $0xf8] sm:$0xff] %v1276_v46 }
 0x1e1 PF: > { %s14_s15 = sadd.s32 1, %s1666_s15  }
 0x1e2   : > { %p11_p4 = scmp.ge.s32.totalorder %s14_s15, 6  }
 0x1e4   :  { %13 = sbr.rel (!%p11_p4) target bundleno = 1 (0x1), region = 66 }

// kernel: lipnet_forward.8
= control target key start
LH: loop header
LB: loop body
LE: loop exit
PB: predicated region body
PF: predicated region fallthrough
CT: control target
= control target key end

     0   :  { %s1558_s0 = inlined_call_operand.vmem [shape: f32[9,256,128], index: 0, kind: input, shape index: {}]   ;;  %s1559_s1 = inlined_call_operand.vmem [shape: f32[256,128], index: 1, kind: output, shape index: {}]  }
   0x1   :  { %v8_v0 = vld [vmem:[%s1558_s0] sm:$0xff]  ;;  %v9_v6 = vld [vmem:[%s1558_s0 + $0x8] sm:$0xff]  ;;  %v10_v15 = vld [vmem:[%s1558_s0 + $0x10] sm:$0xff] }
   0x2   :  { %v40_v1 = vld [vmem:[%s1558_s0 + $0x100] sm:$0xff]  ;;  %v41_v7 = vld [vmem:[%s1558_s0 + $0x108] sm:$0xff]  ;;  %v42_v16 = vld [vmem:[%s1558_s0 + $0x110] sm:$0xff] }
   0x3   :  { %v72_v2 = vld [vmem:[%s1558_s0 + $0x200] sm:$0xff]  ;;  %v296_v3 = vmax.f32 %v8_v0, %v40_v1  ;;  %v73_v8 = vld [vmem:[%s1558_s0 + $0x208] sm:$0xff]  ;;  %v304_v10 = vmax.f32 %v9_v6, %v41_v7  ;;  %v74_v17 = vld [vmem:[%s1558_s0 + $0x210] sm:$0xff]  ;;  %v312_v20 = vmax.f32 %v10_v15, %v42_v16 }
   0x4   :  { %v104_v4 = vld [vmem:[%s1558_s0 + $0x300] sm:$0xff]  ;;  %v105_v13 = vld [vmem:[%s1558_s0 + $0x308] sm:$0xff]  ;;  %v106_v24 = vld [vmem:[%s1558_s0 + $0x310] sm:$0xff] }
   0x5   :  { %v297_v5 = vmax.f32 %v296_v3, %v72_v2  ;;  %v136_v9 = vld [vmem:[%s1558_s0 + $0x400] sm:$0xff]  ;;  %v305_v14 = vmax.f32 %v304_v10, %v73_v8  ;;  %v137_v19 = vld [vmem:[%s1558_s0 + $0x408] sm:$0xff]  ;;  %v313_v26 = vmax.f32 %v312_v20, %v74_v17  ;;  %v11_v27 = vld [vmem:[%s1558_s0 + $0x18] sm:$0xff] }
   0x6   :  { %v168_v11 = vld [vmem:[%s1558_s0 + $0x500] sm:$0xff]  ;;  %v169_v22 = vld [vmem:[%s1558_s0 + $0x508] sm:$0xff]  ;;  %v43_v28 = vld [vmem:[%s1558_s0 + $0x118] sm:$0xff] }
   0x7   :  { %v298_v12 = vmax.f32 %v297_v5, %v104_v4  ;;  %v200_v21 = vld [vmem:[%s1558_s0 + $0x600] sm:$0xff]  ;;  %v306_v23 = vmax.f32 %v305_v14, %v105_v13  ;;  %v75_v29 = vld [vmem:[%s1558_s0 + $0x218] sm:$0xff]  ;;  %v138_v33 = vld [vmem:[%s1558_s0 + $0x410] sm:$0xff]  ;;  %v320_v34 = vmax.f32 %v11_v27, %v43_v28  ;;  %v314_v38 = vmax.f32 %v313_v26, %v106_v24 }
   0x8   :  { %v232_v30 = vld [vmem:[%s1558_s0 + $0x700] sm:$0xff]  ;;  %v201_v36 = vld [vmem:[%s1558_s0 + $0x608] sm:$0xff]  ;;  %v170_v37 = vld [vmem:[%s1558_s0 + $0x510] sm:$0xff] }
   0x9   :  { %v299_v18 = vmax.f32 %v298_v12, %v136_v9  ;;  %v264_v31 = vld [vmem:[%s1558_s0 + $0x800] sm:$0xff]  ;;  %v307_v32 = vmax.f32 %v306_v23, %v137_v19  ;;  %v107_v39 = vld [vmem:[%s1558_s0 + $0x318] sm:$0xff]  ;;  %v321_v41 = vmax.f32 %v320_v34, %v75_v29  ;;  %v233_v46 = vld [vmem:[%s1558_s0 + $0x708] sm:$0xff]  ;;  %v315_v48 = vmax.f32 %v314_v38, %v138_v33 }
   0xa   :  { %v12_v42 = vld [vmem:[%s1558_s0 + $0x20] sm:$0xff]  ;;  %v265_v47 = vld [vmem:[%s1558_s0 + $0x808] sm:$0xff]  ;;  %v139_v49 = vld [vmem:[%s1558_s0 + $0x418] sm:$0xff] }
   0xb   :  { %v300_v25 = vmax.f32 %v299_v18, %v168_v11  ;;  %v308_v40 = vmax.f32 %v307_v32, %v169_v22  ;;  %v44_v43 = vld [vmem:[%s1558_s0 + $0x120] sm:$0xff]  ;;  %v202_v52 = vld [vmem:[%s1558_s0 + $0x610] sm:$0xff]  ;;  %v171_v53 = vld [vmem:[%s1558_s0 + $0x518] sm:$0xff]  ;;  %v322_v54 = vmax.f32 %v321_v41, %v107_v39  ;;  %v316_v57 = vmax.f32 %v315_v48, %v170_v37 }
   0xc   :  { %v76_v44 = vld [vmem:[%s1558_s0 + $0x220] sm:$0xff]  ;;  %v328_v50 = vmax.f32 %v12_v42, %v44_v43  ;;  %v13_v59 = vld [vmem:[%s1558_s0 + $0x28] sm:$0xff]  ;;  %v234_v63 = vld [vmem:[%s1558_s0 + $0x710] sm:$0xff] }
   0xd   :  { %v301_v35 = vmax.f32 %v300_v25, %v200_v21  ;;  %v309_v51 = vmax.f32 %v308_v40, %v201_v36  ;;  %v108_v55 = vld [vmem:[%s1558_s0 + $0x320] sm:$0xff]  ;;  %v45_v60 = vld [vmem:[%s1558_s0 + $0x128] sm:$0xff]  ;;  %v266_v0 = vld [vmem:[%s1558_s0 + $0x810] sm:$0xff]  ;;  %v323_v1 = vmax.f32 %v322_v54, %v139_v49  ;;  %v317_v4 = vmax.f32 %v316_v57, %v202_v52 }
   0xe   :  { %v329_v58 = vmax.f32 %v328_v50, %v76_v44  ;;  %v77_v61 = vld [vmem:[%s1558_s0 + $0x228] sm:$0xff]  ;;  %v140_v2 = vld [vmem:[%s1558_s0 + $0x420] sm:$0xff]  ;;  %v336_v3 = vmax.f32 %v13_v59, %v45_v60  ;;  %v203_v5 = vld [vmem:[%s1558_s0 + $0x618] sm:$0xff] }
   0xf   :  { %v302_v45 = vmax.f32 %v301_v35, %v232_v30  ;;  %v310_v62 = vmax.f32 %v309_v51, %v233_v46  ;;  %v172_v6 = vld [vmem:[%s1558_s0 + $0x520] sm:$0xff]  ;;  %v109_v8 = vld [vmem:[%s1558_s0 + $0x328] sm:$0xff]  ;;  %v324_v10 = vmax.f32 %v323_v1, %v171_v53  ;;  %v14_v12 = vld [vmem:[%s1558_s0 + $0x30] sm:$0xff]  ;;  %v318_v15 = vmax.f32 %v317_v4, %v234_v63 }
  0x10   :  { %v330_v7 = vmax.f32 %v329_v58, %v108_v55  ;;  %v337_v11 = vmax.f32 %v336_v3, %v77_v61  ;;  %v46_v13 = vld [vmem:[%s1558_s0 + $0x130] sm:$0xff]  ;;  %v235_v16 = vld [vmem:[%s1558_s0 + $0x718] sm:$0xff]  ;;  %v141_v19 = vld [vmem:[%s1558_s0 + $0x428] sm:$0xff] }
  0x11   :  { %v303_v56 = vmax.f32 %v302_v45, %v264_v31  ;;  %v311_v9 = vmax.f32 %v310_v62, %v265_v47  ;;  %v78_v14 = vld [vmem:[%s1558_s0 + $0x230] sm:$0xff]  ;;  %v267_v17 = vld [vmem:[%s1558_s0 + $0x818] sm:$0xff]  ;;  %v344_v20 = vmax.f32 %v14_v12, %v46_v13  ;;  %v325_v21 = vmax.f32 %v324_v10, %v203_v5  ;;  %v204_v22 = vld [vmem:[%s1558_s0 + $0x620] sm:$0xff] }
  0x12   :  { %v331_v18 = vmax.f32 %v330_v7, %v140_v2  ;;  %v173_v23 = vld [vmem:[%s1558_s0 + $0x528] sm:$0xff]  ;;  %v338_v24 = vmax.f32 %v337_v11, %v109_v8  ;;  %v110_v25 = vld [vmem:[%s1558_s0 + $0x330] sm:$0xff]  ;;  %v319_v26 = vmax.f32 %v318_v15, %v266_v0  ;;  %v15_v29 = vld [vmem:[%s1558_s0 + $0x38] sm:$0xff] }
  0x13   :  { %552 = vst [vmem:[%s1559_s1] sm:$0xff] %v303_v56  ;;  %553 = vst [vmem:[%s1559_s1 + $0x8] sm:$0xff] %v311_v9  ;;  %v345_v28 = vmax.f32 %v344_v20, %v78_v14  ;;  %v47_v30 = vld [vmem:[%s1558_s0 + $0x138] sm:$0xff]  ;;  %v326_v32 = vmax.f32 %v325_v21, %v235_v16  ;;  %v236_v33 = vld [vmem:[%s1558_s0 + $0x720] sm:$0xff] }
  0x14   :  { %v332_v27 = vmax.f32 %v331_v18, %v172_v6  ;;  %v79_v31 = vld [vmem:[%s1558_s0 + $0x238] sm:$0xff]  ;;  %v268_v34 = vld [vmem:[%s1558_s0 + $0x820] sm:$0xff]  ;;  %v339_v35 = vmax.f32 %v338_v24, %v141_v19  ;;  %v142_v36 = vld [vmem:[%s1558_s0 + $0x430] sm:$0xff]  ;;  %v352_v37 = vmax.f32 %v15_v29, %v47_v30  ;;  %554 = vst [vmem:[%s1559_s1 + $0x10] sm:$0xff] %v319_v26 }
  0x15   :  { %v205_v39 = vld [vmem:[%s1558_s0 + $0x628] sm:$0xff]  ;;  %v174_v40 = vld [vmem:[%s1558_s0 + $0x530] sm:$0xff]  ;;  %v346_v41 = vmax.f32 %v345_v28, %v110_v25  ;;  %v111_v42 = vld [vmem:[%s1558_s0 + $0x338] sm:$0xff]  ;;  %v327_v43 = vmax.f32 %v326_v32, %v267_v17 }
  0x16   :  { %v333_v38 = vmax.f32 %v332_v27, %v204_v22  ;;  %v340_v44 = vmax.f32 %v339_v35, %v173_v23  ;;  %v353_v45 = vmax.f32 %v352_v37, %v79_v31  ;;  %v16_v46 = vld [vmem:[%s1558_s0 + $0x40] sm:$0xff]  ;;  %v237_v50 = vld [vmem:[%s1558_s0 + $0x728] sm:$0xff]  ;;  %v143_v53 = vld [vmem:[%s1558_s0 + $0x438] sm:$0xff] }
  0x17   :  { %v48_v47 = vld [vmem:[%s1558_s0 + $0x140] sm:$0xff]  ;;  %v269_v51 = vld [vmem:[%s1558_s0 + $0x828] sm:$0xff]  ;;  %v347_v52 = vmax.f32 %v346_v41, %v142_v36  ;;  %555 = vst [vmem:[%s1559_s1 + $0x18] sm:$0xff] %v327_v43  ;;  %v206_v56 = vld [vmem:[%s1558_s0 + $0x630] sm:$0xff] }
  0x18   :  { %v80_v48 = vld [vmem:[%s1558_s0 + $0x240] sm:$0xff]  ;;  %v334_v49 = vmax.f32 %v333_v38, %v236_v33  ;;  %v360_v54 = vmax.f32 %v16_v46, %v48_v47  ;;  %v341_v55 = vmax.f32 %v340_v44, %v205_v39  ;;  %v175_v57 = vld [vmem:[%s1558_s0 + $0x538] sm:$0xff]  ;;  %v354_v58 = vmax.f32 %v353_v45, %v111_v42  ;;  %v17_v63 = vld [vmem:[%s1558_s0 + $0x48] sm:$0xff] }
  0x19   :  { %v112_v59 = vld [vmem:[%s1558_s0 + $0x340] sm:$0xff]  ;;  %v348_v61 = vmax.f32 %v347_v52, %v174_v40  ;;  %v49_v0 = vld [vmem:[%s1558_s0 + $0x148] sm:$0xff]  ;;  %v238_v3 = vld [vmem:[%s1558_s0 + $0x730] sm:$0xff] }
  0x1a   :  { %v335_v60 = vmax.f32 %v334_v49, %v268_v34  ;;  %v361_v62 = vmax.f32 %v360_v54, %v80_v48  ;;  %v81_v1 = vld [vmem:[%s1558_s0 + $0x248] sm:$0xff]  ;;  %v342_v2 = vmax.f32 %v341_v55, %v237_v50  ;;  %v270_v4 = vld [vmem:[%s1558_s0 + $0x830] sm:$0xff]  ;;  %v355_v5 = vmax.f32 %v354_v58, %v143_v53  ;;  %v144_v6 = vld [vmem:[%s1558_s0 + $0x440] sm:$0xff] }
  0x1b   :  { %v368_v7 = vmax.f32 %v17_v63, %v49_v0  ;;  %v349_v8 = vmax.f32 %v348_v61, %v206_v56  ;;  %v207_v9 = vld [vmem:[%s1558_s0 + $0x638] sm:$0xff]  ;;  %v176_v10 = vld [vmem:[%s1558_s0 + $0x540] sm:$0xff]  ;;  %v113_v12 = vld [vmem:[%s1558_s0 + $0x348] sm:$0xff] }
  0x1c   :  { %556 = vst [vmem:[%s1559_s1 + $0x20] sm:$0xff] %v335_v60  ;;  %v362_v11 = vmax.f32 %v361_v62, %v112_v59  ;;  %v343_v13 = vmax.f32 %v342_v2, %v269_v51  ;;  %v356_v14 = vmax.f32 %v355_v5, %v175_v57  ;;  %v18_v16 = vld [vmem:[%s1558_s0 + $0x50] sm:$0xff]  ;;  %v239_v20 = vld [vmem:[%s1558_s0 + $0x738] sm:$0xff]  ;;  %v145_v23 = vld [vmem:[%s1558_s0 + $0x448] sm:$0xff] }
  0x1d   :  { %v369_v15 = vmax.f32 %v368_v7, %v81_v1  ;;  %v50_v17 = vld [vmem:[%s1558_s0 + $0x150] sm:$0xff]  ;;  %v350_v19 = vmax.f32 %v349_v8, %v238_v3  ;;  %v271_v21 = vld [vmem:[%s1558_s0 + $0x838] sm:$0xff]  ;;  %v208_v26 = vld [vmem:[%s1558_s0 + $0x640] sm:$0xff] }
  0x1e   :  { %v82_v18 = vld [vmem:[%s1558_s0 + $0x250] sm:$0xff]  ;;  %v363_v22 = vmax.f32 %v362_v11, %v144_v6  ;;  %v376_v24 = vmax.f32 %v18_v16, %v50_v17  ;;  %557 = vst [vmem:[%s1559_s1 + $0x28] sm:$0xff] %v343_v13  ;;  %v357_v25 = vmax.f32 %v356_v14, %v207_v9  ;;  %v177_v27 = vld [vmem:[%s1558_s0 + $0x548] sm:$0xff]  ;;  %v19_v33 = vld [vmem:[%s1558_s0 + $0x58] sm:$0xff] }
  0x1f   :  { %v370_v28 = vmax.f32 %v369_v15, %v113_v12  ;;  %v114_v29 = vld [vmem:[%s1558_s0 + $0x350] sm:$0xff]  ;;  %v351_v30 = vmax.f32 %v350_v19, %v270_v4  ;;  %v51_v34 = vld [vmem:[%s1558_s0 + $0x158] sm:$0xff]  ;;  %v240_v37 = vld [vmem:[%s1558_s0 + $0x740] sm:$0xff] }
  0x20   :  { %v364_v31 = vmax.f32 %v363_v22, %v176_v10  ;;  %v377_v32 = vmax.f32 %v376_v24, %v82_v18  ;;  %v83_v35 = vld [vmem:[%s1558_s0 + $0x258] sm:$0xff]  ;;  %v358_v36 = vmax.f32 %v357_v25, %v239_v20  ;;  %v272_v38 = vld [vmem:[%s1558_s0 + $0x840] sm:$0xff]  ;;  %v146_v40 = vld [vmem:[%s1558_s0 + $0x450] sm:$0xff]  ;;  %v384_v41 = vmax.f32 %v19_v33, %v51_v34 }
  0x21   :  { %v371_v39 = vmax.f32 %v370_v28, %v145_v23  ;;  %558 = vst [vmem:[%s1559_s1 + $0x30] sm:$0xff] %v351_v30  ;;  %v209_v43 = vld [vmem:[%s1558_s0 + $0x648] sm:$0xff]  ;;  %v178_v44 = vld [vmem:[%s1558_s0 + $0x550] sm:$0xff]  ;;  %v115_v46 = vld [vmem:[%s1558_s0 + $0x358] sm:$0xff] }
  0x22   :  { %v365_v42 = vmax.f32 %v364_v31, %v208_v26  ;;  %v378_v45 = vmax.f32 %v377_v32, %v114_v29  ;;  %v359_v47 = vmax.f32 %v358_v36, %v271_v21  ;;  %v385_v49 = vmax.f32 %v384_v41, %v83_v35  ;;  %v20_v50 = vld [vmem:[%s1558_s0 + $0x60] sm:$0xff]  ;;  %v241_v54 = vld [vmem:[%s1558_s0 + $0x748] sm:$0xff]  ;;  %v147_v57 = vld [vmem:[%s1558_s0 + $0x458] sm:$0xff] }
  0x23   :  { %v372_v48 = vmax.f32 %v371_v39, %v177_v27  ;;  %v52_v51 = vld [vmem:[%s1558_s0 + $0x160] sm:$0xff]  ;;  %v273_v55 = vld [vmem:[%s1558_s0 + $0x848] sm:$0xff]  ;;  %v210_v60 = vld [vmem:[%s1558_s0 + $0x650] sm:$0xff] }
  0x24   :  { %v84_v52 = vld [vmem:[%s1558_s0 + $0x260] sm:$0xff]  ;;  %v366_v53 = vmax.f32 %v365_v42, %v240_v37  ;;  %v379_v56 = vmax.f32 %v378_v45, %v146_v40  ;;  %v392_v58 = vmax.f32 %v20_v50, %v52_v51  ;;  %559 = vst [vmem:[%s1559_s1 + $0x38] sm:$0xff] %v359_v47  ;;  %v179_v61 = vld [vmem:[%s1558_s0 + $0x558] sm:$0xff]  ;;  %v386_v62 = vmax.f32 %v385_v49, %v115_v46  ;;  %v21_v3 = vld [vmem:[%s1558_s0 + $0x68] sm:$0xff] }
  0x25   :  { %v373_v59 = vmax.f32 %v372_v48, %v209_v43  ;;  %v116_v63 = vld [vmem:[%s1558_s0 + $0x360] sm:$0xff]  ;;  %v53_v4 = vld [vmem:[%s1558_s0 + $0x168] sm:$0xff]  ;;  %v242_v7 = vld [vmem:[%s1558_s0 + $0x750] sm:$0xff] }
  0x26   :  { %v367_v0 = vmax.f32 %v366_v53, %v272_v38  ;;  %v380_v1 = vmax.f32 %v379_v56, %v178_v44  ;;  %v393_v2 = vmax.f32 %v392_v58, %v84_v52  ;;  %v85_v5 = vld [vmem:[%s1558_s0 + $0x268] sm:$0xff]  ;;  %v274_v8 = vld [vmem:[%s1558_s0 + $0x850] sm:$0xff]  ;;  %v387_v9 = vmax.f32 %v386_v62, %v147_v57  ;;  %v148_v10 = vld [vmem:[%s1558_s0 + $0x460] sm:$0xff] }
  0x27   :  { %v374_v6 = vmax.f32 %v373_v59, %v241_v54  ;;  %v400_v11 = vmax.f32 %v21_v3, %v53_v4  ;;  %v211_v13 = vld [vmem:[%s1558_s0 + $0x658] sm:$0xff]  ;;  %v180_v14 = vld [vmem:[%s1558_s0 + $0x560] sm:$0xff]  ;;  %v117_v16 = vld [vmem:[%s1558_s0 + $0x368] sm:$0xff] }
  0x28   :  { %560 = vst [vmem:[%s1559_s1 + $0x40] sm:$0xff] %v367_v0  ;;  %v381_v12 = vmax.f32 %v380_v1, %v210_v60  ;;  %v394_v15 = vmax.f32 %v393_v2, %v116_v63  ;;  %v388_v18 = vmax.f32 %v387_v9, %v179_v61  ;;  %v22_v20 = vld [vmem:[%s1558_s0 + $0x70] sm:$0xff]  ;;  %v243_v24 = vld [vmem:[%s1558_s0 + $0x758] sm:$0xff]  ;;  %v149_v27 = vld [vmem:[%s1558_s0 + $0x468] sm:$0xff] }
  0x29   :  { %v375_v17 = vmax.f32 %v374_v6, %v273_v55  ;;  %v401_v19 = vmax.f32 %v400_v11, %v85_v5  ;;  %v54_v21 = vld [vmem:[%s1558_s0 + $0x170] sm:$0xff]  ;;  %v275_v25 = vld [vmem:[%s1558_s0 + $0x858] sm:$0xff]  ;;  %v212_v30 = vld [vmem:[%s1558_s0 + $0x660] sm:$0xff] }
  0x2a   :  { %v86_v22 = vld [vmem:[%s1558_s0 + $0x270] sm:$0xff]  ;;  %v382_v23 = vmax.f32 %v381_v12, %v242_v7  ;;  %v395_v26 = vmax.f32 %v394_v15, %v148_v10  ;;  %v408_v28 = vmax.f32 %v22_v20, %v54_v21  ;;  %v389_v29 = vmax.f32 %v388_v18, %v211_v13  ;;  %v181_v31 = vld [vmem:[%s1558_s0 + $0x568] sm:$0xff]  ;;  %v23_v37 = vld [vmem:[%s1558_s0 + $0x78] sm:$0xff] }
  0x2b   :  { %561 = vst [vmem:[%s1559_s1 + $0x48] sm:$0xff] %v375_v17  ;;  %v402_v32 = vmax.f32 %v401_v19, %v117_v16  ;;  %v118_v33 = vld [vmem:[%s1558_s0 + $0x370] sm:$0xff]  ;;  %v55_v38 = vld [vmem:[%s1558_s0 + $0x178] sm:$0xff]  ;;  %v244_v41 = vld [vmem:[%s1558_s0 + $0x760] sm:$0xff] }
  0x2c   :  { %v383_v34 = vmax.f32 %v382_v23, %v274_v8  ;;  %v396_v35 = vmax.f32 %v395_v26, %v180_v14  ;;  %v409_v36 = vmax.f32 %v408_v28, %v86_v22  ;;  %v87_v39 = vld [vmem:[%s1558_s0 + $0x278] sm:$0xff]  ;;  %v390_v40 = vmax.f32 %v389_v29, %v243_v24  ;;  %v276_v42 = vld [vmem:[%s1558_s0 + $0x860] sm:$0xff]  ;;  %v150_v44 = vld [vmem:[%s1558_s0 + $0x470] sm:$0xff] }
  0x2d   :  { %v403_v43 = vmax.f32 %v402_v32, %v149_v27  ;;  %v416_v45 = vmax.f32 %v23_v37, %v55_v38  ;;  %v213_v47 = vld [vmem:[%s1558_s0 + $0x668] sm:$0xff]  ;;  %v182_v48 = vld [vmem:[%s1558_s0 + $0x570] sm:$0xff]  ;;  %v119_v50 = vld [vmem:[%s1558_s0 + $0x378] sm:$0xff] }
  0x2e   :  { %562 = vst [vmem:[%s1559_s1 + $0x50] sm:$0xff] %v383_v34  ;;  %v397_v46 = vmax.f32 %v396_v35, %v212_v30  ;;  %v410_v49 = vmax.f32 %v409_v36, %v118_v33  ;;  %v391_v51 = vmax.f32 %v390_v40, %v275_v25  ;;  %v24_v54 = vld [vmem:[%s1558_s0 + $0x80] sm:$0xff]  ;;  %v245_v58 = vld [vmem:[%s1558_s0 + $0x768] sm:$0xff]  ;;  %v151_v61 = vld [vmem:[%s1558_s0 + $0x478] sm:$0xff] }
  0x2f   :  { %v404_v52 = vmax.f32 %v403_v43, %v181_v31  ;;  %v417_v53 = vmax.f32 %v416_v45, %v87_v39  ;;  %v56_v55 = vld [vmem:[%s1558_s0 + $0x180] sm:$0xff]  ;;  %v277_v59 = vld [vmem:[%s1558_s0 + $0x868] sm:$0xff]  ;;  %v214_v0 = vld [vmem:[%s1558_s0 + $0x670] sm:$0xff] }
  0x30   :  { %v88_v56 = vld [vmem:[%s1558_s0 + $0x280] sm:$0xff]  ;;  %v398_v57 = vmax.f32 %v397_v46, %v244_v41  ;;  %v411_v60 = vmax.f32 %v410_v49, %v150_v44  ;;  %v424_v62 = vmax.f32 %v24_v54, %v56_v55  ;;  %563 = vst [vmem:[%s1559_s1 + $0x58] sm:$0xff] %v391_v51  ;;  %v183_v1 = vld [vmem:[%s1558_s0 + $0x578] sm:$0xff]  ;;  %v25_v7 = vld [vmem:[%s1558_s0 + $0x88] sm:$0xff] }
  0x31   :  { %v405_v63 = vmax.f32 %v404_v52, %v213_v47  ;;  %v418_v2 = vmax.f32 %v417_v53, %v119_v50  ;;  %v120_v3 = vld [vmem:[%s1558_s0 + $0x380] sm:$0xff]  ;;  %v57_v8 = vld [vmem:[%s1558_s0 + $0x188] sm:$0xff]  ;;  %v246_v11 = vld [vmem:[%s1558_s0 + $0x770] sm:$0xff] }
  0x32   :  { %v399_v4 = vmax.f32 %v398_v57, %v276_v42  ;;  %v412_v5 = vmax.f32 %v411_v60, %v182_v48  ;;  %v425_v6 = vmax.f32 %v424_v62, %v88_v56  ;;  %v89_v9 = vld [vmem:[%s1558_s0 + $0x288] sm:$0xff]  ;;  %v278_v12 = vld [vmem:[%s1558_s0 + $0x870] sm:$0xff]  ;;  %v152_v14 = vld [vmem:[%s1558_s0 + $0x480] sm:$0xff]  ;;  %v432_v15 = vmax.f32 %v25_v7, %v57_v8 }
  0x33   :  { %v406_v10 = vmax.f32 %v405_v63, %v245_v58  ;;  %v419_v13 = vmax.f32 %v418_v2, %v151_v61  ;;  %v215_v17 = vld [vmem:[%s1558_s0 + $0x678] sm:$0xff]  ;;  %v184_v18 = vld [vmem:[%s1558_s0 + $0x580] sm:$0xff]  ;;  %v121_v20 = vld [vmem:[%s1558_s0 + $0x388] sm:$0xff] }
  0x34   :  { %564 = vst [vmem:[%s1559_s1 + $0x60] sm:$0xff] %v399_v4  ;;  %v413_v16 = vmax.f32 %v412_v5, %v214_v0  ;;  %v426_v19 = vmax.f32 %v425_v6, %v120_v3  ;;  %v433_v23 = vmax.f32 %v432_v15, %v89_v9  ;;  %v26_v24 = vld [vmem:[%s1558_s0 + $0x90] sm:$0xff]  ;;  %v247_v28 = vld [vmem:[%s1558_s0 + $0x778] sm:$0xff]  ;;  %v153_v31 = vld [vmem:[%s1558_s0 + $0x488] sm:$0xff] }
  0x35   :  { %v407_v21 = vmax.f32 %v406_v10, %v277_v59  ;;  %v420_v22 = vmax.f32 %v419_v13, %v183_v1  ;;  %v58_v25 = vld [vmem:[%s1558_s0 + $0x190] sm:$0xff]  ;;  %v279_v29 = vld [vmem:[%s1558_s0 + $0x878] sm:$0xff]  ;;  %v216_v34 = vld [vmem:[%s1558_s0 + $0x680] sm:$0xff] }
  0x36   :  { %v90_v26 = vld [vmem:[%s1558_s0 + $0x290] sm:$0xff]  ;;  %v414_v27 = vmax.f32 %v413_v16, %v246_v11  ;;  %v427_v30 = vmax.f32 %v426_v19, %v152_v14  ;;  %v440_v32 = vmax.f32 %v26_v24, %v58_v25  ;;  %v185_v35 = vld [vmem:[%s1558_s0 + $0x588] sm:$0xff]  ;;  %v434_v36 = vmax.f32 %v433_v23, %v121_v20  ;;  %v27_v41 = vld [vmem:[%s1558_s0 + $0x98] sm:$0xff] }
  0x37   :  { %565 = vst [vmem:[%s1559_s1 + $0x68] sm:$0xff] %v407_v21  ;;  %v421_v33 = vmax.f32 %v420_v22, %v215_v17  ;;  %v122_v37 = vld [vmem:[%s1558_s0 + $0x390] sm:$0xff]  ;;  %v59_v42 = vld [vmem:[%s1558_s0 + $0x198] sm:$0xff]  ;;  %v248_v45 = vld [vmem:[%s1558_s0 + $0x780] sm:$0xff] }
  0x38   :  { %v415_v38 = vmax.f32 %v414_v27, %v278_v12  ;;  %v428_v39 = vmax.f32 %v427_v30, %v184_v18  ;;  %v441_v40 = vmax.f32 %v440_v32, %v90_v26  ;;  %v91_v43 = vld [vmem:[%s1558_s0 + $0x298] sm:$0xff]  ;;  %v280_v46 = vld [vmem:[%s1558_s0 + $0x880] sm:$0xff]  ;;  %v435_v47 = vmax.f32 %v434_v36, %v153_v31  ;;  %v154_v48 = vld [vmem:[%s1558_s0 + $0x490] sm:$0xff] }
  0x39   :  { %v422_v44 = vmax.f32 %v421_v33, %v247_v28  ;;  %v448_v49 = vmax.f32 %v27_v41, %v59_v42  ;;  %v217_v51 = vld [vmem:[%s1558_s0 + $0x688] sm:$0xff]  ;;  %v186_v52 = vld [vmem:[%s1558_s0 + $0x590] sm:$0xff]  ;;  %v123_v54 = vld [vmem:[%s1558_s0 + $0x398] sm:$0xff] }
  0x3a   :  { %566 = vst [vmem:[%s1559_s1 + $0x70] sm:$0xff] %v415_v38  ;;  %v429_v50 = vmax.f32 %v428_v39, %v216_v34  ;;  %v442_v53 = vmax.f32 %v441_v40, %v122_v37  ;;  %v436_v56 = vmax.f32 %v435_v47, %v185_v35  ;;  %v28_v58 = vld [vmem:[%s1558_s0 + $0xa0] sm:$0xff]  ;;  %v249_v62 = vld [vmem:[%s1558_s0 + $0x788] sm:$0xff]  ;;  %v155_v1 = vld [vmem:[%s1558_s0 + $0x498] sm:$0xff] }
  0x3b   :  { %v423_v55 = vmax.f32 %v422_v44, %v279_v29  ;;  %v449_v57 = vmax.f32 %v448_v49, %v91_v43  ;;  %v60_v59 = vld [vmem:[%s1558_s0 + $0x1a0] sm:$0xff]  ;;  %v281_v63 = vld [vmem:[%s1558_s0 + $0x888] sm:$0xff]  ;;  %v218_v4 = vld [vmem:[%s1558_s0 + $0x690] sm:$0xff] }
  0x3c   :  { %v92_v60 = vld [vmem:[%s1558_s0 + $0x2a0] sm:$0xff]  ;;  %v430_v61 = vmax.f32 %v429_v50, %v248_v45  ;;  %v443_v0 = vmax.f32 %v442_v53, %v154_v48  ;;  %v456_v2 = vmax.f32 %v28_v58, %v60_v59  ;;  %v437_v3 = vmax.f32 %v436_v56, %v217_v51  ;;  %v187_v5 = vld [vmem:[%s1558_s0 + $0x598] sm:$0xff]  ;;  %v29_v11 = vld [vmem:[%s1558_s0 + $0xa8] sm:$0xff] }
  0x3d   :  { %567 = vst [vmem:[%s1559_s1 + $0x78] sm:$0xff] %v423_v55  ;;  %v450_v6 = vmax.f32 %v449_v57, %v123_v54  ;;  %v124_v7 = vld [vmem:[%s1558_s0 + $0x3a0] sm:$0xff]  ;;  %v61_v12 = vld [vmem:[%s1558_s0 + $0x1a8] sm:$0xff]  ;;  %v250_v15 = vld [vmem:[%s1558_s0 + $0x790] sm:$0xff] }
  0x3e   :  { %v431_v8 = vmax.f32 %v430_v61, %v280_v46  ;;  %v444_v9 = vmax.f32 %v443_v0, %v186_v52  ;;  %v457_v10 = vmax.f32 %v456_v2, %v92_v60  ;;  %v93_v13 = vld [vmem:[%s1558_s0 + $0x2a8] sm:$0xff]  ;;  %v438_v14 = vmax.f32 %v437_v3, %v249_v62  ;;  %v282_v16 = vld [vmem:[%s1558_s0 + $0x890] sm:$0xff]  ;;  %v156_v18 = vld [vmem:[%s1558_s0 + $0x4a0] sm:$0xff] }
  0x3f   :  { %v451_v17 = vmax.f32 %v450_v6, %v155_v1  ;;  %v464_v19 = vmax.f32 %v29_v11, %v61_v12  ;;  %v219_v21 = vld [vmem:[%s1558_s0 + $0x698] sm:$0xff]  ;;  %v188_v22 = vld [vmem:[%s1558_s0 + $0x5a0] sm:$0xff]  ;;  %v125_v24 = vld [vmem:[%s1558_s0 + $0x3a8] sm:$0xff] }
  0x40   :  { %568 = vst [vmem:[%s1559_s1 + $0x80] sm:$0xff] %v431_v8  ;;  %v445_v20 = vmax.f32 %v444_v9, %v218_v4  ;;  %v458_v23 = vmax.f32 %v457_v10, %v124_v7  ;;  %v439_v25 = vmax.f32 %v438_v14, %v281_v63  ;;  %v30_v28 = vld [vmem:[%s1558_s0 + $0xb0] sm:$0xff]  ;;  %v251_v32 = vld [vmem:[%s1558_s0 + $0x798] sm:$0xff]  ;;  %v157_v35 = vld [vmem:[%s1558_s0 + $0x4a8] sm:$0xff] }
  0x41   :  { %v452_v26 = vmax.f32 %v451_v17, %v187_v5  ;;  %v465_v27 = vmax.f32 %v464_v19, %v93_v13  ;;  %v62_v29 = vld [vmem:[%s1558_s0 + $0x1b0] sm:$0xff]  ;;  %v283_v33 = vld [vmem:[%s1558_s0 + $0x898] sm:$0xff]  ;;  %v220_v38 = vld [vmem:[%s1558_s0 + $0x6a0] sm:$0xff] }
  0x42   :  { %v94_v30 = vld [vmem:[%s1558_s0 + $0x2b0] sm:$0xff]  ;;  %v446_v31 = vmax.f32 %v445_v20, %v250_v15  ;;  %v459_v34 = vmax.f32 %v458_v23, %v156_v18  ;;  %v472_v36 = vmax.f32 %v30_v28, %v62_v29  ;;  %569 = vst [vmem:[%s1559_s1 + $0x88] sm:$0xff] %v439_v25  ;;  %v189_v39 = vld [vmem:[%s1558_s0 + $0x5a8] sm:$0xff]  ;;  %v31_v45 = vld [vmem:[%s1558_s0 + $0xb8] sm:$0xff] }
  0x43   :  { %v453_v37 = vmax.f32 %v452_v26, %v219_v21  ;;  %v466_v40 = vmax.f32 %v465_v27, %v125_v24  ;;  %v126_v41 = vld [vmem:[%s1558_s0 + $0x3b0] sm:$0xff]  ;;  %v63_v46 = vld [vmem:[%s1558_s0 + $0x1b8] sm:$0xff]  ;;  %v252_v49 = vld [vmem:[%s1558_s0 + $0x7a0] sm:$0xff] }
  0x44   :  { %v447_v42 = vmax.f32 %v446_v31, %v282_v16  ;;  %v460_v43 = vmax.f32 %v459_v34, %v188_v22  ;;  %v473_v44 = vmax.f32 %v472_v36, %v94_v30  ;;  %v95_v47 = vld [vmem:[%s1558_s0 + $0x2b8] sm:$0xff]  ;;  %v284_v50 = vld [vmem:[%s1558_s0 + $0x8a0] sm:$0xff]  ;;  %v158_v52 = vld [vmem:[%s1558_s0 + $0x4b0] sm:$0xff]  ;;  %v480_v53 = vmax.f32 %v31_v45, %v63_v46 }
  0x45   :  { %v454_v48 = vmax.f32 %v453_v37, %v251_v32  ;;  %v467_v51 = vmax.f32 %v466_v40, %v157_v35  ;;  %v221_v55 = vld [vmem:[%s1558_s0 + $0x6a8] sm:$0xff]  ;;  %v190_v56 = vld [vmem:[%s1558_s0 + $0x5b0] sm:$0xff]  ;;  %v127_v58 = vld [vmem:[%s1558_s0 + $0x3b8] sm:$0xff] }
  0x46   :  { %570 = vst [vmem:[%s1559_s1 + $0x90] sm:$0xff] %v447_v42  ;;  %v461_v54 = vmax.f32 %v460_v43, %v220_v38  ;;  %v474_v57 = vmax.f32 %v473_v44, %v126_v41  ;;  %v481_v61 = vmax.f32 %v480_v53, %v95_v47  ;;  %v32_v62 = vld [vmem:[%s1558_s0 + $0xc0] sm:$0xff]  ;;  %v253_v2 = vld [vmem:[%s1558_s0 + $0x7a8] sm:$0xff]  ;;  %v159_v5 = vld [vmem:[%s1558_s0 + $0x4b8] sm:$0xff] }
  0x47   :  { %v455_v59 = vmax.f32 %v454_v48, %v283_v33  ;;  %v468_v60 = vmax.f32 %v467_v51, %v189_v39  ;;  %v64_v63 = vld [vmem:[%s1558_s0 + $0x1c0] sm:$0xff]  ;;  %v285_v3 = vld [vmem:[%s1558_s0 + $0x8a8] sm:$0xff]  ;;  %v222_v8 = vld [vmem:[%s1558_s0 + $0x6b0] sm:$0xff] }
  0x48   :  { %v96_v0 = vld [vmem:[%s1558_s0 + $0x2c0] sm:$0xff]  ;;  %v462_v1 = vmax.f32 %v461_v54, %v252_v49  ;;  %v475_v4 = vmax.f32 %v474_v57, %v158_v52  ;;  %v488_v6 = vmax.f32 %v32_v62, %v64_v63  ;;  %v191_v9 = vld [vmem:[%s1558_s0 + $0x5b8] sm:$0xff]  ;;  %v482_v10 = vmax.f32 %v481_v61, %v127_v58  ;;  %v33_v15 = vld [vmem:[%s1558_s0 + $0xc8] sm:$0xff] }
  0x49   :  { %571 = vst [vmem:[%s1559_s1 + $0x98] sm:$0xff] %v455_v59  ;;  %v469_v7 = vmax.f32 %v468_v60, %v221_v55  ;;  %v128_v11 = vld [vmem:[%s1558_s0 + $0x3c0] sm:$0xff]  ;;  %v65_v16 = vld [vmem:[%s1558_s0 + $0x1c8] sm:$0xff]  ;;  %v254_v19 = vld [vmem:[%s1558_s0 + $0x7b0] sm:$0xff] }
  0x4a   :  { %v463_v12 = vmax.f32 %v462_v1, %v284_v50  ;;  %v476_v13 = vmax.f32 %v475_v4, %v190_v56  ;;  %v489_v14 = vmax.f32 %v488_v6, %v96_v0  ;;  %v97_v17 = vld [vmem:[%s1558_s0 + $0x2c8] sm:$0xff]  ;;  %v286_v20 = vld [vmem:[%s1558_s0 + $0x8b0] sm:$0xff]  ;;  %v483_v21 = vmax.f32 %v482_v10, %v159_v5  ;;  %v160_v22 = vld [vmem:[%s1558_s0 + $0x4c0] sm:$0xff] }
  0x4b   :  { %v470_v18 = vmax.f32 %v469_v7, %v253_v2  ;;  %v496_v23 = vmax.f32 %v33_v15, %v65_v16  ;;  %v223_v25 = vld [vmem:[%s1558_s0 + $0x6b8] sm:$0xff]  ;;  %v192_v26 = vld [vmem:[%s1558_s0 + $0x5c0] sm:$0xff]  ;;  %v129_v28 = vld [vmem:[%s1558_s0 + $0x3c8] sm:$0xff] }
  0x4c   :  { %572 = vst [vmem:[%s1559_s1 + $0xa0] sm:$0xff] %v463_v12  ;;  %v477_v24 = vmax.f32 %v476_v13, %v222_v8  ;;  %v490_v27 = vmax.f32 %v489_v14, %v128_v11  ;;  %v484_v30 = vmax.f32 %v483_v21, %v191_v9  ;;  %v34_v32 = vld [vmem:[%s1558_s0 + $0xd0] sm:$0xff]  ;;  %v255_v36 = vld [vmem:[%s1558_s0 + $0x7b8] sm:$0xff]  ;;  %v161_v39 = vld [vmem:[%s1558_s0 + $0x4c8] sm:$0xff] }
  0x4d   :  { %v471_v29 = vmax.f32 %v470_v18, %v285_v3  ;;  %v497_v31 = vmax.f32 %v496_v23, %v97_v17  ;;  %v66_v33 = vld [vmem:[%s1558_s0 + $0x1d0] sm:$0xff]  ;;  %v287_v37 = vld [vmem:[%s1558_s0 + $0x8b8] sm:$0xff]  ;;  %v224_v42 = vld [vmem:[%s1558_s0 + $0x6c0] sm:$0xff] }
  0x4e   :  { %v98_v34 = vld [vmem:[%s1558_s0 + $0x2d0] sm:$0xff]  ;;  %v478_v35 = vmax.f32 %v477_v24, %v254_v19  ;;  %v491_v38 = vmax.f32 %v490_v27, %v160_v22  ;;  %v504_v40 = vmax.f32 %v34_v32, %v66_v33  ;;  %v485_v41 = vmax.f32 %v484_v30, %v223_v25  ;;  %v193_v43 = vld [vmem:[%s1558_s0 + $0x5c8] sm:$0xff]  ;;  %v35_v49 = vld [vmem:[%s1558_s0 + $0xd8] sm:$0xff] }
  0x4f   :  { %573 = vst [vmem:[%s1559_s1 + $0xa8] sm:$0xff] %v471_v29  ;;  %v498_v44 = vmax.f32 %v497_v31, %v129_v28  ;;  %v130_v45 = vld [vmem:[%s1558_s0 + $0x3d0] sm:$0xff]  ;;  %v67_v50 = vld [vmem:[%s1558_s0 + $0x1d8] sm:$0xff]  ;;  %v256_v53 = vld [vmem:[%s1558_s0 + $0x7c0] sm:$0xff] }
  0x50   :  { %v479_v46 = vmax.f32 %v478_v35, %v286_v20  ;;  %v492_v47 = vmax.f32 %v491_v38, %v192_v26  ;;  %v505_v48 = vmax.f32 %v504_v40, %v98_v34  ;;  %v99_v51 = vld [vmem:[%s1558_s0 + $0x2d8] sm:$0xff]  ;;  %v486_v52 = vmax.f32 %v485_v41, %v255_v36  ;;  %v288_v54 = vld [vmem:[%s1558_s0 + $0x8c0] sm:$0xff]  ;;  %v162_v56 = vld [vmem:[%s1558_s0 + $0x4d0] sm:$0xff] }
  0x51   :  { %v499_v55 = vmax.f32 %v498_v44, %v161_v39  ;;  %v512_v57 = vmax.f32 %v35_v49, %v67_v50  ;;  %v225_v59 = vld [vmem:[%s1558_s0 + $0x6c8] sm:$0xff]  ;;  %v194_v60 = vld [vmem:[%s1558_s0 + $0x5d0] sm:$0xff]  ;;  %v131_v62 = vld [vmem:[%s1558_s0 + $0x3d8] sm:$0xff] }
  0x52   :  { %574 = vst [vmem:[%s1559_s1 + $0xb0] sm:$0xff] %v479_v46  ;;  %v493_v58 = vmax.f32 %v492_v47, %v224_v42  ;;  %v506_v61 = vmax.f32 %v505_v48, %v130_v45  ;;  %v487_v63 = vmax.f32 %v486_v52, %v287_v37  ;;  %v36_v2 = vld [vmem:[%s1558_s0 + $0xe0] sm:$0xff]  ;;  %v257_v6 = vld [vmem:[%s1558_s0 + $0x7c8] sm:$0xff]  ;;  %v163_v9 = vld [vmem:[%s1558_s0 + $0x4d8] sm:$0xff] }
  0x53   :  { %v500_v0 = vmax.f32 %v499_v55, %v193_v43  ;;  %v513_v1 = vmax.f32 %v512_v57, %v99_v51  ;;  %v68_v3 = vld [vmem:[%s1558_s0 + $0x1e0] sm:$0xff]  ;;  %v289_v7 = vld [vmem:[%s1558_s0 + $0x8c8] sm:$0xff]  ;;  %v226_v12 = vld [vmem:[%s1558_s0 + $0x6d0] sm:$0xff] }
  0x54   :  { %v100_v4 = vld [vmem:[%s1558_s0 + $0x2e0] sm:$0xff]  ;;  %v494_v5 = vmax.f32 %v493_v58, %v256_v53  ;;  %v507_v8 = vmax.f32 %v506_v61, %v162_v56  ;;  %v520_v10 = vmax.f32 %v36_v2, %v68_v3  ;;  %575 = vst [vmem:[%s1559_s1 + $0xb8] sm:$0xff] %v487_v63  ;;  %v195_v13 = vld [vmem:[%s1558_s0 + $0x5d8] sm:$0xff]  ;;  %v37_v19 = vld [vmem:[%s1558_s0 + $0xe8] sm:$0xff] }
  0x55   :  { %v501_v11 = vmax.f32 %v500_v0, %v225_v59  ;;  %v514_v14 = vmax.f32 %v513_v1, %v131_v62  ;;  %v132_v15 = vld [vmem:[%s1558_s0 + $0x3e0] sm:$0xff]  ;;  %v69_v20 = vld [vmem:[%s1558_s0 + $0x1e8] sm:$0xff]  ;;  %v258_v23 = vld [vmem:[%s1558_s0 + $0x7d0] sm:$0xff] }
  0x56   :  { %v495_v16 = vmax.f32 %v494_v5, %v288_v54  ;;  %v508_v17 = vmax.f32 %v507_v8, %v194_v60  ;;  %v521_v18 = vmax.f32 %v520_v10, %v100_v4  ;;  %v101_v21 = vld [vmem:[%s1558_s0 + $0x2e8] sm:$0xff]  ;;  %v290_v24 = vld [vmem:[%s1558_s0 + $0x8d0] sm:$0xff]  ;;  %v164_v26 = vld [vmem:[%s1558_s0 + $0x4e0] sm:$0xff]  ;;  %v528_v27 = vmax.f32 %v37_v19, %v69_v20 }
  0x57   :  { %v502_v22 = vmax.f32 %v501_v11, %v257_v6  ;;  %v515_v25 = vmax.f32 %v514_v14, %v163_v9  ;;  %v227_v29 = vld [vmem:[%s1558_s0 + $0x6d8] sm:$0xff]  ;;  %v196_v30 = vld [vmem:[%s1558_s0 + $0x5e0] sm:$0xff]  ;;  %v133_v32 = vld [vmem:[%s1558_s0 + $0x3e8] sm:$0xff] }
  0x58   :  { %576 = vst [vmem:[%s1559_s1 + $0xc0] sm:$0xff] %v495_v16  ;;  %v509_v28 = vmax.f32 %v508_v17, %v226_v12  ;;  %v522_v31 = vmax.f32 %v521_v18, %v132_v15  ;;  %v529_v35 = vmax.f32 %v528_v27, %v101_v21  ;;  %v38_v36 = vld [vmem:[%s1558_s0 + $0xf0] sm:$0xff]  ;;  %v259_v40 = vld [vmem:[%s1558_s0 + $0x7d8] sm:$0xff]  ;;  %v165_v43 = vld [vmem:[%s1558_s0 + $0x4e8] sm:$0xff] }
  0x59   :  { %v503_v33 = vmax.f32 %v502_v22, %v289_v7  ;;  %v516_v34 = vmax.f32 %v515_v25, %v195_v13  ;;  %v70_v37 = vld [vmem:[%s1558_s0 + $0x1f0] sm:$0xff]  ;;  %v291_v41 = vld [vmem:[%s1558_s0 + $0x8d8] sm:$0xff]  ;;  %v228_v46 = vld [vmem:[%s1558_s0 + $0x6e0] sm:$0xff] }
  0x5a   :  { %v102_v38 = vld [vmem:[%s1558_s0 + $0x2f0] sm:$0xff]  ;;  %v510_v39 = vmax.f32 %v509_v28, %v258_v23  ;;  %v523_v42 = vmax.f32 %v522_v31, %v164_v26  ;;  %v536_v44 = vmax.f32 %v38_v36, %v70_v37  ;;  %v197_v47 = vld [vmem:[%s1558_s0 + $0x5e8] sm:$0xff]  ;;  %v530_v48 = vmax.f32 %v529_v35, %v133_v32  ;;  %v39_v53 = vld [vmem:[%s1558_s0 + $0xf8] sm:$0xff] }
  0x5b   :  { %577 = vst [vmem:[%s1559_s1 + $0xc8] sm:$0xff] %v503_v33  ;;  %v517_v45 = vmax.f32 %v516_v34, %v227_v29  ;;  %v134_v49 = vld [vmem:[%s1558_s0 + $0x3f0] sm:$0xff]  ;;  %v71_v54 = vld [vmem:[%s1558_s0 + $0x1f8] sm:$0xff]  ;;  %v260_v57 = vld [vmem:[%s1558_s0 + $0x7e0] sm:$0xff] }
  0x5c   :  { %v511_v50 = vmax.f32 %v510_v39, %v290_v24  ;;  %v524_v51 = vmax.f32 %v523_v42, %v196_v30  ;;  %v537_v52 = vmax.f32 %v536_v44, %v102_v38  ;;  %v103_v55 = vld [vmem:[%s1558_s0 + $0x2f8] sm:$0xff]  ;;  %v531_v58 = vmax.f32 %v530_v48, %v165_v43  ;;  %v166_v59 = vld [vmem:[%s1558_s0 + $0x4f0] sm:$0xff]  ;;  %v229_v62 = vld [vmem:[%s1558_s0 + $0x6e8] sm:$0xff] }
  0x5d   :  { %v518_v56 = vmax.f32 %v517_v45, %v259_v40  ;;  %v544_v60 = vmax.f32 %v39_v53, %v71_v54  ;;  %v135_v0 = vld [vmem:[%s1558_s0 + $0x3f8] sm:$0xff]  ;;  %v292_v2 = vld [vmem:[%s1558_s0 + $0x8e0] sm:$0xff]  ;;  %v198_v4 = vld [vmem:[%s1558_s0 + $0x5f0] sm:$0xff] }
  0x5e   :  { %578 = vst [vmem:[%s1559_s1 + $0xd0] sm:$0xff] %v511_v50  ;;  %v525_v61 = vmax.f32 %v524_v51, %v228_v46  ;;  %v538_v63 = vmax.f32 %v537_v52, %v134_v49  ;;  %v532_v3 = vmax.f32 %v531_v58, %v197_v47  ;;  %v261_v7 = vld [vmem:[%s1558_s0 + $0x7e8] sm:$0xff]  ;;  %v167_v9 = vld [vmem:[%s1558_s0 + $0x4f8] sm:$0xff]  ;;  %v230_v11 = vld [vmem:[%s1558_s0 + $0x6f0] sm:$0xff] }
  0x5f   :  { %v519_v1 = vmax.f32 %v518_v56, %v291_v41  ;;  %v545_v5 = vmax.f32 %v544_v60, %v103_v55  ;;  %v293_v14 = vld [vmem:[%s1558_s0 + $0x8e8] sm:$0xff]  ;;  %v199_v16 = vld [vmem:[%s1558_s0 + $0x5f8] sm:$0xff]  ;;  %v262_v18 = vld [vmem:[%s1558_s0 + $0x7f0] sm:$0xff] }
  0x60   :  { %v526_v6 = vmax.f32 %v525_v61, %v260_v57  ;;  %v539_v8 = vmax.f32 %v538_v63, %v166_v59  ;;  %v533_v10 = vmax.f32 %v532_v3, %v229_v62  ;;  %v231_v21 = vld [vmem:[%s1558_s0 + $0x6f8] sm:$0xff]  ;;  %v294_v23 = vld [vmem:[%s1558_s0 + $0x8f0] sm:$0xff] }
  0x61   :  { %579 = vst [vmem:[%s1559_s1 + $0xd8] sm:$0xff] %v519_v1  ;;  %v546_v12 = vmax.f32 %v545_v5, %v135_v0  ;;  %v263_v26 = vld [vmem:[%s1558_s0 + $0x7f8] sm:$0xff] }
  0x62   :  { %v527_v13 = vmax.f32 %v526_v6, %v292_v2  ;;  %v540_v15 = vmax.f32 %v539_v8, %v198_v4  ;;  %v534_v17 = vmax.f32 %v533_v10, %v261_v7  ;;  %v295_v29 = vld [vmem:[%s1558_s0 + $0x8f8] sm:$0xff] }
  0x63   :  { %v547_v19 = vmax.f32 %v546_v12, %v167_v9 }
  0x64   :  { %580 = vst [vmem:[%s1559_s1 + $0xe0] sm:$0xff] %v527_v13  ;;  %v541_v20 = vmax.f32 %v540_v15, %v230_v11  ;;  %v535_v22 = vmax.f32 %v534_v17, %v293_v14 }
  0x65   :  { %v548_v24 = vmax.f32 %v547_v19, %v199_v16 }
  0x66   :  { %v542_v25 = vmax.f32 %v541_v20, %v262_v18  ;;  %581 = vst [vmem:[%s1559_s1 + $0xe8] sm:$0xff] %v535_v22 }
  0x67   :  { %v549_v27 = vmax.f32 %v548_v24, %v231_v21 }
  0x68   :  { %v543_v28 = vmax.f32 %v542_v25, %v294_v23 }
  0x69   :  { %v550_v30 = vmax.f32 %v549_v27, %v263_v26 }
  0x6a   :  { %582 = vst [vmem:[%s1559_s1 + $0xf0] sm:$0xff] %v543_v28 }
  0x6b   :  { %v551_v31 = vmax.f32 %v550_v30, %v295_v29 }
  0x6d   :  { %583 = vst [vmem:[%s1559_s1 + $0xf8] sm:$0xff] %v551_v31 }

// kernel: lipnet_forward.9
= control target key start
LH: loop header
LB: loop body
LE: loop exit
PB: predicated region body
PF: predicated region fallthrough
CT: control target
= control target key end

     0   :  { %v218_v3 = vmov 0.0   ;;  %v130_v51 = vlaneseq  ;;  %vm161_vm0 = vcmask 523264   ;;  %s364_s1 = inlined_call_operand.vmem [shape: f32[128,192], index: 1, kind: input, shape index: {}]   ;;  %s365_s0 = inlined_call_operand.vmem [shape: f32[16,128], index: 0, kind: input, shape index: {}]   ;;  %s366_s2 = inlined_call_operand.vmem [shape: f32[1,192], index: 2, kind: input, shape index: {}]   ;;  %s367_s3 = inlined_call_operand.vmem [shape: f32[1,192], index: 3, kind: input, shape index: {}]   ;;  %s368_s4 = inlined_call_operand.vmem [shape: f32[16,192], index: 4, kind: output, shape index: {}]  }
   0x1   :  { %v20_v0 = vld [vmem:[%s364_s1 + $0x8] sm:$0xff]  ;;  %v22_v1 = vld [vmem:[%s364_s1 + $0x18] sm:$0xff]  ;;  %v19_v2 = vld [vmem:[%s364_s1] sm:$0xff]  ;;  %115 = vmatprep.mubr.f32.mxu0 %v218_v3  ;;  %121 = vmatprep.mubr.f32.mxu1 %v218_v3 }
   0x2   :  { %v169_v4 = vpack.c.bf16 %v22_v1, %v20_v0  ;;  %v21_v5 = vld [vmem:[%s364_s1 + $0x10] sm:$0xff]  ;;  %v24_v6 = vld [vmem:[%s364_s1 + $0x28] sm:$0xff]  ;;  %v26_v7 = vld [vmem:[%s364_s1 + $0x38] sm:$0xff]  ;;  %v131_v52 = vshrl.u32 %v130_v51, 7 }
   0x3   :  { %v171_v8 = vpack.c.bf16 %v21_v5, %v19_v2  ;;  %v173_v9 = vpack.c.bf16 %v26_v7, %v24_v6  ;;  %v23_v10 = vld [vmem:[%s364_s1 + $0x20] sm:$0xff]  ;;  %v25_v11 = vld [vmem:[%s364_s1 + $0x30] sm:$0xff]  ;;  %v28_v12 = vld [vmem:[%s364_s1 + $0x48] sm:$0xff] }
   0x4   :  { %170 = vmatprep.subr.bf16.mxu0 %v169_v4  ;;  %201 = vmatprep.subr.bf16.mxu1 %v169_v4  ;;  %v30_v13 = vld [vmem:[%s364_s1 + $0x58] sm:$0xff]  ;;  %v175_v14 = vpack.c.bf16 %v25_v11, %v23_v10  ;;  %v27_v16 = vld [vmem:[%s364_s1 + $0x40] sm:$0xff]  ;;  %v29_v17 = vld [vmem:[%s364_s1 + $0x50] sm:$0xff]  ;;  %v132_v53 = vsub.s32 0, %v131_v52  ;;  %v136_v55 = vsub.s32 1, %v131_v52 }
   0x5   :  { %172 = vmatpush1.bf16.msra.mxu0 %v171_v8  ;;  %209 = vmatpush1.bf16.msra.mxu1 %v171_v8  ;;  %v177_v15 = vpack.c.bf16 %v30_v13, %v28_v12  ;;  %v32_v18 = vld [vmem:[%s364_s1 + $0x68] sm:$0xff]  ;;  %v34_v19 = vld [vmem:[%s364_s1 + $0x78] sm:$0xff]  ;;  %v179_v20 = vpack.c.bf16 %v29_v17, %v27_v16  ;;  %v31_v22 = vld [vmem:[%s364_s1 + $0x60] sm:$0xff] }
   0x6   :  { %174 = vmatprep.subr.bf16.mxu0 %v173_v9  ;;  %202 = vmatprep.subr.bf16.mxu1 %v173_v9  ;;  %v181_v21 = vpack.c.bf16 %v34_v19, %v32_v18  ;;  %v33_v23 = vld [vmem:[%s364_s1 + $0x70] sm:$0xff]  ;;  %v36_v24 = vld [vmem:[%s364_s1 + $0x88] sm:$0xff]  ;;  %v38_v25 = vld [vmem:[%s364_s1 + $0x98] sm:$0xff] }
   0x7   :  { %v183_v26 = vpack.c.bf16 %v33_v23, %v31_v22  ;;  %v185_v27 = vpack.c.bf16 %v38_v25, %v36_v24  ;;  %v35_v28 = vld [vmem:[%s364_s1 + $0x80] sm:$0xff]  ;;  %v37_v29 = vld [vmem:[%s364_s1 + $0x90] sm:$0xff]  ;;  %v40_v30 = vld [vmem:[%s364_s1 + $0xa8] sm:$0xff] }
   0x8   :  { %v42_v31 = vld [vmem:[%s364_s1 + $0xb8] sm:$0xff]  ;;  %v187_v32 = vpack.c.bf16 %v37_v29, %v35_v28  ;;  %v39_v34 = vld [vmem:[%s364_s1 + $0xa0] sm:$0xff]  ;;  %v41_v35 = vld [vmem:[%s364_s1 + $0xb0] sm:$0xff] }
   0x9   :  { %176 = vmatpush1.bf16.msra.mxu0 %v175_v14  ;;  %210 = vmatpush1.bf16.msra.mxu1 %v175_v14  ;;  %v189_v33 = vpack.c.bf16 %v42_v31, %v40_v30  ;;  %v44_v36 = vld [vmem:[%s364_s1 + $0xc8] sm:$0xff]  ;;  %v46_v37 = vld [vmem:[%s364_s1 + $0xd8] sm:$0xff]  ;;  %v191_v38 = vpack.c.bf16 %v41_v35, %v39_v34  ;;  %v43_v40 = vld [vmem:[%s364_s1 + $0xc0] sm:$0xff] }
   0xa   :  { %178 = vmatprep.subr.bf16.mxu0 %v177_v15  ;;  %203 = vmatprep.subr.bf16.mxu1 %v177_v15  ;;  %v193_v39 = vpack.c.bf16 %v46_v37, %v44_v36  ;;  %v45_v41 = vld [vmem:[%s364_s1 + $0xd0] sm:$0xff]  ;;  %v48_v42 = vld [vmem:[%s364_s1 + $0xe8] sm:$0xff]  ;;  %v50_v43 = vld [vmem:[%s364_s1 + $0xf8] sm:$0xff] }
   0xb   :  { %v195_v44 = vpack.c.bf16 %v45_v41, %v43_v40  ;;  %v197_v45 = vpack.c.bf16 %v50_v43, %v48_v42  ;;  %v47_v46 = vld [vmem:[%s364_s1 + $0xe0] sm:$0xff]  ;;  %v49_v47 = vld [vmem:[%s364_s1 + $0xf0] sm:$0xff]  ;;  %v18_v50 = vld [vmem:[%s365_s0 + $0x8] sm:$0xff] }
   0xc   :  { %v199_v48 = vpack.c.bf16 %v49_v47, %v47_v46  ;;  %v17_v49 = vld [vmem:[%s365_s0] sm:$0xff] }
   0xd   :  { %180 = vmatpush1.bf16.msra.mxu0 %v179_v20  ;;  %211 = vmatpush1.bf16.msra.mxu1 %v179_v20  ;;  %v128_v54 = vld [vmem:[%s366_s2] sm:$0x3] }
   0xe   :  { %182 = vmatprep.subr.bf16.mxu0 %v181_v21  ;;  %204 = vmatprep.subr.bf16.mxu1 %v181_v21  ;;  %v144_v56 = vld [vmem:[%s367_s3] sm:$0x3]  ;;  %v133_v57 = vrot.slane %v128_v54, %v132_v53  ;;  %v137_v58 = vrot.slane %v128_v54, %v136_v55 }
   0xf   :  { %v149_v59 = vrot.slane %v144_v56, %v132_v53  ;;  %v153_v62 = vrot.slane %v144_v56, %v136_v55 }
  0x11   :  { %184 = vmatpush1.bf16.msra.mxu0 %v183_v26  ;;  %212 = vmatpush1.bf16.msra.mxu1 %v183_v26 }
  0x12   :  { %186 = vmatprep.subr.bf16.mxu0 %v185_v27  ;;  %205 = vmatprep.subr.bf16.mxu1 %v185_v27 }
  0x15   :  { %188 = vmatpush1.bf16.msra.mxu0 %v187_v32  ;;  %213 = vmatpush1.bf16.msra.mxu1 %v187_v32 }
  0x16   :  { %190 = vmatprep.subr.bf16.mxu0 %v189_v33  ;;  %206 = vmatprep.subr.bf16.mxu1 %v189_v33 }
  0x19   :  { %192 = vmatpush1.bf16.msra.mxu0 %v191_v38  ;;  %214 = vmatpush1.bf16.msra.mxu1 %v191_v38 }
  0x1a   :  { %194 = vmatprep.subr.bf16.mxu0 %v193_v39  ;;  %207 = vmatprep.subr.bf16.mxu1 %v193_v39 }
  0x1d   :  { %196 = vmatpush1.bf16.msra.mxu0 %v195_v44  ;;  %215 = vmatpush1.bf16.msra.mxu1 %v195_v44 }
  0x1e   :  { %198 = vmatprep.subr.bf16.mxu0 %v197_v45  ;;  %208 = vmatprep.subr.bf16.mxu1 %v197_v45 }
  0x21   :  { %200 = vmatpush1.bf16.msra.mxu0 %v199_v48  ;;  %216 = vmatpush1.bf16.msra.mxu1 %v199_v48 }
  0x24   :  { %116 = vmatmul.mubr.f32.vlgmr.msra.gmra.mrb[0].mxu0 %v17_v49  ;;  %122 = vmatmul.mubr.f32.vlgmr.msra.gmra.mrb[0].mxu1 %v18_v50 }
  0xf7   :  { %v117_v60 = vpop.f32.mrb[0].mxu0  ;;  %v123_v61 = vpop.f32.mrb[0].mxu1 }
  0xf8   :  { %v140_v63 = vmul.f32 %v133_v57, %v117_v60  ;;  %v142_v0 = vmul.f32 %v133_v57, %v123_v61  ;;  %v119_v1 = vpop.f32.mrb[1].mxu0  ;;  %v125_v2 = vpop.f32.mrb[1].mxu1 }
  0xf9   :  { %v141_v3 = vmul.f32 %v137_v58, %v119_v1  ;;  %v143_v4 = vmul.f32 %v137_v58, %v125_v2 }
  0xfa   :  { %v156_v5 = vadd.f32 %v149_v59, %v140_v63  ;;  %v158_v6 = vadd.f32 %v149_v59, %v142_v0 }
  0xfb   :  { %v157_v7 = vadd.f32 %v153_v62, %v141_v3  ;;  %v159_v8 = vadd.f32 %v153_v62, %v143_v4 }
  0xfc   :  { %160 = vst [vmem:[%s368_s4] sm:$0xff] %v156_v5  ;;  %163 = vst [vmem:[%s368_s4 + $0x10] sm:$0xff] %v158_v6 }
  0xfd   :  { %162 = vst.msk [vmem:[%s368_s4 + $0x8] sm:$0xff] %vm161_vm0, %v157_v7  ;;  %164 = vst.msk [vmem:[%s368_s4 + $0x18] sm:$0xff] %vm161_vm0, %v159_v8 }

// kernel: lipnet_forward.10
= control target key start
LH: loop header
LB: loop body
LE: loop exit
PB: predicated region body
PF: predicated region fallthrough
CT: control target
= control target key end

     0   :  { %vm22_vm0 = vcmask 254976   ;;  %v435_v0 = vmov 0.0   ;;  %s480_s21 = smov 0   ;;  %s558_s0 = inlined_call_operand.vmem [shape: f32[8,2,192], index: 0, kind: input, shape index: {}]   ;;  %s559_s1 = inlined_call_operand.vmem [shape: f32[32,96], index: 1, kind: input, shape index: {}]   ;;  %s560_s2 = inlined_call_operand.vmem [shape: f32[32,96], index: 2, kind: input, shape index: {}]   ;;  %s561_s3 = inlined_call_operand.vmem [shape: f32[1,96], index: 3, kind: input, shape index: {}]   ;;  %s562_s4 = inlined_call_operand.vmem [shape: f32[1,96], index: 4, kind: input, shape index: {}]   ;;  %s563_s5 = inlined_call_operand.vmem [shape: f32[8,2,32], index: 5, kind: output, shape index: {0}]   ;;  %s564_s6 = inlined_call_operand.vmem [shape: f32[8,2,32], index: 6, kind: output, shape index: {1}]  }
   0x1   :  { %23 = vst.msk [vmem:[#allocation2] sm:$0x3] %vm22_vm0, %v435_v0  ;;  %24 = vst.msk [vmem:[#allocation3] sm:$0x3] %vm22_vm0, %v435_v0 }
   0x2 LB: > { %v33_v1 = vld [vmem:[%s559_s1] sm:$0xff]  ;;  %v34_v2 = vld [vmem:[%s559_s1 + $0x8] sm:$0xff]  ;;  %v436_v4 = vmov 0.0|0.0   ;;  %v35_v7 = vld [vmem:[%s559_s1 + $0x10] sm:$0xff]  ;;  %vm437_vm1 = vmmov 0   ;;  %v438_v12 = vmov 0.0   ;;  %v133_v19 = vlaneseq  ;;  %s433_s21 = sphi %s480_s21, %s30_s21  }
   0x3   : > { %v180_v3 = vld [vmem:[%s560_s2] sm:$0xff]  ;;  %383 = vmatprep.subr.bf16.mxu0 %v436_v4  ;;  %389 = vmatprep.subr.bf16.mxu1 %v436_v4  ;;  %v384_v5 = vpack.c.bf16 %v34_v2, %v33_v1  ;;  %v181_v6 = vld [vmem:[%s560_s2 + $0x8] sm:$0xff]  ;;  %v36_v8 = vld [vmem:[%s559_s1 + $0x18] sm:$0xff]  ;;  %vm44_vm2 = vcmask 261120   ;;  %v439_v17 = vmov 1983009808  }
   0x4   : > { %v390_v9 = vpack.c.bf16 %v181_v6, %v180_v3  ;;  %v182_v10 = vld [vmem:[%s560_s2 + $0x10] sm:$0xff]  ;;  %v183_v11 = vld [vmem:[%s560_s2 + $0x18] sm:$0xff]  ;;  %369 = vmatprep.mubr.msk.f32.mxu0 %vm437_vm1, %v438_v12  ;;  %380 = vmatprep.mubr.msk.f32.mxu1 %vm437_vm1, %v438_v12  ;;  %v387_v13 = vpack.c.bf16 %v36_v8, %v35_v7  ;;  %v131_v18 = vunpack.c.l.s4 %v439_v17  ;;  %v134_v21 = vshrl.u32 %v133_v19, 7  ;;  %v338_v22 = vld [vmem:[%s561_s3] ss:$0 sm:$0xff]  ;;  %s440_s18 = smov 64  }
   0x5   : > { %385 = vmatpush3.bf16.msra.mxu0 %v384_v5  ;;  %v393_v14 = vpack.c.bf16 %v183_v11, %v182_v10  ;;  %v343_v23 = vld [vmem:[%s562_s4] ss:$0 sm:$0xff]  ;;  %s441_s19 = smov 96   ;;  %s442_s20 = smov 32  }
   0x6   : > { %391 = vmatpush3.bf16.msra.mxu1 %v390_v9  ;;  %386 = vmatprep.subr.bf16.mxu0 %v436_v4  ;;  %v132_v20 = vunpack.c.0.s8 %v131_v18  ;;  %s349_s22 = sshll.u32 %s433_s21, 2  ;;  %s31_s26 = ssub.s32 7, %s433_s21 }
   0x7   : > { %392 = vmatprep.subr.bf16.mxu1 %v436_v4  ;;  %s120_s25 = scalar_lea.vmem %s558_s0, %s349_s22  ;;  %s350_s27 = sshll.u32 %s31_s26, 2 }
   0x8   : > { %v32_v15 = vld [vmem:[#allocation2] sm:$0x3]  ;;  %v509_v16 = vld [vmem:[#allocation3] sm:$0x3]  ;;  %v518_v24 = vsub.s32 %v132_v20, %v134_v21  ;;  %s266_s30 = scalar_lea.vmem %s558_s0, %s350_s27  ;;  %s345_s7 = sshll.u32 %s31_s26, 1 }
   0x9   : > { %388 = vmatpush3.bf16.msra.mxu0 %v387_v13  ;;  %v121_v34 = vld [vmem:[%s120_s25] sm:$0xf]  ;;  %s315_s10 = scalar_lea.vmem %s564_s6, %s345_s7  ;;  %s340_s11 = sshll.u32 %s433_s21, 1 }
   0xa   : > { %394 = vmatpush3.bf16.msra.mxu1 %v393_v14  ;;  %v159_v33 = vrot.slane %v32_v15, %v518_v24  ;;  %v267_v39 = vld [vmem:[%s266_s30] sm:$0xf]  ;;  %s177_s14 = scalar_lea.vmem %s563_s5, %s340_s11  ;;  %s30_s21 = sadd.s32 1, %s433_s21  }
   0xb   : > { %v287_v54 = vrot.slane %v267_v39, 2  ;;  %p27_p0 = scmp.ge.s32.totalorder %s30_s21, 8  }
   0xc   : > { %370 = vmatmul.mubr.msk.f32.vlgmr.msra.gmra.mrb[0].mxu0 %vm44_vm2, %v32_v15 }
   0xd   : > { %381 = vmatmul.mubr.msk.f32.vlgmr.msra.gmra.mrb[0].mxu1 %vm44_vm2, %v509_v16 }
  0xdf   : > { %v114_v25 = vpop.f32.mrb[0].mxu0 }
  0xe0   : > { %v115_v26 = vadd.f32 %v338_v22, %v114_v25  ;;  %v260_v27 = vpop.f32.mrb[0].mxu1  ;;  %v371_v28 = vpop.f32.mrb[1].mxu0 }
  0xe1   : > { %v261_v29 = vadd.f32 %v343_v23, %v260_v27  ;;  %v382_v30 = vpop.f32.mrb[1].mxu1 }
  0xe2   : > { %v136_v31 = vrot.slane %v115_v26, %v518_v24  ;;  %v122_v35 = vadd.f32 %v121_v34, %v115_v26 }
  0xe3   : > { %v275_v32 = vrot.slane %v261_v29, %v518_v24 }
  0xe4   : > { %137 = vrot.lane.b32.xlu0 %v136_v31, %s440_s18  ;;  %v342_v36 = vmul.f32 -1.442695, %v122_v35 }
  0xe5   : > { %276 = vrot.lane.b32.xlu1 %v275_v32, %s441_s19 }
  0xe6   : > { %411 = vpow2.f32 %v342_v36 }
  0xe9   : > { %296 = vrot.lane.b32.xlu1 %v275_v32, %s442_s20 }
  0xed   : > { %160 = vrot.lane.b32.xlu1 %v159_v33, %s442_s20 }
  0xf0   : > { %v412_v37 = vpop.eup %411 }
  0xf1   : > { %v126_v38 = vadd.f32 1.0, %v412_v37 }
  0xf3   : > { %413 = vrcp.f32 %v126_v38 }
  0xfd   : > { %v414_v40 = vpop.eup %413 }
  0xfe   : > { %v147_v59 = vsub.f32 1.0, %v414_v40 }
 0x156   : > { %v138_v41 = vpop.permute.xlu0 %137 }
 0x157   : > { %v277_v42 = vpop.permute.xlu1 %276  ;;  %v140_v43 = vmul.f32 %v414_v40, %v138_v41 }
 0x158   : > { %v279_v44 = vadd.f32 %v277_v42, %v267_v39  ;;  %v289_v55 = vadd.f32 %v287_v54, %v277_v42 }
 0x159   : > { %142 = vrot.lane.b32.xlu0 %v140_v43, %s440_s18 }
 0x15a   : > { %v347_v45 = vmul.f32 -1.442695, %v279_v44  ;;  %v348_v56 = vmul.f32 -1.442695, %v289_v55 }
 0x15b   : > { %v297_v49 = vpop.permute.xlu1 %296 }
 0x15c   : > { %415 = vpow2.f32 %v347_v45 }
 0x15f   : > { %v161_v58 = vpop.permute.xlu1 %160 }
 0x160   : > { %v163_v62 = vmul.f32 %v414_v40, %v161_v58 }
 0x166   : > { %v416_v46 = vpop.eup %415 }
 0x167   : > { %v283_v47 = vadd.f32 1.0, %v416_v46 }
 0x169   : > { %417 = vrcp.f32 %v283_v47 }
 0x173   : > { %v418_v48 = vpop.eup %417 }
 0x174   : > { %v299_v50 = vmul.f32 %v418_v48, %v297_v49 }
 0x176   : > { %305 = vrot.lane.b32.xlu1 %v299_v50, %s442_s20 }
 0x1cb   : > { %v143_v51 = vpop.permute.xlu0 %142 }
 0x1cc   : > { %v145_v52 = vadd.f32 %v143_v51, %v121_v34 }
 0x1ce   : > { %419 = vtanh.f32 %v145_v52 }
 0x1cf   : > { %421 = vpow2.f32 %v348_v56 }
 0x1d8   : > { %v420_v53 = vpop.eup %419 }
 0x1d9   : > { %149 = vrot.lane.b32.xlu0 %v420_v53, %s441_s19  ;;  %v422_v57 = vpop.eup %421 }
 0x1da   : > { %v293_v61 = vadd.f32 1.0, %v422_v57 }
 0x1dc   : > { %423 = vrcp.f32 %v293_v61 }
 0x1dd   : > { %300 = vrot.lane.b32.xlu0 %v267_v39, %s441_s19 }
 0x1e6   : > { %v424_v6 = vpop.eup %423 }
 0x1e7   : > { %v310_v7 = vsub.f32 1.0, %v424_v6  ;;  %v312_v9 = vmul.f32 %v424_v6, %v509_v16 }
 0x1e8   : > { %v306_v2 = vpop.permute.xlu1 %305 }
 0x24b   : > { %v150_v60 = vpop.permute.xlu0 %149 }
 0x24c   : > { %v152_v63 = vmul.f32 %v150_v60, %v147_v59 }
 0x24e   : > { %v164_v0 = vadd.f32 %v163_v62, %v152_v63 }
 0x24f   : > { %v301_v1 = vpop.permute.xlu0 %300 }
 0x250   : > { %v302_v3 = vrot.slane %v301_v1, 2  ;;  %v172_v4 = vrot.slane %v164_v0, %v518_v24 }
 0x252   : > { %v308_v5 = vadd.f32 %v306_v2, %v302_v3  ;;  %173 = vrot.lane.b32.xlu0 %v172_v4, %s441_s19 }
 0x254   : > { %425 = vtanh.f32 %v308_v5 }
 0x25e   : > { %v426_v8 = vpop.eup %425 }
 0x25f   : > { %v311_v10 = vmul.f32 %v426_v8, %v310_v7 }
 0x261   : > { %v313_v11 = vadd.f32 %v312_v9, %v311_v10 }
 0x263   : > { %314 = vst.msk [vmem:[#allocation3] sm:$0x3] %vm22_vm0, %v313_v11  ;;  %316 = vst.msk [vmem:[%s315_s10] sm:$0x3] %vm22_vm0, %v313_v11 }
 0x2bf   :  { %29 = sbr.rel (!%p27_p0) target bundleno = 2 (0x2), region = 59 }
 0x2c4   : > { %v174_v12 = vpop.permute.xlu0 %173 }
 0x2c5   : > { %176 = vst.msk [vmem:[#allocation2] sm:$0x3] %vm22_vm0, %v174_v12  ;;  %178 = vst.msk [vmem:[%s177_s14] sm:$0x3] %vm22_vm0, %v174_v12 }

// kernel: lipnet_forward.13
= control target key start
LH: loop header
LB: loop body
LE: loop exit
PB: predicated region body
PF: predicated region fallthrough
CT: control target
= control target key end

     0   :  { %vm31_vm0 = vcmask 523264   ;;  %s256_s1 = inlined_call_operand.vmem [shape: f32[64,128], index: 1, kind: input, shape index: {}]   ;;  %s257_s0 = inlined_call_operand.vmem [shape: f32[16,64], index: 0, kind: input, shape index: {}]   ;;  %s258_s2 = inlined_call_operand.vmem [shape: f32[1,128], index: 2, kind: input, shape index: {}]   ;;  %s259_s3 = inlined_call_operand.vmem [shape: f32[16,128], index: 3, kind: output, shape index: {}]  }
   0x1   :  { %v16_v0 = vld [vmem:[%s256_s1] sm:$0xff]  ;;  %v17_v1 = vld [vmem:[%s256_s1 + $0x8] sm:$0xff]  ;;  %v18_v2 = vld [vmem:[%s256_s1 + $0x10] sm:$0xff] }
   0x2   :  { %v171_v3 = vpack.c.bf16 %v17_v1, %v16_v0  ;;  %v19_v4 = vld [vmem:[%s256_s1 + $0x18] sm:$0xff]  ;;  %v20_v6 = vld [vmem:[%s256_s1 + $0x20] sm:$0xff]  ;;  %v21_v7 = vld [vmem:[%s256_s1 + $0x28] sm:$0xff] }
   0x3   :  { %v175_v5 = vpack.c.bf16 %v19_v4, %v18_v2  ;;  %v14_v8 = vld [vmem:[%s257_s0] sm:$0xff]  ;;  %v179_v9 = vpack.c.bf16 %v21_v7, %v20_v6  ;;  %v22_v10 = vld [vmem:[%s256_s1 + $0x30] sm:$0xff]  ;;  %v23_v11 = vld [vmem:[%s256_s1 + $0x38] sm:$0xff] }
   0x4   :  { %172 = vmatprep.subr.bf16.mxu0 %v171_v3  ;;  %168 = vmatprep.mubr.msk.f32.mxu0 %vm31_vm0, %v14_v8  ;;  %v183_v12 = vpack.c.bf16 %v23_v11, %v22_v10  ;;  %v15_v13 = vld [vmem:[%s257_s0 + $0x8] sm:$0xff]  ;;  %v139_v14 = vld [vmem:[%s258_s2] ss:$0 sm:$0xff] }
   0x5   :  { %174 = vmatpush3.bf16.msra.mxu0 %v171_v3 }
   0x6   :  { %176 = vmatprep.subr.bf16.mxu0 %v175_v5 }
   0x9   :  { %178 = vmatpush3.bf16.msra.mxu0 %v175_v5 }
   0xa   :  { %180 = vmatprep.subr.bf16.mxu0 %v179_v9 }
   0xd   :  { %182 = vmatpush3.bf16.msra.mxu0 %v179_v9 }
   0xe   :  { %184 = vmatprep.subr.bf16.mxu0 %v183_v12 }
  0x11   :  { %186 = vmatpush3.bf16.msra.mxu0 %v183_v12 }
  0x14   :  { %169 = vmatmul.mubr.msk.f32.vlgmr.msra.gmra.mrb[0].mxu0 %vm31_vm0, %v15_v13 }
  0xe7   :  { %v170_v15 = vpop.f32.mrb[0].mxu0 }
  0xe8   :  { %v104_v16 = vpop.f32.mrb[1].mxu0  ;;  %v110_v18 = vadd.f32 %v170_v15, %v139_v14 }
  0xe9   :  { %v105_v17 = vadd.f32 %v139_v14, %v104_v16 }
  0xeb   :  { %113 = vmax.xlane.f32.xlu0 %v105_v17 }
  0xef   :  { %115 = vmax.xlane.f32.xlu0 %v110_v18 }
 0x178   :  { %v114_v19 = vpop.xlane.xlu0 %113 }
 0x179   :  { %v117_v20 = vsub.f32 %v105_v17, %v114_v19 }
 0x17b   :  { %v119_v21 = vmul.f32 1.442695, %v117_v20 }
 0x17c   :  { %v116_v22 = vpop.xlane.xlu0 %115 }
 0x17d   :  { %v118_v23 = vsub.f32 %v110_v18, %v116_v22  ;;  %187 = vpow2.f32 %v119_v21 }
 0x17f   :  { %v121_v24 = vmul.f32 1.442695, %v118_v23 }
 0x181   :  { %189 = vpow2.f32 %v121_v24 }
 0x187   :  { %v188_v25 = vpop.eup %187 }
 0x188   :  { %123 = vadd.xlane.f32.xlu1 %v188_v25 }
 0x18b   :  { %v190_v26 = vpop.eup %189 }
 0x18c   :  { %125 = vadd.xlane.f32.xlu1 %v190_v26 }
 0x215   :  { %v124_v27 = vpop.xlane.xlu1 %123 }
 0x216   :  { %191 = vlog2.f32 %v124_v27 }
 0x219   :  { %v126_v28 = vpop.xlane.xlu1 %125 }
 0x21a   :  { %193 = vlog2.f32 %v126_v28 }
 0x220   :  { %v192_v29 = vpop.eup %191 }
 0x221   :  { %v128_v30 = vmul.f32 0.6931472, %v192_v29 }
 0x223   :  { %v131_v31 = vsub.f32 %v117_v20, %v128_v30 }
 0x224   :  { %v194_v32 = vpop.eup %193 }
 0x225   :  { %133 = vst [vmem:[%s259_s3] sm:$0xff] %v131_v31  ;;  %v130_v33 = vmul.f32 0.6931472, %v194_v32 }
 0x227   :  { %v132_v34 = vsub.f32 %v118_v23, %v130_v33 }
 0x229   :  { %134 = vst [vmem:[%s259_s3 + $0x8] sm:$0xff] %v132_v34 }

// kernel: lipnet_forward.11
= control target key start
LH: loop header
LB: loop body
LE: loop exit
PB: predicated region body
PF: predicated region fallthrough
CT: control target
= control target key end

     0   :  { %v186_v3 = vmov 0.0   ;;  %vm35_vm0 = vcmask 523264   ;;  %v121_v27 = vlaneseq  ;;  %s288_s1 = inlined_call_operand.vmem [shape: f32[64,192], index: 1, kind: input, shape index: {}]   ;;  %s289_s0 = inlined_call_operand.vmem [shape: f32[16,64], index: 0, kind: input, shape index: {}]   ;;  %s290_s2 = inlined_call_operand.vmem [shape: f32[1,192], index: 2, kind: input, shape index: {}]   ;;  %s291_s3 = inlined_call_operand.vmem [shape: f32[1,192], index: 3, kind: input, shape index: {}]   ;;  %s292_s4 = inlined_call_operand.vmem [shape: f32[16,192], index: 4, kind: output, shape index: {}]  }
   0x1   :  { %v20_v0 = vld [vmem:[%s288_s1 + $0x8] sm:$0xff]  ;;  %v22_v1 = vld [vmem:[%s288_s1 + $0x18] sm:$0xff]  ;;  %v19_v2 = vld [vmem:[%s288_s1] sm:$0xff]  ;;  %106 = vmatprep.mubr.f32.mxu0 %v186_v3  ;;  %112 = vmatprep.mubr.f32.mxu1 %v186_v3 }
   0x2   :  { %v161_v4 = vpack.c.bf16 %v22_v1, %v20_v0  ;;  %v21_v5 = vld [vmem:[%s288_s1 + $0x10] sm:$0xff]  ;;  %v24_v6 = vld [vmem:[%s288_s1 + $0x28] sm:$0xff]  ;;  %v26_v7 = vld [vmem:[%s288_s1 + $0x38] sm:$0xff]  ;;  %v122_v28 = vshrl.u32 %v121_v27, 7 }
   0x3   :  { %v163_v8 = vpack.c.bf16 %v21_v5, %v19_v2  ;;  %v165_v9 = vpack.c.bf16 %v26_v7, %v24_v6  ;;  %v23_v10 = vld [vmem:[%s288_s1 + $0x20] sm:$0xff]  ;;  %v25_v11 = vld [vmem:[%s288_s1 + $0x30] sm:$0xff]  ;;  %v28_v12 = vld [vmem:[%s288_s1 + $0x48] sm:$0xff] }
   0x4   :  { %162 = vmatprep.subr.bf16.mxu0 %v161_v4  ;;  %177 = vmatprep.subr.bf16.mxu1 %v161_v4  ;;  %v30_v13 = vld [vmem:[%s288_s1 + $0x58] sm:$0xff]  ;;  %v167_v14 = vpack.c.bf16 %v25_v11, %v23_v10  ;;  %v27_v16 = vld [vmem:[%s288_s1 + $0x40] sm:$0xff]  ;;  %v29_v17 = vld [vmem:[%s288_s1 + $0x50] sm:$0xff]  ;;  %v123_v29 = vsub.s32 0, %v122_v28  ;;  %v127_v31 = vsub.s32 1, %v122_v28 }
   0x5   :  { %164 = vmatpush1.bf16.msra.mxu0 %v163_v8  ;;  %181 = vmatpush1.bf16.msra.mxu1 %v163_v8  ;;  %v169_v15 = vpack.c.bf16 %v30_v13, %v28_v12  ;;  %v32_v18 = vld [vmem:[%s288_s1 + $0x68] sm:$0xff]  ;;  %v34_v19 = vld [vmem:[%s288_s1 + $0x78] sm:$0xff]  ;;  %v171_v20 = vpack.c.bf16 %v29_v17, %v27_v16  ;;  %v31_v22 = vld [vmem:[%s288_s1 + $0x60] sm:$0xff] }
   0x6   :  { %166 = vmatprep.subr.bf16.mxu0 %v165_v9  ;;  %178 = vmatprep.subr.bf16.mxu1 %v165_v9  ;;  %v173_v21 = vpack.c.bf16 %v34_v19, %v32_v18  ;;  %v33_v23 = vld [vmem:[%s288_s1 + $0x70] sm:$0xff]  ;;  %v17_v25 = vld [vmem:[%s289_s0] sm:$0xff]  ;;  %v18_v26 = vld [vmem:[%s289_s0 + $0x8] sm:$0xff] }
   0x7   :  { %v175_v24 = vpack.c.bf16 %v33_v23, %v31_v22  ;;  %v119_v30 = vld [vmem:[%s290_s2] sm:$0x3] }
   0x8   :  { %v135_v32 = vld [vmem:[%s291_s3] sm:$0x3]  ;;  %v124_v33 = vrot.slane %v119_v30, %v123_v29  ;;  %v128_v34 = vrot.slane %v119_v30, %v127_v31 }
   0x9   :  { %168 = vmatpush1.bf16.msra.mxu0 %v167_v14  ;;  %182 = vmatpush1.bf16.msra.mxu1 %v167_v14  ;;  %v140_v35 = vrot.slane %v135_v32, %v123_v29  ;;  %v144_v38 = vrot.slane %v135_v32, %v127_v31 }
   0xa   :  { %170 = vmatprep.subr.bf16.mxu0 %v169_v15  ;;  %179 = vmatprep.subr.bf16.mxu1 %v169_v15 }
   0xd   :  { %172 = vmatpush1.bf16.msra.mxu0 %v171_v20  ;;  %183 = vmatpush1.bf16.msra.mxu1 %v171_v20 }
   0xe   :  { %174 = vmatprep.subr.bf16.mxu0 %v173_v21  ;;  %180 = vmatprep.subr.bf16.mxu1 %v173_v21 }
  0x11   :  { %176 = vmatpush1.bf16.msra.mxu0 %v175_v24  ;;  %184 = vmatpush1.bf16.msra.mxu1 %v175_v24 }
  0x14   :  { %159 = vmatmul.mubr.msk.f32.vlgmr.msra.gmra.mrb[0].mxu0 %vm35_vm0, %v17_v25  ;;  %160 = vmatmul.mubr.msk.f32.vlgmr.msra.gmra.mrb[0].mxu1 %vm35_vm0, %v18_v26 }
  0xe7   :  { %v108_v36 = vpop.f32.mrb[0].mxu0  ;;  %v114_v37 = vpop.f32.mrb[0].mxu1 }
  0xe8   :  { %v131_v39 = vmul.f32 %v124_v33, %v108_v36  ;;  %v133_v40 = vmul.f32 %v124_v33, %v114_v37  ;;  %v110_v41 = vpop.f32.mrb[1].mxu0  ;;  %v116_v42 = vpop.f32.mrb[1].mxu1 }
  0xe9   :  { %v132_v43 = vmul.f32 %v128_v34, %v110_v41  ;;  %v134_v44 = vmul.f32 %v128_v34, %v116_v42 }
  0xea   :  { %v147_v45 = vadd.f32 %v140_v35, %v131_v39  ;;  %v149_v46 = vadd.f32 %v140_v35, %v133_v40 }
  0xeb   :  { %v148_v47 = vadd.f32 %v144_v38, %v132_v43  ;;  %v150_v48 = vadd.f32 %v144_v38, %v134_v44 }
  0xec   :  { %151 = vst [vmem:[%s292_s4] sm:$0xff] %v147_v45  ;;  %153 = vst [vmem:[%s292_s4 + $0x10] sm:$0xff] %v149_v46 }
  0xed   :  { %152 = vst.msk [vmem:[%s292_s4 + $0x8] sm:$0xff] %vm35_vm0, %v148_v47  ;;  %154 = vst.msk [vmem:[%s292_s4 + $0x18] sm:$0xff] %vm35_vm0, %v150_v48 }

</bundles_post_ra>
